<compile_context>
chip_gen: v7x
topology: tpu7x:2x2x1
jax: 0.10.0
libtpu: 0.0.40
codegen_flags: <defaults>
</compile_context>

<pallas_src>
import math
import numpy as np
import jax
import jax.numpy as jnp
from jax.experimental import pallas as pl
from jax.experimental.pallas import tpu as pltpu

F32 = jnp.float32
LN_EPS = 1e-5

# ----------------------------- configuration (small, synthetic) -----------------------------
CFG = dict(
    img_size=16, patch_size=4, in_chans=3,
    embed_dim=32, depth=6, num_heads=4,
    decoder_embed_dim=16, decoder_depth=2, decoder_num_heads=4,
    mlp_ratio=4.0, num_tokens=1, pred_dim=32,
)
CFG["num_adap"] = CFG["depth"] // 3                       # TECViT default (depth // 3)
CFG["num_patches"] = (CFG["img_size"] // CFG["patch_size"]) ** 2


# ----------------------------- in-kernel math helpers -----------------------------

def _gelu_tanh(x):
    # TODO(synk): PyTorch nn.GELU() default is exact erf-GELU; tanh approximation is used here
    # because it lowers cleanly to the TPU EUP (differs at the ~1e-3 level).
    c = math.sqrt(2.0 / math.pi)
    return 0.5 * x * (1.0 + jnp.tanh(c * (x + 0.044715 * x * x * x)))


def _ln(x, g, b, eps=LN_EPS):
    mu = jnp.mean(x, axis=-1, keepdims=True)
    var = jnp.mean((x - mu) ** 2, axis=-1, keepdims=True)
    return (x - mu) * jax.lax.rsqrt(var + eps) * g + b


# ----------------------------- Pallas kernels -----------------------------

def patch_embed_pos(patches, w, b, pos):
    """(B, L, C*p*p) unfolded patches -> (B, L, E) tokens = patches @ w + b + pos. One kernel,
    grid over batch (parallel)."""
    B, L, Cpp = patches.shape
    E = w.shape[1]

    def kernel(p_ref, w_ref, b_ref, pos_ref, o_ref):
        y = jnp.dot(p_ref[0], w_ref[...], preferred_element_type=jnp.float32)
        o_ref[0] = y + b_ref[...] + pos_ref[...]

    return pl.pallas_call(
        kernel,
        out_shape=jax.ShapeDtypeStruct((B, L, E), F32),
        grid=(B,),
        in_specs=[
            pl.BlockSpec((1, L, Cpp), lambda i: (i, 0, 0)),
            pl.BlockSpec((Cpp, E), lambda i: (0, 0)),
            pl.BlockSpec((1, E), lambda i: (0, 0)),
            pl.BlockSpec((L, E), lambda i: (0, 0)),
        ],
        out_specs=pl.BlockSpec((1, L, E), lambda i: (i, 0, 0)),
        compiler_params=pltpu.CompilerParams(dimension_semantics=("parallel",)),
    )(patches, w, b, pos)


def transformer_stack(x, w, num_heads, final_g=None, final_b=None, collect=False):
    """Fused stack of pre-norm transformer blocks (timm Block): one pallas_call, grid=(B, depth).
    Batch axis is 'parallel' (megacore on v7x), depth is an 'arbitrary' carry in a VMEM scratch.
    Per-depth weights are streamed as (depth, ...) blocks. The whole block
    (LN1 -> QKV -> per-head softmax attention -> proj -> residual -> LN2 -> fc1+GELU -> fc2 ->
    residual) runs in a single kernel body; attention heads are static lane slices of the
    (T, 3E) QKV tile and the head concat is folded into the output projection.
    collect=True returns per-block outputs stacked as (B, depth, T, E), with the final LayerNorm
    applied to the last slot (== TECViT's x_set)."""
    B, T, E = x.shape
    depth = w["qkv_w"].shape[0]
    Dh = E // num_heads
    scale = Dh ** -0.5
    has_final = final_g is not None

    def kernel(*refs):
        x_ref = refs[0]
        (n1g, n1b, qkvw, qkvb, pw, pb, n2g, n2b, f1w, f1b, f2w, f2b) = refs[1:13]
        i = 13
        if has_final:
            fng, fnb = refs[13], refs[14]
            i = 15
        out_ref = refs[i]
        x_scr = refs[i + 1]

        d = pl.program_id(1)

        @pl.when(d == 0)
        def _():
            x_scr[...] = x_ref[0]

        x_cur = x_scr[...]                                           # (T, E)

        # ---- attention ----
        h = _ln(x_cur, n1g[0], n1b[0])
        qkv = jnp.dot(h, qkvw[0], preferred_element_type=jnp.float32) + qkvb[0]   # (T, 3E)
        q, k_, v = qkv[:, :E], qkv[:, E:2 * E], qkv[:, 2 * E:]
        proj_w = pw[0]
        att = jnp.zeros((T, E), jnp.float32)
        for hh in range(num_heads):
            sl = slice(hh * Dh, (hh + 1) * Dh)
            s = jnp.dot(q[:, sl], k_[:, sl].T, preferred_element_type=jnp.float32) * scale
            s = s - jnp.max(s, axis=-1, keepdims=True)
            p_ = jnp.exp(s)
            p_ = p_ * pl.reciprocal(jnp.sum(p_, axis=-1, keepdims=True), approx=True)
            oh = jnp.dot(p_, v[:, sl], preferred_element_type=jnp.float32)          # (T, Dh)
            att = att + jnp.dot(oh, proj_w[sl, :], preferred_element_type=jnp.float32)
        x_cur = x_cur + att + pb[0]

        # ---- MLP ----
        h = _ln(x_cur, n2g[0], n2b[0])
        h = _gelu_tanh(jnp.dot(h, f1w[0], preferred_element_type=jnp.float32) + f1b[0])
        h = jnp.dot(h, f2w[0], preferred_element_type=jnp.float32) + f2b[0]
        x_cur = x_cur + h

        x_scr[...] = x_cur

        last = pl.num_programs(1) - 1
        if collect:
            @pl.when(d < last)
            def _():
                out_ref[0, 0] = x_cur

            @pl.when(d == last)
            def _():
                out_ref[0, 0] = _ln(x_cur, fng[...], fnb[...]) if has_final else x_cur
        else:
            @pl.when(d == last)
            def _():
                out_ref[0] = x_cur

    def wspec(arr):
        nd = arr.ndim
        return pl.BlockSpec((1,) + arr.shape[1:],
                            lambda b_, d_, _nd=nd: (d_,) + (0,) * (_nd - 1))

    weight_list = [w["n1_g"], w["n1_b"], w["qkv_w"], w["qkv_b"], w["proj_w"], w["proj_b"],
                   w["n2_g"], w["n2_b"], w["fc1_w"], w["fc1_b"], w["fc2_w"], w["fc2_b"]]
    in_specs = [pl.BlockSpec((1, T, E), lambda b_, d_: (b_, 0, 0))]
    in_specs += [wspec(a) for a in weight_list]
    args = [x] + weight_list
    if has_final:
        in_specs += [pl.BlockSpec((1, E), lambda b_, d_: (0, 0))] * 2
        args += [final_g, final_b]

    if collect:
        out_shape = jax.ShapeDtypeStruct((B, depth, T, E), F32)
        out_spec = pl.BlockSpec((1, 1, T, E), lambda b_, d_: (b_, d_, 0, 0))
    else:
        out_shape = jax.ShapeDtypeStruct((B, T, E), F32)
        out_spec = pl.BlockSpec((1, T, E), lambda b_, d_: (b_, 0, 0))

    return pl.pallas_call(
        kernel,
        out_shape=out_shape,
        grid=(B, depth),
        in_specs=in_specs,
        out_specs=out_spec,
        scratch_shapes=[pltpu.VMEM((T, E), jnp.float32)],
        compiler_params=pltpu.CompilerParams(
            dimension_semantics=("parallel", "arbitrary")),
    )(*args)


def adaptor_decoder_embed(xs, a, fd):
    """FeatureAdaptor (adap_before LN over E*depth -> num_adap x (fuse_fc, MLP, residual) -> sum
    -> adap_after LN) fused with the feature-decoder embed projection. One pallas_call, grid over
    batch. The (B, T, E*depth) concatenated latent is never materialized: the kernel reads the
    stacked (B, depth, T, E) per-block outputs and slices chunks along the depth axis."""
    B, depth, T, E = xs.shape
    num_adap, k = a["fuse_w"].shape[0], a["fuse_w"].shape[1]
    D = fd["embed_w"].shape[1]

    def kernel(xs_ref, gb, bb, fw, fb, m1w, m1b, m2w, m2b, ga, ba, ew, eb, o_ref):
        z = xs_ref[0]                                                # (depth, T, E)
        inv_n = 1.0 / (depth * E)
        mu = jnp.sum(jnp.sum(z, axis=2, keepdims=True), axis=0, keepdims=True) * inv_n
        zc = z - mu
        var = jnp.sum(jnp.sum(zc * zc, axis=2, keepdims=True), axis=0, keepdims=True) * inv_n
        zn = zc * jax.lax.rsqrt(var + LN_EPS) * gb[...] + bb[...]    # (depth, T, E)

        out = jnp.zeros((T, E), jnp.float32)
        for i in range(num_adap):
            xi = jnp.broadcast_to(fb[i], (T, E))
            for j in range(k):
                xi = xi + jnp.dot(zn[i * k + j], fw[i, j], preferred_element_type=jnp.float32)
            yi = _gelu_tanh(jnp.dot(xi, m1w[i], preferred_element_type=jnp.float32) + m1b[i])
            yi = jnp.dot(yi, m2w[i], preferred_element_type=jnp.float32) + m2b[i]
            out = out + yi + xi
        out = _ln(out, ga[...], ba[...])
        o_ref[0] = jnp.dot(out, ew[...], preferred_element_type=jnp.float32) + eb[...]

    def cspec(arr):
        nd = arr.ndim
        return pl.BlockSpec(arr.shape, lambda b_, _nd=nd: (0,) * _nd)

    args = [xs, a["before_g"], a["before_b"], a["fuse_w"], a["fuse_b"],
            a["mlp1_w"], a["mlp1_b"], a["mlp2_w"], a["mlp2_b"],
            a["after_g"], a["after_b"], fd["embed_w"], fd["embed_b"]]
    in_specs = [pl.BlockSpec((1, depth, T, E), lambda b_: (b_, 0, 0, 0))]
    in_specs += [cspec(arr) for arr in args[1:]]

    return pl.pallas_call(
        kernel,
        out_shape=jax.ShapeDtypeStruct((B, T, D), F32),
        grid=(B,),
        in_specs=in_specs,
        out_specs=pl.BlockSpec((1, T, D), lambda b_: (b_, 0, 0)),
        compiler_params=pltpu.CompilerParams(dimension_semantics=("parallel",)),
    )(*args)


def decoder_pred_loss(xdec, fd, target):
    """decoder_norm + decoder_pred + drop cls + forward_loss_feature's per-token MSE against the
    sequence-normalized (unbiased-variance, like torch.var) target, fused; grid over batch.
    Returns per-token (B, L, 1) values; the tiny masked mean is done in the wrapper."""
    B, Tdec, D = xdec.shape
    _, L, P = target.shape
    nt = Tdec - L

    def kernel(x_ref, ng, nb, pw, pb, t_ref, o_ref):
        h = _ln(x_ref[0], ng[...], nb[...])                          # (Tdec, D)
        pred = jnp.dot(h, pw[...], preferred_element_type=jnp.float32) + pb[...]
        pred = pred[nt:, :]                                          # (L, P)
        t = t_ref[0]                                                 # (L, P)
        mean = jnp.mean(t, axis=0, keepdims=True)
        var = jnp.sum((t - mean) ** 2, axis=0, keepdims=True) / (L - 1)
        tn = (t - mean) * jax.lax.rsqrt(var + 1e-6)
        o_ref[0] = jnp.mean((pred - tn) ** 2, axis=-1, keepdims=True)  # (L, 1)

    return pl.pallas_call(
        kernel,
        out_shape=jax.ShapeDtypeStruct((B, L, 1), F32),
        grid=(B,),
        in_specs=[
            pl.BlockSpec((1, Tdec, D), lambda b_: (b_, 0, 0)),
            pl.BlockSpec((1, D), lambda b_: (0, 0)),
            pl.BlockSpec((1, D), lambda b_: (0, 0)),
            pl.BlockSpec((D, P), lambda b_: (0, 0)),
            pl.BlockSpec((1, P), lambda b_: (0, 0)),
            pl.BlockSpec((1, L, P), lambda b_: (b_, 0, 0)),
        ],
        out_specs=pl.BlockSpec((1, L, 1), lambda b_: (b_, 0, 0)),
        compiler_params=pltpu.CompilerParams(dimension_semantics=("parallel",)),
    )(xdec, fd["norm_g"], fd["norm_b"], fd["pred_w"], fd["pred_b"], target)


# ----------------------------- sincos positional embedding (glue, numpy) -----------------------------

def _sincos_1d(embed_dim, pos):
    omega = np.arange(embed_dim // 2, dtype=np.float64) / (embed_dim / 2.0)
    omega = 1.0 / 10000 ** omega
    out = np.einsum("m,d->md", pos.reshape(-1), omega)
    return np.concatenate([np.sin(out), np.cos(out)], axis=1)


def get_2d_sincos_pos_embed(embed_dim, grid_size, cls_token=False, num_tokens=1):
    grid_h = np.arange(grid_size, dtype=np.float64)
    grid_w = np.arange(grid_size, dtype=np.float64)
    grid = np.stack(np.meshgrid(grid_w, grid_h), axis=0).reshape(2, 1, grid_size, grid_size)
    emb_h = _sincos_1d(embed_dim // 2, grid[0])
    emb_w = _sincos_1d(embed_dim // 2, grid[1])
    pos = np.concatenate([emb_h, emb_w], axis=1)
    if cls_token:
        pos = np.concatenate([np.zeros([num_tokens, embed_dim]), pos], axis=0)
    return pos.astype(np.float32)


# ----------------------------- parameter init (deterministic, synthetic) -----------------------------

def init_params(key):
    kit = iter(jax.random.split(key, 256))
    nk = lambda: next(kit)

    def xavier(shape, fan_in, fan_out):
        limit = math.sqrt(6.0 / (fan_in + fan_out))
        return jax.random.uniform(nk(), shape, F32, -limit, limit)

    E, D = CFG["embed_dim"], CFG["decoder_embed_dim"]
    p, cin = CFG["patch_size"], CFG["in_chans"]
    gs = int(CFG["num_patches"] ** 0.5)
    depth, dec_depth = CFG["depth"], CFG["decoder_depth"]
    num_adap = CFG["num_adap"]
    k = depth // num_adap
    mid = 4 * D                                           # mid_embed_dim = decoder_embed_dim * 4

    def block_stack(n, dim, hidden):
        return dict(
            n1_g=jnp.ones((n, 1, dim), F32), n1_b=jnp.zeros((n, 1, dim), F32),
            qkv_w=xavier((n, dim, 3 * dim), dim, 3 * dim),
            qkv_b=jnp.zeros((n, 1, 3 * dim), F32),
            proj_w=xavier((n, dim, dim), dim, dim),
            proj_b=jnp.zeros((n, 1, dim), F32),
            n2_g=jnp.ones((n, 1, dim), F32), n2_b=jnp.zeros((n, 1, dim), F32),
            fc1_w=xavier((n, dim, hidden), dim, hidden),
            fc1_b=jnp.zeros((n, 1, hidden), F32),
            fc2_w=xavier((n, hidden, dim), hidden, dim),
            fc2_b=jnp.zeros((n, 1, dim), F32),
        )

    params = dict(
        patch_embed=dict(w=xavier((cin * p * p, E), cin * p * p, E), b=jnp.zeros((1, E), F32)),
        cls_token=0.02 * jax.random.normal(nk(), (1, CFG["num_tokens"], E), F32),
        pos_embed=jnp.asarray(get_2d_sincos_pos_embed(E, gs, cls_token=True,
                                                      num_tokens=CFG["num_tokens"]))[None],
        blocks=block_stack(depth, E, int(E * CFG["mlp_ratio"])),
        norm=dict(g=jnp.ones((1, E), F32), b=jnp.zeros((1, E), F32)),
        adaptor=dict(
            before_g=jnp.ones((depth, 1, E), F32), before_b=jnp.zeros((depth, 1, E), F32),
            fuse_w=xavier((num_adap, k * E, E), k * E, E).reshape(num_adap, k, E, E),
            fuse_b=jnp.zeros((num_adap, 1, E), F32),
            mlp1_w=xavier((num_adap, E, mid), E, mid),
            mlp1_b=jnp.zeros((num_adap, 1, mid), F32),
            mlp2_w=xavier((num_adap, mid, E), mid, E),
            mlp2_b=jnp.zeros((num_adap, 1, E), F32),
            after_g=jnp.ones((1, E), F32), after_b=jnp.zeros((1, E), F32),
        ),
        fea_decoder=dict(
            embed_w=xavier((E, D), E, D), embed_b=jnp.zeros((1, D), F32),
            mask_token=0.02 * jax.random.normal(nk(), (1, 1, D), F32),
            norm_g=jnp.ones((1, D), F32), norm_b=jnp.zeros((1, D), F32),
            pred_w=xavier((D, CFG["pred_dim"]), D, CFG["pred_dim"]),
            pred_b=jnp.zeros((1, CFG["pred_dim"]), F32),
        ),
        decoder_blocks=block_stack(dec_depth, D, int(D * CFG["mlp_ratio"])),
        decoder_pos_embed=jnp.asarray(get_2d_sincos_pos_embed(D, gs, cls_token=True,
                                                              num_tokens=CFG["num_tokens"]))[None],
    )
    return params


# ----------------------------- model forward (thin glue around fused kernels) -----------------------------

def tecvit_forward(params, imgs, targets, noise_key, mask_ratio=0.75):
    B = imgs.shape[0]
    E, D = CFG["embed_dim"], CFG["decoder_embed_dim"]
    p = CFG["patch_size"]
    gh = CFG["img_size"] // p
    L = CFG["num_patches"]
    nt = CFG["num_tokens"]
    Cin = CFG["in_chans"]

    # ---- prepare_token (mlp_token=False) ----
    cls = params["cls_token"] + params["pos_embed"][:, :nt, :]
    cls = jnp.broadcast_to(cls, (B, nt, E))

    # ---- forward_encoder ----
    # PatchEmbed (stride-p Conv2d) == unfold NCHW -> (B, L, C*p*p), then fused embed+pos kernel.
    x = imgs.reshape(B, Cin, gh, p, gh, p)
    x = jnp.transpose(x, (0, 2, 4, 1, 3, 5)).reshape(B, L, Cin * p * p)
    tokens = patch_embed_pos(x, params["patch_embed"]["w"], params["patch_embed"]["b"],
                             params["pos_embed"][0, nt:, :])

    # random_masking (argsort of uniform noise, same semantics as torch.rand + argsort)
    len_keep = int(L * (1 - mask_ratio))
    noise = jax.random.uniform(noise_key, (B, L), F32)
    ids_shuffle = jnp.argsort(noise, axis=1)
    ids_restore = jnp.argsort(ids_shuffle, axis=1)
    ids_keep = ids_shuffle[:, :len_keep]
    x_masked = jnp.take_along_axis(
        tokens, jnp.broadcast_to(ids_keep[:, :, None], (B, len_keep, E)), axis=1)
    mask = jnp.ones((B, L), F32).at[:, :len_keep].set(0.0)
    mask = jnp.take_along_axis(mask, ids_restore, axis=1)

    x = jnp.concatenate([cls, x_masked], axis=1)                     # (B, 1+len_keep, E)

    # all encoder blocks + final norm, fused; per-block outputs stacked (== x_set)
    xs = transformer_stack(x, params["blocks"], CFG["num_heads"],
                           final_g=params["norm"]["g"], final_b=params["norm"]["b"],
                           collect=True)                             # (B, depth, T, E)

    # ---- encoder_adaptor + decoder_embed (fused) ----
    xd = adaptor_decoder_embed(xs, params["adaptor"], params["fea_decoder"])   # (B, T, D)

    # ---- forward_fea_decoder: mask-token scatter + pos (tiny XLA glue) ----
    fd = params["fea_decoder"]
    n_mask = ids_restore.shape[1] + nt - xd.shape[1]
    mask_tokens = jnp.broadcast_to(fd["mask_token"], (B, n_mask, D))
    x_ = jnp.concatenate([xd[:, nt:, :], mask_tokens], axis=1)
    x_ = jnp.take_along_axis(x_, jnp.broadcast_to(ids_restore[:, :, None], (B, L, D)), axis=1)
    xdec = jnp.concatenate([xd[:, :nt, :], x_], axis=1) + params["decoder_pos_embed"]

    # all decoder blocks, fused
    xdec = transformer_stack(xdec, params["decoder_blocks"], CFG["decoder_num_heads"])

    # decoder_norm + decoder_pred + per-token feature loss, fused; masked mean in the wrapper
    per_tok = decoder_pred_loss(xdec, fd, targets[0])[:, :, 0]       # (B, L)
    loss_fea = jnp.sum(per_tok * mask) / jnp.sum(mask)

    loss_set = {"loss_fea": [loss_fea, 1.0]}
    # pred_att defaults to False in the reference module, so no ViTDecoderAtt branch is run.
    return loss_set, None, None


# ----------------------------- main -----------------------------

if __name__ == "__main__":
    root = jax.random.PRNGKey(0)
    k_params, k_imgs, k_tgt, k_noise = jax.random.split(root, 4)

    params = init_params(k_params)
    imgs = jax.random.normal(k_imgs, (2, CFG["in_chans"], CFG["img_size"], CFG["img_size"]), F32)
    targets0 = jax.random.normal(k_tgt, (2, CFG["num_patches"], CFG["pred_dim"]), F32)

    @jax.jit
    def run(params, imgs, targets0, noise_key):
        loss_set, _, _ = tecvit_forward(params, imgs, [targets0], noise_key, mask_ratio=0.75)
        return loss_set["loss_fea"][0]

    loss = run(params, imgs, targets0, k_noise)
    jax.block_until_ready(loss)
    print("KERNEL_OK")
</pallas_src>

<mosaic_0001>
module attributes {stable_mosaic.version = 11 : i64} {
  func.func @kernel(%arg0: i32, %arg1: memref<1x16x48xf32, #tpu.memory_space<vmem>>, %arg2: memref<48x32xf32, #tpu.memory_space<vmem>>, %arg3: memref<1x32xf32, #tpu.memory_space<vmem>>, %arg4: memref<16x32xf32, #tpu.memory_space<vmem>>, %arg5: memref<1x16x32xf32, #tpu.memory_space<vmem>>) attributes {dimension_semantics = [#tpu.dimension_semantics<parallel>], iteration_bounds = array<i64: 2>, scalar_prefetch = 0 : i64, scratch_operands = 0 : i64, tpu.core_type = #tpu.core_type<tc>, window_params = [{transform_indices = @transform_0, window_bounds = array<i64: 1, 16, 48>}, {pipeline_mode = #tpu.pipeline_mode<synchronous>, transform_indices = @transform_1, window_bounds = array<i64: 48, 32>}, {pipeline_mode = #tpu.pipeline_mode<synchronous>, transform_indices = @transform_2, window_bounds = array<i64: 1, 32>}, {pipeline_mode = #tpu.pipeline_mode<synchronous>, transform_indices = @transform_3, window_bounds = array<i64: 16, 32>}, {transform_indices = @transform_4, window_bounds = array<i64: 1, 16, 32>}]} {
    %c0 = arith.constant 0 : index
    %c0_0 = arith.constant 0 : index
    %c0_1 = arith.constant 0 : index
    %0 = vector.load %arg1[%c0, %c0_0, %c0_1] : memref<1x16x48xf32, #tpu.memory_space<vmem>>, vector<1x16x48xf32>
    %1 = vector.shape_cast %0 : vector<1x16x48xf32> to vector<16x48xf32>
    %c0_2 = arith.constant 0 : index
    %c0_3 = arith.constant 0 : index
    %2 = vector.load %arg2[%c0_2, %c0_3] : memref<48x32xf32, #tpu.memory_space<vmem>>, vector<48x32xf32>
    %cst = arith.constant dense<0.000000e+00> : vector<16x32xf32>
    %3 = tpu.matmul %1, %2, %cst {dimension_numbers = #tpu.dot_dimension_numbers<[1], [0], [0], [1], [0, 0, 1, 1], [], []>} : vector<16x48xf32>, vector<48x32xf32>, vector<16x32xf32> -> vector<16x32xf32>
    %c0_4 = arith.constant 0 : index
    %c0_5 = arith.constant 0 : index
    %4 = vector.load %arg3[%c0_4, %c0_5] : memref<1x32xf32, #tpu.memory_space<vmem>>, vector<1x32xf32>
    %5 = vector.broadcast %4 : vector<1x32xf32> to vector<16x32xf32>
    %6 = arith.addf %3, %5 : vector<16x32xf32>
    %c0_6 = arith.constant 0 : index
    %c0_7 = arith.constant 0 : index
    %7 = vector.load %arg4[%c0_6, %c0_7] : memref<16x32xf32, #tpu.memory_space<vmem>>, vector<16x32xf32>
    %8 = arith.addf %6, %7 : vector<16x32xf32>
    %c0_8 = arith.constant 0 : index
    %c0_9 = arith.constant 0 : index
    %c0_10 = arith.constant 0 : index
    %9 = vector.load %arg5[%c0_8, %c0_9, %c0_10] : memref<1x16x32xf32, #tpu.memory_space<vmem>>, vector<1x16x32xf32>
    %10 = vector.shape_cast %9 : vector<1x16x32xf32> to vector<16x32xf32>
    %11 = vector.shape_cast %8 : vector<16x32xf32> to vector<1x16x32xf32>
    tpu.vector_store %arg5[%c0_8, %c0_9, %c0_10], %11 {strides = array<i32>} : memref<1x16x32xf32, #tpu.memory_space<vmem>>, vector<1x16x32xf32>,
    return
  }
  func.func @transform_0(%arg0: i32) -> (i32, i32, i32) {
    %c0_i32 = arith.constant 0 : i32
    %c0_i32_0 = arith.constant 0 : i32
    %c0_i32_1 = arith.constant 0 : i32
    return %arg0, %c0_i32, %c0_i32_0 : i32, i32, i32
  }
  func.func @transform_1(%arg0: i32) -> (i32, i32) {
    %c0_i32 = arith.constant 0 : i32
    %c0_i32_0 = arith.constant 0 : i32
    %c0_i32_1 = arith.constant 0 : i32
    return %c0_i32, %c0_i32_0 : i32, i32
  }
  func.func @transform_2(%arg0: i32) -> (i32, i32) {
    %c0_i32 = arith.constant 0 : i32
    %c0_i32_0 = arith.constant 0 : i32
    %c0_i32_1 = arith.constant 0 : i32
    return %c0_i32, %c0_i32_0 : i32, i32
  }
  func.func @transform_3(%arg0: i32) -> (i32, i32) {
    %c0_i32 = arith.constant 0 : i32
    %c0_i32_0 = arith.constant 0 : i32
    %c0_i32_1 = arith.constant 0 : i32
    return %c0_i32, %c0_i32_0 : i32, i32
  }
  func.func @transform_4(%arg0: i32) -> (i32, i32, i32) {
    %c0_i32 = arith.constant 0 : i32
    %c0_i32_0 = arith.constant 0 : i32
    %c0_i32_1 = arith.constant 0 : i32
    return %arg0, %c0_i32, %c0_i32_0 : i32, i32, i32
  }
}

module attributes {stable_mosaic.version = 11 : i64} {
  func.func @kernel(%arg0: i32, %arg1: i32, %arg2: memref<1x5x32xf32, #tpu.memory_space<vmem>>, %arg3: memref<1x1x32xf32, #tpu.memory_space<vmem>>, %arg4: memref<1x1x32xf32, #tpu.memory_space<vmem>>, %arg5: memref<1x32x96xf32, #tpu.memory_space<vmem>>, %arg6: memref<1x1x96xf32, #tpu.memory_space<vmem>>, %arg7: memref<1x32x32xf32, #tpu.memory_space<vmem>>, %arg8: memref<1x1x32xf32, #tpu.memory_space<vmem>>, %arg9: memref<1x1x32xf32, #tpu.memory_space<vmem>>, %arg10: memref<1x1x32xf32, #tpu.memory_space<vmem>>, %arg11: memref<1x32x128xf32, #tpu.memory_space<vmem>>, %arg12: memref<1x1x128xf32, #tpu.memory_space<vmem>>, %arg13: memref<1x128x32xf32, #tpu.memory_space<vmem>>, %arg14: memref<1x1x32xf32, #tpu.memory_space<vmem>>, %arg15: memref<1x32xf32, #tpu.memory_space<vmem>>, %arg16: memref<1x32xf32, #tpu.memory_space<vmem>>, %arg17: memref<1x1x5x32xf32, #tpu.memory_space<vmem>>, %arg18: memref<5x32xf32, #tpu.memory_space<vmem>>) attributes {dimension_semantics = [#tpu.dimension_semantics<parallel>, #tpu.dimension_semantics<arbitrary>], iteration_bounds = array<i64: 2, 6>, scalar_prefetch = 0 : i64, scratch_operands = 1 : i64, tpu.core_type = #tpu.core_type<tc>, window_params = [{transform_indices = @transform_0, window_bounds = array<i64: 1, 5, 32>}, {transform_indices = @transform_1, window_bounds = array<i64: 1, 1, 32>}, {transform_indices = @transform_2, window_bounds = array<i64: 1, 1, 32>}, {transform_indices = @transform_3, window_bounds = array<i64: 1, 32, 96>}, {transform_indices = @transform_4, window_bounds = array<i64: 1, 1, 96>}, {transform_indices = @transform_5, window_bounds = array<i64: 1, 32, 32>}, {transform_indices = @transform_6, window_bounds = array<i64: 1, 1, 32>}, {transform_indices = @transform_7, window_bounds = array<i64: 1, 1, 32>}, {transform_indices = @transform_8, window_bounds = array<i64: 1, 1, 32>}, {transform_indices = @transform_9, window_bounds = array<i64: 1, 32, 128>}, {transform_indices = @transform_10, window_bounds = array<i64: 1, 1, 128>}, {transform_indices = @transform_11, window_bounds = array<i64: 1, 128, 32>}, {transform_indices = @transform_12, window_bounds = array<i64: 1, 1, 32>}, {pipeline_mode = #tpu.pipeline_mode<synchronous>, transform_indices = @transform_13, window_bounds = array<i64: 1, 32>}, {pipeline_mode = #tpu.pipeline_mode<synchronous>, transform_indices = @transform_14, window_bounds = array<i64: 1, 32>}, {transform_indices = @transform_15, window_bounds = array<i64: 1, 1, 5, 32>}]} {
    %c0_i32 = arith.constant 0 : i32
    %0 = arith.cmpi eq, %arg1, %c0_i32 : i32
    %1 = arith.extui %0 : i1 to i32
    %c0_i32_0 = arith.constant 0 : i32
    %2 = arith.cmpi ne, %1, %c0_i32_0 : i32
    scf.if %2 {
      %c0_84 = arith.constant 0 : index
      %c0_85 = arith.constant 0 : index
      %c0_86 = arith.constant 0 : index
      %193 = vector.load %arg2[%c0_84, %c0_85, %c0_86] : memref<1x5x32xf32, #tpu.memory_space<vmem>>, vector<1x5x32xf32>
      %194 = vector.shape_cast %193 : vector<1x5x32xf32> to vector<5x32xf32>
      %c0_87 = arith.constant 0 : index
      %c0_88 = arith.constant 0 : index
      %195 = vector.load %arg18[%c0_87, %c0_88] : memref<5x32xf32, #tpu.memory_space<vmem>>, vector<5x32xf32>
      tpu.vector_store %arg18[%c0_87, %c0_88], %194 {strides = array<i32>} : memref<5x32xf32, #tpu.memory_space<vmem>>, vector<5x32xf32>,
    } else {
    }
    %c0 = arith.constant 0 : index
    %c0_1 = arith.constant 0 : index
    %3 = vector.load %arg18[%c0, %c0_1] : memref<5x32xf32, #tpu.memory_space<vmem>>, vector<5x32xf32>
    %c0_2 = arith.constant 0 : index
    %c0_3 = arith.constant 0 : index
    %c0_4 = arith.constant 0 : index
    %4 = vector.load %arg3[%c0_2, %c0_3, %c0_4] : memref<1x1x32xf32, #tpu.memory_space<vmem>>, vector<1x1x32xf32>
    %5 = vector.shape_cast %4 : vector<1x1x32xf32> to vector<1x32xf32>
    %c0_5 = arith.constant 0 : index
    %c0_6 = arith.constant 0 : index
    %c0_7 = arith.constant 0 : index
    %6 = vector.load %arg4[%c0_5, %c0_6, %c0_7] : memref<1x1x32xf32, #tpu.memory_space<vmem>>, vector<1x1x32xf32>
    %7 = vector.shape_cast %6 : vector<1x1x32xf32> to vector<1x32xf32>
    %cst = arith.constant dense<0.000000e+00> : vector<5xf32>
    %8 = vector.multi_reduction <add>, %3, %cst [1] : vector<5x32xf32> to vector<5xf32>
    %9 = vector.shape_cast %8 : vector<5xf32> to vector<5x1xf32>
    %cst_8 = arith.constant 3.200000e+01 : f32
    %10 = vector.broadcast %cst_8 : f32 to vector<5x1xf32>
    %11 = arith.divf %9, %10 : vector<5x1xf32>
    %12 = vector.broadcast %11 : vector<5x1xf32> to vector<5x32xf32>
    %13 = arith.subf %3, %12 : vector<5x32xf32>
    %14 = arith.mulf %13, %13 : vector<5x32xf32>
    %cst_9 = arith.constant dense<0.000000e+00> : vector<5xf32>
    %15 = vector.multi_reduction <add>, %14, %cst_9 [1] : vector<5x32xf32> to vector<5xf32>
    %16 = vector.shape_cast %15 : vector<5xf32> to vector<5x1xf32>
    %cst_10 = arith.constant 3.200000e+01 : f32
    %17 = vector.broadcast %cst_10 : f32 to vector<5x1xf32>
    %18 = arith.divf %16, %17 : vector<5x1xf32>
    %19 = vector.broadcast %11 : vector<5x1xf32> to vector<5x32xf32>
    %20 = arith.subf %3, %19 : vector<5x32xf32>
    %cst_11 = arith.constant 9.99999974E-6 : f32
    %21 = vector.broadcast %cst_11 : f32 to vector<5x1xf32>
    %22 = arith.addf %18, %21 : vector<5x1xf32>
    %23 = math.rsqrt %22 : vector<5x1xf32>
    %24 = vector.broadcast %23 : vector<5x1xf32> to vector<5x32xf32>
    %25 = arith.mulf %20, %24 : vector<5x32xf32>
    %26 = vector.broadcast %5 : vector<1x32xf32> to vector<5x32xf32>
    %27 = arith.mulf %25, %26 : vector<5x32xf32>
    %28 = vector.broadcast %7 : vector<1x32xf32> to vector<5x32xf32>
    %29 = arith.addf %27, %28 : vector<5x32xf32>
    %c0_12 = arith.constant 0 : index
    %c0_13 = arith.constant 0 : index
    %c0_14 = arith.constant 0 : index
    %30 = vector.load %arg5[%c0_12, %c0_13, %c0_14] : memref<1x32x96xf32, #tpu.memory_space<vmem>>, vector<1x32x96xf32>
    %31 = vector.shape_cast %30 : vector<1x32x96xf32> to vector<32x96xf32>
    %cst_15 = arith.constant dense<0.000000e+00> : vector<5x96xf32>
    %32 = tpu.matmul %29, %31, %cst_15 {dimension_numbers = #tpu.dot_dimension_numbers<[1], [0], [0], [1], [0, 0, 1, 1], [], []>} : vector<5x32xf32>, vector<32x96xf32>, vector<5x96xf32> -> vector<5x96xf32>
    %c0_16 = arith.constant 0 : index
    %c0_17 = arith.constant 0 : index
    %c0_18 = arith.constant 0 : index
    %33 = vector.load %arg6[%c0_16, %c0_17, %c0_18] : memref<1x1x96xf32, #tpu.memory_space<vmem>>, vector<1x1x96xf32>
    %34 = vector.shape_cast %33 : vector<1x1x96xf32> to vector<1x96xf32>
    %35 = vector.broadcast %34 : vector<1x96xf32> to vector<5x96xf32>
    %36 = arith.addf %32, %35 : vector<5x96xf32>
    %37 = vector.extract_strided_slice %36 {offsets = [0, 0], sizes = [5, 32], strides = [1, 1]} : vector<5x96xf32> to vector<5x32xf32>
    %38 = vector.extract_strided_slice %36 {offsets = [0, 32], sizes = [5, 32], strides = [1, 1]} : vector<5x96xf32> to vector<5x32xf32>
    %39 = vector.extract_strided_slice %36 {offsets = [0, 64], sizes = [5, 32], strides = [1, 1]} : vector<5x96xf32> to vector<5x32xf32>
    %c0_19 = arith.constant 0 : index
    %c0_20 = arith.constant 0 : index
    %c0_21 = arith.constant 0 : index
    %40 = vector.load %arg7[%c0_19, %c0_20, %c0_21] : memref<1x32x32xf32, #tpu.memory_space<vmem>>, vector<1x32x32xf32>
    %41 = vector.shape_cast %40 : vector<1x32x32xf32> to vector<32x32xf32>
    %cst_22 = arith.constant 0.000000e+00 : f32
    %42 = vector.broadcast %cst_22 : f32 to vector<5x32xf32>
    %43 = vector.extract_strided_slice %37 {offsets = [0, 0], sizes = [5, 8], strides = [1, 1]} : vector<5x32xf32> to vector<5x8xf32>
    %44 = vector.extract_strided_slice %38 {offsets = [0, 0], sizes = [5, 8], strides = [1, 1]} : vector<5x32xf32> to vector<5x8xf32>
    %45 = tpu.transpose %44, [1, 0] : vector<5x8xf32> -> vector<8x5xf32>
    %cst_23 = arith.constant dense<0.000000e+00> : vector<5x5xf32>
    %46 = tpu.matmul %43, %45, %cst_23 {dimension_numbers = #tpu.dot_dimension_numbers<[1], [0], [0], [1], [0, 0, 1, 1], [], []>} : vector<5x8xf32>, vector<8x5xf32>, vector<5x5xf32> -> vector<5x5xf32>
    %cst_24 = arith.constant 0.353553385 : f32
    %47 = vector.broadcast %cst_24 : f32 to vector<5x5xf32>
    %48 = arith.mulf %46, %47 : vector<5x5xf32>
    %cst_25 = arith.constant dense<0xFF800000> : vector<5xf32>
    %49 = vector.multi_reduction <maximumf>, %48, %cst_25 [1] : vector<5x5xf32> to vector<5xf32>
    %50 = vector.shape_cast %49 : vector<5xf32> to vector<5x1xf32>
    %51 = vector.broadcast %50 : vector<5x1xf32> to vector<5x5xf32>
    %52 = arith.subf %48, %51 : vector<5x5xf32>
    %53 = math.exp %52 : vector<5x5xf32>
    %cst_26 = arith.constant dense<0.000000e+00> : vector<5xf32>
    %54 = vector.multi_reduction <add>, %53, %cst_26 [1] : vector<5x5xf32> to vector<5xf32>
    %55 = vector.shape_cast %54 : vector<5xf32> to vector<5x1xf32>
    %56 = tpu.reciprocal %55 {approx = true} : vector<5x1xf32> -> vector<5x1xf32>
    %57 = vector.broadcast %56 : vector<5x1xf32> to vector<5x5xf32>
    %58 = arith.mulf %53, %57 : vector<5x5xf32>
    %59 = vector.extract_strided_slice %39 {offsets = [0, 0], sizes = [5, 8], strides = [1, 1]} : vector<5x32xf32> to vector<5x8xf32>
    %cst_27 = arith.constant dense<0.000000e+00> : vector<5x8xf32>
    %60 = tpu.matmul %58, %59, %cst_27 {dimension_numbers = #tpu.dot_dimension_numbers<[1], [0], [0], [1], [0, 0, 1, 1], [], []>} : vector<5x5xf32>, vector<5x8xf32>, vector<5x8xf32> -> vector<5x8xf32>
    %61 = vector.extract_strided_slice %41 {offsets = [0, 0], sizes = [8, 32], strides = [1, 1]} : vector<32x32xf32> to vector<8x32xf32>
    %cst_28 = arith.constant dense<0.000000e+00> : vector<5x32xf32>
    %62 = tpu.matmul %60, %61, %cst_28 {dimension_numbers = #tpu.dot_dimension_numbers<[1], [0], [0], [1], [0, 0, 1, 1], [], []>} : vector<5x8xf32>, vector<8x32xf32>, vector<5x32xf32> -> vector<5x32xf32>
    %63 = arith.addf %42, %62 : vector<5x32xf32>
    %64 = vector.extract_strided_slice %37 {offsets = [0, 8], sizes = [5, 8], strides = [1, 1]} : vector<5x32xf32> to vector<5x8xf32>
    %65 = vector.extract_strided_slice %38 {offsets = [0, 8], sizes = [5, 8], strides = [1, 1]} : vector<5x32xf32> to vector<5x8xf32>
    %66 = tpu.transpose %65, [1, 0] : vector<5x8xf32> -> vector<8x5xf32>
    %cst_29 = arith.constant dense<0.000000e+00> : vector<5x5xf32>
    %67 = tpu.matmul %64, %66, %cst_29 {dimension_numbers = #tpu.dot_dimension_numbers<[1], [0], [0], [1], [0, 0, 1, 1], [], []>} : vector<5x8xf32>, vector<8x5xf32>, vector<5x5xf32> -> vector<5x5xf32>
    %cst_30 = arith.constant 0.353553385 : f32
    %68 = vector.broadcast %cst_30 : f32 to vector<5x5xf32>
    %69 = arith.mulf %67, %68 : vector<5x5xf32>
    %cst_31 = arith.constant dense<0xFF800000> : vector<5xf32>
    %70 = vector.multi_reduction <maximumf>, %69, %cst_31 [1] : vector<5x5xf32> to vector<5xf32>
    %71 = vector.shape_cast %70 : vector<5xf32> to vector<5x1xf32>
    %72 = vector.broadcast %71 : vector<5x1xf32> to vector<5x5xf32>
    %73 = arith.subf %69, %72 : vector<5x5xf32>
    %74 = math.exp %73 : vector<5x5xf32>
    %cst_32 = arith.constant dense<0.000000e+00> : vector<5xf32>
    %75 = vector.multi_reduction <add>, %74, %cst_32 [1] : vector<5x5xf32> to vector<5xf32>
    %76 = vector.shape_cast %75 : vector<5xf32> to vector<5x1xf32>
    %77 = tpu.reciprocal %76 {approx = true} : vector<5x1xf32> -> vector<5x1xf32>
    %78 = vector.broadcast %77 : vector<5x1xf32> to vector<5x5xf32>
    %79 = arith.mulf %74, %78 : vector<5x5xf32>
    %80 = vector.extract_strided_slice %39 {offsets = [0, 8], sizes = [5, 8], strides = [1, 1]} : vector<5x32xf32> to vector<5x8xf32>
    %cst_33 = arith.constant dense<0.000000e+00> : vector<5x8xf32>
    %81 = tpu.matmul %79, %80, %cst_33 {dimension_numbers = #tpu.dot_dimension_numbers<[1], [0], [0], [1], [0, 0, 1, 1], [], []>} : vector<5x5xf32>, vector<5x8xf32>, vector<5x8xf32> -> vector<5x8xf32>
    %82 = vector.extract_strided_slice %41 {offsets = [8, 0], sizes = [8, 32], strides = [1, 1]} : vector<32x32xf32> to vector<8x32xf32>
    %cst_34 = arith.constant dense<0.000000e+00> : vector<5x32xf32>
    %83 = tpu.matmul %81, %82, %cst_34 {dimension_numbers = #tpu.dot_dimension_numbers<[1], [0], [0], [1], [0, 0, 1, 1], [], []>} : vector<5x8xf32>, vector<8x32xf32>, vector<5x32xf32> -> vector<5x32xf32>
    %84 = arith.addf %63, %83 : vector<5x32xf32>
    %85 = vector.extract_strided_slice %37 {offsets = [0, 16], sizes = [5, 8], strides = [1, 1]} : vector<5x32xf32> to vector<5x8xf32>
    %86 = vector.extract_strided_slice %38 {offsets = [0, 16], sizes = [5, 8], strides = [1, 1]} : vector<5x32xf32> to vector<5x8xf32>
    %87 = tpu.transpose %86, [1, 0] : vector<5x8xf32> -> vector<8x5xf32>
    %cst_35 = arith.constant dense<0.000000e+00> : vector<5x5xf32>
    %88 = tpu.matmul %85, %87, %cst_35 {dimension_numbers = #tpu.dot_dimension_numbers<[1], [0], [0], [1], [0, 0, 1, 1], [], []>} : vector<5x8xf32>, vector<8x5xf32>, vector<5x5xf32> -> vector<5x5xf32>
    %cst_36 = arith.constant 0.353553385 : f32
    %89 = vector.broadcast %cst_36 : f32 to vector<5x5xf32>
    %90 = arith.mulf %88, %89 : vector<5x5xf32>
    %cst_37 = arith.constant dense<0xFF800000> : vector<5xf32>
    %91 = vector.multi_reduction <maximumf>, %90, %cst_37 [1] : vector<5x5xf32> to vector<5xf32>
    %92 = vector.shape_cast %91 : vector<5xf32> to vector<5x1xf32>
    %93 = vector.broadcast %92 : vector<5x1xf32> to vector<5x5xf32>
    %94 = arith.subf %90, %93 : vector<5x5xf32>
    %95 = math.exp %94 : vector<5x5xf32>
    %cst_38 = arith.constant dense<0.000000e+00> : vector<5xf32>
    %96 = vector.multi_reduction <add>, %95, %cst_38 [1] : vector<5x5xf32> to vector<5xf32>
    %97 = vector.shape_cast %96 : vector<5xf32> to vector<5x1xf32>
    %98 = tpu.reciprocal %97 {approx = true} : vector<5x1xf32> -> vector<5x1xf32>
    %99 = vector.broadcast %98 : vector<5x1xf32> to vector<5x5xf32>
    %100 = arith.mulf %95, %99 : vector<5x5xf32>
    %101 = vector.extract_strided_slice %39 {offsets = [0, 16], sizes = [5, 8], strides = [1, 1]} : vector<5x32xf32> to vector<5x8xf32>
    %cst_39 = arith.constant dense<0.000000e+00> : vector<5x8xf32>
    %102 = tpu.matmul %100, %101, %cst_39 {dimension_numbers = #tpu.dot_dimension_numbers<[1], [0], [0], [1], [0, 0, 1, 1], [], []>} : vector<5x5xf32>, vector<5x8xf32>, vector<5x8xf32> -> vector<5x8xf32>
    %103 = vector.extract_strided_slice %41 {offsets = [16, 0], sizes = [8, 32], strides = [1, 1]} : vector<32x32xf32> to vector<8x32xf32>
    %cst_40 = arith.constant dense<0.000000e+00> : vector<5x32xf32>
    %104 = tpu.matmul %102, %103, %cst_40 {dimension_numbers = #tpu.dot_dimension_numbers<[1], [0], [0], [1], [0, 0, 1, 1], [], []>} : vector<5x8xf32>, vector<8x32xf32>, vector<5x32xf32> -> vector<5x32xf32>
    %105 = arith.addf %84, %104 : vector<5x32xf32>
    %106 = vector.extract_strided_slice %37 {offsets = [0, 24], sizes = [5, 8], strides = [1, 1]} : vector<5x32xf32> to vector<5x8xf32>
    %107 = vector.extract_strided_slice %38 {offsets = [0, 24], sizes = [5, 8], strides = [1, 1]} : vector<5x32xf32> to vector<5x8xf32>
    %108 = tpu.transpose %107, [1, 0] : vector<5x8xf32> -> vector<8x5xf32>
    %cst_41 = arith.constant dense<0.000000e+00> : vector<5x5xf32>
    %109 = tpu.matmul %106, %108, %cst_41 {dimension_numbers = #tpu.dot_dimension_numbers<[1], [0], [0], [1], [0, 0, 1, 1], [], []>} : vector<5x8xf32>, vector<8x5xf32>, vector<5x5xf32> -> vector<5x5xf32>
    %cst_42 = arith.constant 0.353553385 : f32
    %110 = vector.broadcast %cst_42 : f32 to vector<5x5xf32>
    %111 = arith.mulf %109, %110 : vector<5x5xf32>
    %cst_43 = arith.constant dense<0xFF800000> : vector<5xf32>
    %112 = vector.multi_reduction <maximumf>, %111, %cst_43 [1] : vector<5x5xf32> to vector<5xf32>
    %113 = vector.shape_cast %112 : vector<5xf32> to vector<5x1xf32>
    %114 = vector.broadcast %113 : vector<5x1xf32> to vector<5x5xf32>
    %115 = arith.subf %111, %114 : vector<5x5xf32>
    %116 = math.exp %115 : vector<5x5xf32>
    %cst_44 = arith.constant dense<0.000000e+00> : vector<5xf32>
    %117 = vector.multi_reduction <add>, %116, %cst_44 [1] : vector<5x5xf32> to vector<5xf32>
    %118 = vector.shape_cast %117 : vector<5xf32> to vector<5x1xf32>
    %119 = tpu.reciprocal %118 {approx = true} : vector<5x1xf32> -> vector<5x1xf32>
    %120 = vector.broadcast %119 : vector<5x1xf32> to vector<5x5xf32>
    %121 = arith.mulf %116, %120 : vector<5x5xf32>
    %122 = vector.extract_strided_slice %39 {offsets = [0, 24], sizes = [5, 8], strides = [1, 1]} : vector<5x32xf32> to vector<5x8xf32>
    %cst_45 = arith.constant dense<0.000000e+00> : vector<5x8xf32>
    %123 = tpu.matmul %121, %122, %cst_45 {dimension_numbers = #tpu.dot_dimension_numbers<[1], [0], [0], [1], [0, 0, 1, 1], [], []>} : vector<5x5xf32>, vector<5x8xf32>, vector<5x8xf32> -> vector<5x8xf32>
    %124 = vector.extract_strided_slice %41 {offsets = [24, 0], sizes = [8, 32], strides = [1, 1]} : vector<32x32xf32> to vector<8x32xf32>
    %cst_46 = arith.constant dense<0.000000e+00> : vector<5x32xf32>
    %125 = tpu.matmul %123, %124, %cst_46 {dimension_numbers = #tpu.dot_dimension_numbers<[1], [0], [0], [1], [0, 0, 1, 1], [], []>} : vector<5x8xf32>, vector<8x32xf32>, vector<5x32xf32> -> vector<5x32xf32>
    %126 = arith.addf %105, %125 : vector<5x32xf32>
    %127 = arith.addf %3, %126 : vector<5x32xf32>
    %c0_47 = arith.constant 0 : index
    %c0_48 = arith.constant 0 : index
    %c0_49 = arith.constant 0 : index
    %128 = vector.load %arg8[%c0_47, %c0_48, %c0_49] : memref<1x1x32xf32, #tpu.memory_space<vmem>>, vector<1x1x32xf32>
    %129 = vector.shape_cast %128 : vector<1x1x32xf32> to vector<1x32xf32>
    %130 = vector.broadcast %129 : vector<1x32xf32> to vector<5x32xf32>
    %131 = arith.addf %127, %130 : vector<5x32xf32>
    %c0_50 = arith.constant 0 : index
    %c0_51 = arith.constant 0 : index
    %c0_52 = arith.constant 0 : index
    %132 = vector.load %arg9[%c0_50, %c0_51, %c0_52] : memref<1x1x32xf32, #tpu.memory_space<vmem>>, vector<1x1x32xf32>
    %133 = vector.shape_cast %132 : vector<1x1x32xf32> to vector<1x32xf32>
    %c0_53 = arith.constant 0 : index
    %c0_54 = arith.constant 0 : index
    %c0_55 = arith.constant 0 : index
    %134 = vector.load %arg10[%c0_53, %c0_54, %c0_55] : memref<1x1x32xf32, #tpu.memory_space<vmem>>, vector<1x1x32xf32>
    %135 = vector.shape_cast %134 : vector<1x1x32xf32> to vector<1x32xf32>
    %cst_56 = arith.constant dense<0.000000e+00> : vector<5xf32>
    %136 = vector.multi_reduction <add>, %131, %cst_56 [1] : vector<5x32xf32> to vector<5xf32>
    %137 = vector.shape_cast %136 : vector<5xf32> to vector<5x1xf32>
    %cst_57 = arith.constant 3.200000e+01 : f32
    %138 = vector.broadcast %cst_57 : f32 to vector<5x1xf32>
    %139 = arith.divf %137, %138 : vector<5x1xf32>
    %140 = vector.broadcast %139 : vector<5x1xf32> to vector<5x32xf32>
    %141 = arith.subf %131, %140 : vector<5x32xf32>
    %142 = arith.mulf %141, %141 : vector<5x32xf32>
    %cst_58 = arith.constant dense<0.000000e+00> : vector<5xf32>
    %143 = vector.multi_reduction <add>, %142, %cst_58 [1] : vector<5x32xf32> to vector<5xf32>
    %144 = vector.shape_cast %143 : vector<5xf32> to vector<5x1xf32>
    %cst_59 = arith.constant 3.200000e+01 : f32
    %145 = vector.broadcast %cst_59 : f32 to vector<5x1xf32>
    %146 = arith.divf %144, %145 : vector<5x1xf32>
    %147 = vector.broadcast %139 : vector<5x1xf32> to vector<5x32xf32>
    %148 = arith.subf %131, %147 : vector<5x32xf32>
    %cst_60 = arith.constant 9.99999974E-6 : f32
    %149 = vector.broadcast %cst_60 : f32 to vector<5x1xf32>
    %150 = arith.addf %146, %149 : vector<5x1xf32>
    %151 = math.rsqrt %150 : vector<5x1xf32>
    %152 = vector.broadcast %151 : vector<5x1xf32> to vector<5x32xf32>
    %153 = arith.mulf %148, %152 : vector<5x32xf32>
    %154 = vector.broadcast %133 : vector<1x32xf32> to vector<5x32xf32>
    %155 = arith.mulf %153, %154 : vector<5x32xf32>
    %156 = vector.broadcast %135 : vector<1x32xf32> to vector<5x32xf32>
    %157 = arith.addf %155, %156 : vector<5x32xf32>
    %c0_61 = arith.constant 0 : index
    %c0_62 = arith.constant 0 : index
    %c0_63 = arith.constant 0 : index
    %158 = vector.load %arg11[%c0_61, %c0_62, %c0_63] : memref<1x32x128xf32, #tpu.memory_space<vmem>>, vector<1x32x128xf32>
    %159 = vector.shape_cast %158 : vector<1x32x128xf32> to vector<32x128xf32>
    %cst_64 = arith.constant dense<0.000000e+00> : vector<5x128xf32>
    %160 = tpu.matmul %157, %159, %cst_64 {dimension_numbers = #tpu.dot_dimension_numbers<[1], [0], [0], [1], [0, 0, 1, 1], [], []>} : vector<5x32xf32>, vector<32x128xf32>, vector<5x128xf32> -> vector<5x128xf32>
    %c0_65 = arith.constant 0 : index
    %c0_66 = arith.constant 0 : index
    %c0_67 = arith.constant 0 : index
    %161 = vector.load %arg12[%c0_65, %c0_66, %c0_67] : memref<1x1x128xf32, #tpu.memory_space<vmem>>, vector<1x1x128xf32>
    %162 = vector.shape_cast %161 : vector<1x1x128xf32> to vector<1x128xf32>
    %163 = vector.broadcast %162 : vector<1x128xf32> to vector<5x128xf32>
    %164 = arith.addf %160, %163 : vector<5x128xf32>
    %cst_68 = arith.constant 5.000000e-01 : f32
    %165 = vector.broadcast %cst_68 : f32 to vector<5x128xf32>
    %166 = arith.mulf %165, %164 : vector<5x128xf32>
    %cst_69 = arith.constant 4.471500e-02 : f32
    %167 = vector.broadcast %cst_69 : f32 to vector<5x128xf32>
    %168 = arith.mulf %167, %164 : vector<5x128xf32>
    %169 = arith.mulf %168, %164 : vector<5x128xf32>
    %170 = arith.mulf %169, %164 : vector<5x128xf32>
    %171 = arith.addf %164, %170 : vector<5x128xf32>
    %cst_70 = arith.constant 0.797884583 : f32
    %172 = vector.broadcast %cst_70 : f32 to vector<5x128xf32>
    %173 = arith.mulf %172, %171 : vector<5x128xf32>
    %174 = math.tanh %173 : vector<5x128xf32>
    %cst_71 = arith.constant 1.000000e+00 : f32
    %175 = vector.broadcast %cst_71 : f32 to vector<5x128xf32>
    %176 = arith.addf %175, %174 : vector<5x128xf32>
    %177 = arith.mulf %166, %176 : vector<5x128xf32>
    %c0_72 = arith.constant 0 : index
    %c0_73 = arith.constant 0 : index
    %c0_74 = arith.constant 0 : index
    %178 = vector.load %arg13[%c0_72, %c0_73, %c0_74] : memref<1x128x32xf32, #tpu.memory_space<vmem>>, vector<1x128x32xf32>
    %179 = vector.shape_cast %178 : vector<1x128x32xf32> to vector<128x32xf32>
    %cst_75 = arith.constant dense<0.000000e+00> : vector<5x32xf32>
    %180 = tpu.matmul %177, %179, %cst_75 {dimension_numbers = #tpu.dot_dimension_numbers<[1], [0], [0], [1], [0, 0, 1, 1], [], []>} : vector<5x128xf32>, vector<128x32xf32>, vector<5x32xf32> -> vector<5x32xf32>
    %c0_76 = arith.constant 0 : index
    %c0_77 = arith.constant 0 : index
    %c0_78 = arith.constant 0 : index
    %181 = vector.load %arg14[%c0_76, %c0_77, %c0_78] : memref<1x1x32xf32, #tpu.memory_space<vmem>>, vector<1x1x32xf32>
    %182 = vector.shape_cast %181 : vector<1x1x32xf32> to vector<1x32xf32>
    %183 = vector.broadcast %182 : vector<1x32xf32> to vector<5x32xf32>
    %184 = arith.addf %180, %183 : vector<5x32xf32>
    %185 = arith.addf %131, %184 : vector<5x32xf32>
    %c0_79 = arith.constant 0 : index
    %c0_80 = arith.constant 0 : index
    %186 = vector.load %arg18[%c0_79, %c0_80] : memref<5x32xf32, #tpu.memory_space<vmem>>, vector<5x32xf32>
    tpu.vector_store %arg18[%c0_79, %c0_80], %185 {strides = array<i32>} : memref<5x32xf32, #tpu.memory_space<vmem>>, vector<5x32xf32>,
    %c5_i32 = arith.constant 5 : i32
    %187 = arith.cmpi slt, %arg1, %c5_i32 : i32
    %188 = arith.extui %187 : i1 to i32
    %c0_i32_81 = arith.constant 0 : i32
    %189 = arith.cmpi ne, %188, %c0_i32_81 : i32
    scf.if %189 {
      %c0_84 = arith.constant 0 : index
      %c0_85 = arith.constant 0 : index
      %c0_86 = arith.constant 0 : index
      %c0_87 = arith.constant 0 : index
      %193 = vector.load %arg17[%c0_84, %c0_85, %c0_86, %c0_87] : memref<1x1x5x32xf32, #tpu.memory_space<vmem>>, vector<1x1x5x32xf32>
      %194 = vector.shape_cast %193 : vector<1x1x5x32xf32> to vector<5x32xf32>
      %195 = vector.shape_cast %185 : vector<5x32xf32> to vector<1x1x5x32xf32>
      tpu.vector_store %arg17[%c0_84, %c0_85, %c0_86, %c0_87], %195 {strides = array<i32>} : memref<1x1x5x32xf32, #tpu.memory_space<vmem>>, vector<1x1x5x32xf32>,
    } else {
    }
    %c5_i32_82 = arith.constant 5 : i32
    %190 = arith.cmpi eq, %arg1, %c5_i32_82 : i32
    %191 = arith.extui %190 : i1 to i32
    %c0_i32_83 = arith.constant 0 : i32
    %192 = arith.cmpi ne, %191, %c0_i32_83 : i32
    scf.if %192 {
      %c0_84 = arith.constant 0 : index
      %c0_85 = arith.constant 0 : index
      %193 = vector.load %arg15[%c0_84, %c0_85] : memref<1x32xf32, #tpu.memory_space<vmem>>, vector<1x32xf32>
      %c0_86 = arith.constant 0 : index
      %c0_87 = arith.constant 0 : index
      %194 = vector.load %arg16[%c0_86, %c0_87] : memref<1x32xf32, #tpu.memory_space<vmem>>, vector<1x32xf32>
      %cst_88 = arith.constant dense<0.000000e+00> : vector<5xf32>
      %195 = vector.multi_reduction <add>, %185, %cst_88 [1] : vector<5x32xf32> to vector<5xf32>
      %196 = vector.shape_cast %195 : vector<5xf32> to vector<5x1xf32>
      %cst_89 = arith.constant 3.200000e+01 : f32
      %197 = vector.broadcast %cst_89 : f32 to vector<5x1xf32>
      %198 = arith.divf %196, %197 : vector<5x1xf32>
      %199 = vector.broadcast %198 : vector<5x1xf32> to vector<5x32xf32>
      %200 = arith.subf %185, %199 : vector<5x32xf32>
      %201 = arith.mulf %200, %200 : vector<5x32xf32>
      %cst_90 = arith.constant dense<0.000000e+00> : vector<5xf32>
      %202 = vector.multi_reduction <add>, %201, %cst_90 [1] : vector<5x32xf32> to vector<5xf32>
      %203 = vector.shape_cast %202 : vector<5xf32> to vector<5x1xf32>
      %cst_91 = arith.constant 3.200000e+01 : f32
      %204 = vector.broadcast %cst_91 : f32 to vector<5x1xf32>
      %205 = arith.divf %203, %204 : vector<5x1xf32>
      %206 = vector.broadcast %198 : vector<5x1xf32> to vector<5x32xf32>
      %207 = arith.subf %185, %206 : vector<5x32xf32>
      %cst_92 = arith.constant 9.99999974E-6 : f32
      %208 = vector.broadcast %cst_92 : f32 to vector<5x1xf32>
      %209 = arith.addf %205, %208 : vector<5x1xf32>
      %210 = math.rsqrt %209 : vector<5x1xf32>
      %211 = vector.broadcast %210 : vector<5x1xf32> to vector<5x32xf32>
      %212 = arith.mulf %207, %211 : vector<5x32xf32>
      %213 = vector.broadcast %193 : vector<1x32xf32> to vector<5x32xf32>
      %214 = arith.mulf %212, %213 : vector<5x32xf32>
      %215 = vector.broadcast %194 : vector<1x32xf32> to vector<5x32xf32>
      %216 = arith.addf %214, %215 : vector<5x32xf32>
      %c0_93 = arith.constant 0 : index
      %c0_94 = arith.constant 0 : index
      %c0_95 = arith.constant 0 : index
      %c0_96 = arith.constant 0 : index
      %217 = vector.load %arg17[%c0_93, %c0_94, %c0_95, %c0_96] : memref<1x1x5x32xf32, #tpu.memory_space<vmem>>, vector<1x1x5x32xf32>
      %218 = vector.shape_cast %217 : vector<1x1x5x32xf32> to vector<5x32xf32>
      %219 = vector.shape_cast %216 : vector<5x32xf32> to vector<1x1x5x32xf32>
      tpu.vector_store %arg17[%c0_93, %c0_94, %c0_95, %c0_96], %219 {strides = array<i32>} : memref<1x1x5x32xf32, #tpu.memory_space<vmem>>, vector<1x1x5x32xf32>,
    } else {
    }
    return
  }
  func.func @transform_0(%arg0: i32, %arg1: i32) -> (i32, i32, i32) {
    %c0_i32 = arith.constant 0 : i32
    %c0_i32_0 = arith.constant 0 : i32
    %c0_i32_1 = arith.constant 0 : i32
    return %arg0, %c0_i32, %c0_i32_0 : i32, i32, i32
  }
  func.func @transform_1(%arg0: i32, %arg1: i32) -> (i32, i32, i32) {
    %c0_i32 = arith.constant 0 : i32
    %c0_i32_0 = arith.constant 0 : i32
    %c0_i32_1 = arith.constant 0 : i32
    return %arg1, %c0_i32, %c0_i32_0 : i32, i32, i32
  }
  func.func @transform_2(%arg0: i32, %arg1: i32) -> (i32, i32, i32) {
    %c0_i32 = arith.constant 0 : i32
    %c0_i32_0 = arith.constant 0 : i32
    %c0_i32_1 = arith.constant 0 : i32
    return %arg1, %c0_i32, %c0_i32_0 : i32, i32, i32
  }
  func.func @transform_3(%arg0: i32, %arg1: i32) -> (i32, i32, i32) {
    %c0_i32 = arith.constant 0 : i32
    %c0_i32_0 = arith.constant 0 : i32
    %c0_i32_1 = arith.constant 0 : i32
    return %arg1, %c0_i32, %c0_i32_0 : i32, i32, i32
  }
  func.func @transform_4(%arg0: i32, %arg1: i32) -> (i32, i32, i32) {
    %c0_i32 = arith.constant 0 : i32
    %c0_i32_0 = arith.constant 0 : i32
    %c0_i32_1 = arith.constant 0 : i32
    return %arg1, %c0_i32, %c0_i32_0 : i32, i32, i32
  }
  func.func @transform_5(%arg0: i32, %arg1: i32) -> (i32, i32, i32) {
    %c0_i32 = arith.constant 0 : i32
    %c0_i32_0 = arith.constant 0 : i32
    %c0_i32_1 = arith.constant 0 : i32
    return %arg1, %c0_i32, %c0_i32_0 : i32, i32, i32
  }
  func.func @transform_6(%arg0: i32, %arg1: i32) -> (i32, i32, i32) {
    %c0_i32 = arith.constant 0 : i32
    %c0_i32_0 = arith.constant 0 : i32
    %c0_i32_1 = arith.constant 0 : i32
    return %arg1, %c0_i32, %c0_i32_0 : i32, i32, i32
  }
  func.func @transform_7(%arg0: i32, %arg1: i32) -> (i32, i32, i32) {
    %c0_i32 = arith.constant 0 : i32
    %c0_i32_0 = arith.constant 0 : i32
    %c0_i32_1 = arith.constant 0 : i32
    return %arg1, %c0_i32, %c0_i32_0 : i32, i32, i32
  }
  func.func @transform_8(%arg0: i32, %arg1: i32) -> (i32, i32, i32) {
    %c0_i32 = arith.constant 0 : i32
    %c0_i32_0 = arith.constant 0 : i32
    %c0_i32_1 = arith.constant 0 : i32
    return %arg1, %c0_i32, %c0_i32_0 : i32, i32, i32
  }
  func.func @transform_9(%arg0: i32, %arg1: i32) -> (i32, i32, i32) {
    %c0_i32 = arith.constant 0 : i32
    %c0_i32_0 = arith.constant 0 : i32
    %c0_i32_1 = arith.constant 0 : i32
    return %arg1, %c0_i32, %c0_i32_0 : i32, i32, i32
  }
  func.func @transform_10(%arg0: i32, %arg1: i32) -> (i32, i32, i32) {
    %c0_i32 = arith.constant 0 : i32
    %c0_i32_0 = arith.constant 0 : i32
    %c0_i32_1 = arith.constant 0 : i32
    return %arg1, %c0_i32, %c0_i32_0 : i32, i32, i32
  }
  func.func @transform_11(%arg0: i32, %arg1: i32) -> (i32, i32, i32) {
    %c0_i32 = arith.constant 0 : i32
    %c0_i32_0 = arith.constant 0 : i32
    %c0_i32_1 = arith.constant 0 : i32
    return %arg1, %c0_i32, %c0_i32_0 : i32, i32, i32
  }
  func.func @transform_12(%arg0: i32, %arg1: i32) -> (i32, i32, i32) {
    %c0_i32 = arith.constant 0 : i32
    %c0_i32_0 = arith.constant 0 : i32
    %c0_i32_1 = arith.constant 0 : i32
    return %arg1, %c0_i32, %c0_i32_0 : i32, i32, i32
  }
  func.func @transform_13(%arg0: i32, %arg1: i32) -> (i32, i32) {
    %c0_i32 = arith.constant 0 : i32
    %c0_i32_0 = arith.constant 0 : i32
    %c0_i32_1 = arith.constant 0 : i32
    return %c0_i32, %c0_i32_0 : i32, i32
  }
  func.func @transform_14(%arg0: i32, %arg1: i32) -> (i32, i32) {
    %c0_i32 = arith.constant 0 : i32
    %c0_i32_0 = arith.constant 0 : i32
    %c0_i32_1 = arith.constant 0 : i32
    return %c0_i32, %c0_i32_0 : i32, i32
  }
  func.func @transform_15(%arg0: i32, %arg1: i32) -> (i32, i32, i32, i32) {
    %c0_i32 = arith.constant 0 : i32
    %c0_i32_0 = arith.constant 0 : i32
    %c0_i32_1 = arith.constant 0 : i32
    return %arg0, %arg1, %c0_i32, %c0_i32_0 : i32, i32, i32, i32
  }
}

module attributes {stable_mosaic.version = 11 : i64} {
  func.func @kernel(%arg0: i32, %arg1: memref<1x6x5x32xf32, #tpu.memory_space<vmem>>, %arg2: memref<6x1x32xf32, #tpu.memory_space<vmem>>, %arg3: memref<6x1x32xf32, #tpu.memory_space<vmem>>, %arg4: memref<2x3x32x32xf32, #tpu.memory_space<vmem>>, %arg5: memref<2x1x32xf32, #tpu.memory_space<vmem>>, %arg6: memref<2x32x64xf32, #tpu.memory_space<vmem>>, %arg7: memref<2x1x64xf32, #tpu.memory_space<vmem>>, %arg8: memref<2x64x32xf32, #tpu.memory_space<vmem>>, %arg9: memref<2x1x32xf32, #tpu.memory_space<vmem>>, %arg10: memref<1x32xf32, #tpu.memory_space<vmem>>, %arg11: memref<1x32xf32, #tpu.memory_space<vmem>>, %arg12: memref<32x16xf32, #tpu.memory_space<vmem>>, %arg13: memref<1x16xf32, #tpu.memory_space<vmem>>, %arg14: memref<1x5x16xf32, #tpu.memory_space<vmem>>) attributes {dimension_semantics = [#tpu.dimension_semantics<parallel>], iteration_bounds = array<i64: 2>, scalar_prefetch = 0 : i64, scratch_operands = 0 : i64, tpu.core_type = #tpu.core_type<tc>, window_params = [{transform_indices = @transform_0, window_bounds = array<i64: 1, 6, 5, 32>}, {pipeline_mode = #tpu.pipeline_mode<synchronous>, transform_indices = @transform_1, window_bounds = array<i64: 6, 1, 32>}, {pipeline_mode = #tpu.pipeline_mode<synchronous>, transform_indices = @transform_2, window_bounds = array<i64: 6, 1, 32>}, {pipeline_mode = #tpu.pipeline_mode<synchronous>, transform_indices = @transform_3, window_bounds = array<i64: 2, 3, 32, 32>}, {pipeline_mode = #tpu.pipeline_mode<synchronous>, transform_indices = @transform_4, window_bounds = array<i64: 2, 1, 32>}, {pipeline_mode = #tpu.pipeline_mode<synchronous>, transform_indices = @transform_5, window_bounds = array<i64: 2, 32, 64>}, {pipeline_mode = #tpu.pipeline_mode<synchronous>, transform_indices = @transform_6, window_bounds = array<i64: 2, 1, 64>}, {pipeline_mode = #tpu.pipeline_mode<synchronous>, transform_indices = @transform_7, window_bounds = array<i64: 2, 64, 32>}, {pipeline_mode = #tpu.pipeline_mode<synchronous>, transform_indices = @transform_8, window_bounds = array<i64: 2, 1, 32>}, {pipeline_mode = #tpu.pipeline_mode<synchronous>, transform_indices = @transform_9, window_bounds = array<i64: 1, 32>}, {pipeline_mode = #tpu.pipeline_mode<synchronous>, transform_indices = @transform_10, window_bounds = array<i64: 1, 32>}, {pipeline_mode = #tpu.pipeline_mode<synchronous>, transform_indices = @transform_11, window_bounds = array<i64: 32, 16>}, {pipeline_mode = #tpu.pipeline_mode<synchronous>, transform_indices = @transform_12, window_bounds = array<i64: 1, 16>}, {transform_indices = @transform_13, window_bounds = array<i64: 1, 5, 16>}]} {
    %c0 = arith.constant 0 : index
    %c0_0 = arith.constant 0 : index
    %c0_1 = arith.constant 0 : index
    %c0_2 = arith.constant 0 : index
    %0 = vector.load %arg1[%c0, %c0_0, %c0_1, %c0_2] : memref<1x6x5x32xf32, #tpu.memory_space<vmem>>, vector<1x6x5x32xf32>
    %1 = vector.shape_cast %0 : vector<1x6x5x32xf32> to vector<6x5x32xf32>
    %cst = arith.constant dense<0.000000e+00> : vector<6x5xf32>
    %2 = vector.multi_reduction <add>, %1, %cst [2] : vector<6x5x32xf32> to vector<6x5xf32>
    %3 = vector.shape_cast %2 : vector<6x5xf32> to vector<6x5x1xf32>
    %cst_3 = arith.constant dense<0.000000e+00> : vector<5x1xf32>
    %4 = vector.multi_reduction <add>, %3, %cst_3 [0] : vector<6x5x1xf32> to vector<5x1xf32>
    %5 = vector.shape_cast %4 : vector<5x1xf32> to vector<1x5x1xf32>
    %cst_4 = arith.constant 0.00520833349 : f32
    %6 = vector.broadcast %cst_4 : f32 to vector<1x5x1xf32>
    %7 = arith.mulf %5, %6 : vector<1x5x1xf32>
    %8 = vector.broadcast %7 : vector<1x5x1xf32> to vector<6x5x32xf32>
    %9 = arith.subf %1, %8 : vector<6x5x32xf32>
    %10 = arith.mulf %9, %9 : vector<6x5x32xf32>
    %cst_5 = arith.constant dense<0.000000e+00> : vector<6x5xf32>
    %11 = vector.multi_reduction <add>, %10, %cst_5 [2] : vector<6x5x32xf32> to vector<6x5xf32>
    %12 = vector.shape_cast %11 : vector<6x5xf32> to vector<6x5x1xf32>
    %cst_6 = arith.constant dense<0.000000e+00> : vector<5x1xf32>
    %13 = vector.multi_reduction <add>, %12, %cst_6 [0] : vector<6x5x1xf32> to vector<5x1xf32>
    %14 = vector.shape_cast %13 : vector<5x1xf32> to vector<1x5x1xf32>
    %cst_7 = arith.constant 0.00520833349 : f32
    %15 = vector.broadcast %cst_7 : f32 to vector<1x5x1xf32>
    %16 = arith.mulf %14, %15 : vector<1x5x1xf32>
    %cst_8 = arith.constant 9.99999974E-6 : f32
    %17 = vector.broadcast %cst_8 : f32 to vector<1x5x1xf32>
    %18 = arith.addf %16, %17 : vector<1x5x1xf32>
    %19 = math.rsqrt %18 : vector<1x5x1xf32>
    %20 = vector.broadcast %19 : vector<1x5x1xf32> to vector<6x5x32xf32>
    %21 = arith.mulf %9, %20 : vector<6x5x32xf32>
    %c0_9 = arith.constant 0 : index
    %c0_10 = arith.constant 0 : index
    %c0_11 = arith.constant 0 : index
    %22 = vector.load %arg2[%c0_9, %c0_10, %c0_11] : memref<6x1x32xf32, #tpu.memory_space<vmem>>, vector<6x1x32xf32>
    %23 = vector.broadcast %22 : vector<6x1x32xf32> to vector<6x5x32xf32>
    %24 = arith.mulf %21, %23 : vector<6x5x32xf32>
    %c0_12 = arith.constant 0 : index
    %c0_13 = arith.constant 0 : index
    %c0_14 = arith.constant 0 : index
    %25 = vector.load %arg3[%c0_12, %c0_13, %c0_14] : memref<6x1x32xf32, #tpu.memory_space<vmem>>, vector<6x1x32xf32>
    %26 = vector.broadcast %25 : vector<6x1x32xf32> to vector<6x5x32xf32>
    %27 = arith.addf %24, %26 : vector<6x5x32xf32>
    %cst_15 = arith.constant 0.000000e+00 : f32
    %28 = vector.broadcast %cst_15 : f32 to vector<5x32xf32>
    %c0_16 = arith.constant 0 : index
    %c0_17 = arith.constant 0 : index
    %c0_18 = arith.constant 0 : index
    %29 = vector.load %arg5[%c0_16, %c0_17, %c0_18] : memref<2x1x32xf32, #tpu.memory_space<vmem>>, vector<1x1x32xf32>
    %30 = vector.shape_cast %29 : vector<1x1x32xf32> to vector<1x32xf32>
    %31 = vector.shape_cast %30 : vector<1x32xf32> to vector<1x32xf32>
    %32 = vector.broadcast %31 : vector<1x32xf32> to vector<5x32xf32>
    %33 = vector.extract_strided_slice %27 {offsets = [0, 0, 0], sizes = [1, 5, 32], strides = [1, 1, 1]} : vector<6x5x32xf32> to vector<1x5x32xf32>
    %34 = vector.shape_cast %33 : vector<1x5x32xf32> to vector<5x32xf32>
    %c0_19 = arith.constant 0 : index
    %c0_20 = arith.constant 0 : index
    %c0_21 = arith.constant 0 : index
    %c0_22 = arith.constant 0 : index
    %35 = vector.load %arg4[%c0_19, %c0_20, %c0_21, %c0_22] : memref<2x3x32x32xf32, #tpu.memory_space<vmem>>, vector<1x1x32x32xf32>
    %36 = vector.shape_cast %35 : vector<1x1x32x32xf32> to vector<32x32xf32>
    %cst_23 = arith.constant dense<0.000000e+00> : vector<5x32xf32>
    %37 = tpu.matmul %34, %36, %cst_23 {dimension_numbers = #tpu.dot_dimension_numbers<[1], [0], [0], [1], [0, 0, 1, 1], [], []>} : vector<5x32xf32>, vector<32x32xf32>, vector<5x32xf32> -> vector<5x32xf32>
    %38 = arith.addf %32, %37 : vector<5x32xf32>
    %39 = vector.extract_strided_slice %27 {offsets = [1, 0, 0], sizes = [1, 5, 32], strides = [1, 1, 1]} : vector<6x5x32xf32> to vector<1x5x32xf32>
    %40 = vector.shape_cast %39 : vector<1x5x32xf32> to vector<5x32xf32>
    %c0_24 = arith.constant 0 : index
    %c1 = arith.constant 1 : index
    %c0_25 = arith.constant 0 : index
    %c0_26 = arith.constant 0 : index
    %41 = vector.load %arg4[%c0_24, %c1, %c0_25, %c0_26] : memref<2x3x32x32xf32, #tpu.memory_space<vmem>>, vector<1x1x32x32xf32>
    %42 = vector.shape_cast %41 : vector<1x1x32x32xf32> to vector<32x32xf32>
    %cst_27 = arith.constant dense<0.000000e+00> : vector<5x32xf32>
    %43 = tpu.matmul %40, %42, %cst_27 {dimension_numbers = #tpu.dot_dimension_numbers<[1], [0], [0], [1], [0, 0, 1, 1], [], []>} : vector<5x32xf32>, vector<32x32xf32>, vector<5x32xf32> -> vector<5x32xf32>
    %44 = arith.addf %38, %43 : vector<5x32xf32>
    %45 = vector.extract_strided_slice %27 {offsets = [2, 0, 0], sizes = [1, 5, 32], strides = [1, 1, 1]} : vector<6x5x32xf32> to vector<1x5x32xf32>
    %46 = vector.shape_cast %45 : vector<1x5x32xf32> to vector<5x32xf32>
    %c0_28 = arith.constant 0 : index
    %c2 = arith.constant 2 : index
    %c0_29 = arith.constant 0 : index
    %c0_30 = arith.constant 0 : index
    %47 = vector.load %arg4[%c0_28, %c2, %c0_29, %c0_30] : memref<2x3x32x32xf32, #tpu.memory_space<vmem>>, vector<1x1x32x32xf32>
    %48 = vector.shape_cast %47 : vector<1x1x32x32xf32> to vector<32x32xf32>
    %cst_31 = arith.constant dense<0.000000e+00> : vector<5x32xf32>
    %49 = tpu.matmul %46, %48, %cst_31 {dimension_numbers = #tpu.dot_dimension_numbers<[1], [0], [0], [1], [0, 0, 1, 1], [], []>} : vector<5x32xf32>, vector<32x32xf32>, vector<5x32xf32> -> vector<5x32xf32>
    %50 = arith.addf %44, %49 : vector<5x32xf32>
    %c0_32 = arith.constant 0 : index
    %c0_33 = arith.constant 0 : index
    %c0_34 = arith.constant 0 : index
    %51 = vector.load %arg6[%c0_32, %c0_33, %c0_34] : memref<2x32x64xf32, #tpu.memory_space<vmem>>, vector<1x32x64xf32>
    %52 = vector.shape_cast %51 : vector<1x32x64xf32> to vector<32x64xf32>
    %cst_35 = arith.constant dense<0.000000e+00> : vector<5x64xf32>
    %53 = tpu.matmul %50, %52, %cst_35 {dimension_numbers = #tpu.dot_dimension_numbers<[1], [0], [0], [1], [0, 0, 1, 1], [], []>} : vector<5x32xf32>, vector<32x64xf32>, vector<5x64xf32> -> vector<5x64xf32>
    %c0_36 = arith.constant 0 : index
    %c0_37 = arith.constant 0 : index
    %c0_38 = arith.constant 0 : index
    %54 = vector.load %arg7[%c0_36, %c0_37, %c0_38] : memref<2x1x64xf32, #tpu.memory_space<vmem>>, vector<1x1x64xf32>
    %55 = vector.shape_cast %54 : vector<1x1x64xf32> to vector<1x64xf32>
    %56 = vector.broadcast %55 : vector<1x64xf32> to vector<5x64xf32>
    %57 = arith.addf %53, %56 : vector<5x64xf32>
    %cst_39 = arith.constant 5.000000e-01 : f32
    %58 = vector.broadcast %cst_39 : f32 to vector<5x64xf32>
    %59 = arith.mulf %58, %57 : vector<5x64xf32>
    %cst_40 = arith.constant 4.471500e-02 : f32
    %60 = vector.broadcast %cst_40 : f32 to vector<5x64xf32>
    %61 = arith.mulf %60, %57 : vector<5x64xf32>
    %62 = arith.mulf %61, %57 : vector<5x64xf32>
    %63 = arith.mulf %62, %57 : vector<5x64xf32>
    %64 = arith.addf %57, %63 : vector<5x64xf32>
    %cst_41 = arith.constant 0.797884583 : f32
    %65 = vector.broadcast %cst_41 : f32 to vector<5x64xf32>
    %66 = arith.mulf %65, %64 : vector<5x64xf32>
    %67 = math.tanh %66 : vector<5x64xf32>
    %cst_42 = arith.constant 1.000000e+00 : f32
    %68 = vector.broadcast %cst_42 : f32 to vector<5x64xf32>
    %69 = arith.addf %68, %67 : vector<5x64xf32>
    %70 = arith.mulf %59, %69 : vector<5x64xf32>
    %c0_43 = arith.constant 0 : index
    %c0_44 = arith.constant 0 : index
    %c0_45 = arith.constant 0 : index
    %71 = vector.load %arg8[%c0_43, %c0_44, %c0_45] : memref<2x64x32xf32, #tpu.memory_space<vmem>>, vector<1x64x32xf32>
    %72 = vector.shape_cast %71 : vector<1x64x32xf32> to vector<64x32xf32>
    %cst_46 = arith.constant dense<0.000000e+00> : vector<5x32xf32>
    %73 = tpu.matmul %70, %72, %cst_46 {dimension_numbers = #tpu.dot_dimension_numbers<[1], [0], [0], [1], [0, 0, 1, 1], [], []>} : vector<5x64xf32>, vector<64x32xf32>, vector<5x32xf32> -> vector<5x32xf32>
    %c0_47 = arith.constant 0 : index
    %c0_48 = arith.constant 0 : index
    %c0_49 = arith.constant 0 : index
    %74 = vector.load %arg9[%c0_47, %c0_48, %c0_49] : memref<2x1x32xf32, #tpu.memory_space<vmem>>, vector<1x1x32xf32>
    %75 = vector.shape_cast %74 : vector<1x1x32xf32> to vector<1x32xf32>
    %76 = vector.broadcast %75 : vector<1x32xf32> to vector<5x32xf32>
    %77 = arith.addf %73, %76 : vector<5x32xf32>
    %78 = arith.addf %28, %77 : vector<5x32xf32>
    %79 = arith.addf %78, %50 : vector<5x32xf32>
    %c1_50 = arith.constant 1 : index
    %c0_51 = arith.constant 0 : index
    %c0_52 = arith.constant 0 : index
    %80 = vector.load %arg5[%c1_50, %c0_51, %c0_52] : memref<2x1x32xf32, #tpu.memory_space<vmem>>, vector<1x1x32xf32>
    %81 = vector.shape_cast %80 : vector<1x1x32xf32> to vector<1x32xf32>
    %82 = vector.shape_cast %81 : vector<1x32xf32> to vector<1x32xf32>
    %83 = vector.broadcast %82 : vector<1x32xf32> to vector<5x32xf32>
    %84 = vector.extract_strided_slice %27 {offsets = [3, 0, 0], sizes = [1, 5, 32], strides = [1, 1, 1]} : vector<6x5x32xf32> to vector<1x5x32xf32>
    %85 = vector.shape_cast %84 : vector<1x5x32xf32> to vector<5x32xf32>
    %c1_53 = arith.constant 1 : index
    %c0_54 = arith.constant 0 : index
    %c0_55 = arith.constant 0 : index
    %c0_56 = arith.constant 0 : index
    %86 = vector.load %arg4[%c1_53, %c0_54, %c0_55, %c0_56] : memref<2x3x32x32xf32, #tpu.memory_space<vmem>>, vector<1x1x32x32xf32>
    %87 = vector.shape_cast %86 : vector<1x1x32x32xf32> to vector<32x32xf32>
    %cst_57 = arith.constant dense<0.000000e+00> : vector<5x32xf32>
    %88 = tpu.matmul %85, %87, %cst_57 {dimension_numbers = #tpu.dot_dimension_numbers<[1], [0], [0], [1], [0, 0, 1, 1], [], []>} : vector<5x32xf32>, vector<32x32xf32>, vector<5x32xf32> -> vector<5x32xf32>
    %89 = arith.addf %83, %88 : vector<5x32xf32>
    %90 = vector.extract_strided_slice %27 {offsets = [4, 0, 0], sizes = [1, 5, 32], strides = [1, 1, 1]} : vector<6x5x32xf32> to vector<1x5x32xf32>
    %91 = vector.shape_cast %90 : vector<1x5x32xf32> to vector<5x32xf32>
    %c1_58 = arith.constant 1 : index
    %c1_59 = arith.constant 1 : index
    %c0_60 = arith.constant 0 : index
    %c0_61 = arith.constant 0 : index
    %92 = vector.load %arg4[%c1_58, %c1_59, %c0_60, %c0_61] : memref<2x3x32x32xf32, #tpu.memory_space<vmem>>, vector<1x1x32x32xf32>
    %93 = vector.shape_cast %92 : vector<1x1x32x32xf32> to vector<32x32xf32>
    %cst_62 = arith.constant dense<0.000000e+00> : vector<5x32xf32>
    %94 = tpu.matmul %91, %93, %cst_62 {dimension_numbers = #tpu.dot_dimension_numbers<[1], [0], [0], [1], [0, 0, 1, 1], [], []>} : vector<5x32xf32>, vector<32x32xf32>, vector<5x32xf32> -> vector<5x32xf32>
    %95 = arith.addf %89, %94 : vector<5x32xf32>
    %96 = vector.extract_strided_slice %27 {offsets = [5, 0, 0], sizes = [1, 5, 32], strides = [1, 1, 1]} : vector<6x5x32xf32> to vector<1x5x32xf32>
    %97 = vector.shape_cast %96 : vector<1x5x32xf32> to vector<5x32xf32>
    %c1_63 = arith.constant 1 : index
    %c2_64 = arith.constant 2 : index
    %c0_65 = arith.constant 0 : index
    %c0_66 = arith.constant 0 : index
    %98 = vector.load %arg4[%c1_63, %c2_64, %c0_65, %c0_66] : memref<2x3x32x32xf32, #tpu.memory_space<vmem>>, vector<1x1x32x32xf32>
    %99 = vector.shape_cast %98 : vector<1x1x32x32xf32> to vector<32x32xf32>
    %cst_67 = arith.constant dense<0.000000e+00> : vector<5x32xf32>
    %100 = tpu.matmul %97, %99, %cst_67 {dimension_numbers = #tpu.dot_dimension_numbers<[1], [0], [0], [1], [0, 0, 1, 1], [], []>} : vector<5x32xf32>, vector<32x32xf32>, vector<5x32xf32> -> vector<5x32xf32>
    %101 = arith.addf %95, %100 : vector<5x32xf32>
    %c1_68 = arith.constant 1 : index
    %c0_69 = arith.constant 0 : index
    %c0_70 = arith.constant 0 : index
    %102 = vector.load %arg6[%c1_68, %c0_69, %c0_70] : memref<2x32x64xf32, #tpu.memory_space<vmem>>, vector<1x32x64xf32>
    %103 = vector.shape_cast %102 : vector<1x32x64xf32> to vector<32x64xf32>
    %cst_71 = arith.constant dense<0.000000e+00> : vector<5x64xf32>
    %104 = tpu.matmul %101, %103, %cst_71 {dimension_numbers = #tpu.dot_dimension_numbers<[1], [0], [0], [1], [0, 0, 1, 1], [], []>} : vector<5x32xf32>, vector<32x64xf32>, vector<5x64xf32> -> vector<5x64xf32>
    %c1_72 = arith.constant 1 : index
    %c0_73 = arith.constant 0 : index
    %c0_74 = arith.constant 0 : index
    %105 = vector.load %arg7[%c1_72, %c0_73, %c0_74] : memref<2x1x64xf32, #tpu.memory_space<vmem>>, vector<1x1x64xf32>
    %106 = vector.shape_cast %105 : vector<1x1x64xf32> to vector<1x64xf32>
    %107 = vector.broadcast %106 : vector<1x64xf32> to vector<5x64xf32>
    %108 = arith.addf %104, %107 : vector<5x64xf32>
    %cst_75 = arith.constant 5.000000e-01 : f32
    %109 = vector.broadcast %cst_75 : f32 to vector<5x64xf32>
    %110 = arith.mulf %109, %108 : vector<5x64xf32>
    %cst_76 = arith.constant 4.471500e-02 : f32
    %111 = vector.broadcast %cst_76 : f32 to vector<5x64xf32>
    %112 = arith.mulf %111, %108 : vector<5x64xf32>
    %113 = arith.mulf %112, %108 : vector<5x64xf32>
    %114 = arith.mulf %113, %108 : vector<5x64xf32>
    %115 = arith.addf %108, %114 : vector<5x64xf32>
    %cst_77 = arith.constant 0.797884583 : f32
    %116 = vector.broadcast %cst_77 : f32 to vector<5x64xf32>
    %117 = arith.mulf %116, %115 : vector<5x64xf32>
    %118 = math.tanh %117 : vector<5x64xf32>
    %cst_78 = arith.constant 1.000000e+00 : f32
    %119 = vector.broadcast %cst_78 : f32 to vector<5x64xf32>
    %120 = arith.addf %119, %118 : vector<5x64xf32>
    %121 = arith.mulf %110, %120 : vector<5x64xf32>
    %c1_79 = arith.constant 1 : index
    %c0_80 = arith.constant 0 : index
    %c0_81 = arith.constant 0 : index
    %122 = vector.load %arg8[%c1_79, %c0_80, %c0_81] : memref<2x64x32xf32, #tpu.memory_space<vmem>>, vector<1x64x32xf32>
    %123 = vector.shape_cast %122 : vector<1x64x32xf32> to vector<64x32xf32>
    %cst_82 = arith.constant dense<0.000000e+00> : vector<5x32xf32>
    %124 = tpu.matmul %121, %123, %cst_82 {dimension_numbers = #tpu.dot_dimension_numbers<[1], [0], [0], [1], [0, 0, 1, 1], [], []>} : vector<5x64xf32>, vector<64x32xf32>, vector<5x32xf32> -> vector<5x32xf32>
    %c1_83 = arith.constant 1 : index
    %c0_84 = arith.constant 0 : index
    %c0_85 = arith.constant 0 : index
    %125 = vector.load %arg9[%c1_83, %c0_84, %c0_85] : memref<2x1x32xf32, #tpu.memory_space<vmem>>, vector<1x1x32xf32>
    %126 = vector.shape_cast %125 : vector<1x1x32xf32> to vector<1x32xf32>
    %127 = vector.broadcast %126 : vector<1x32xf32> to vector<5x32xf32>
    %128 = arith.addf %124, %127 : vector<5x32xf32>
    %129 = arith.addf %79, %128 : vector<5x32xf32>
    %130 = arith.addf %129, %101 : vector<5x32xf32>
    %c0_86 = arith.constant 0 : index
    %c0_87 = arith.constant 0 : index
    %131 = vector.load %arg10[%c0_86, %c0_87] : memref<1x32xf32, #tpu.memory_space<vmem>>, vector<1x32xf32>
    %c0_88 = arith.constant 0 : index
    %c0_89 = arith.constant 0 : index
    %132 = vector.load %arg11[%c0_88, %c0_89] : memref<1x32xf32, #tpu.memory_space<vmem>>, vector<1x32xf32>
    %cst_90 = arith.constant dense<0.000000e+00> : vector<5xf32>
    %133 = vector.multi_reduction <add>, %130, %cst_90 [1] : vector<5x32xf32> to vector<5xf32>
    %134 = vector.shape_cast %133 : vector<5xf32> to vector<5x1xf32>
    %cst_91 = arith.constant 3.200000e+01 : f32
    %135 = vector.broadcast %cst_91 : f32 to vector<5x1xf32>
    %136 = arith.divf %134, %135 : vector<5x1xf32>
    %137 = vector.broadcast %136 : vector<5x1xf32> to vector<5x32xf32>
    %138 = arith.subf %130, %137 : vector<5x32xf32>
    %139 = arith.mulf %138, %138 : vector<5x32xf32>
    %cst_92 = arith.constant dense<0.000000e+00> : vector<5xf32>
    %140 = vector.multi_reduction <add>, %139, %cst_92 [1] : vector<5x32xf32> to vector<5xf32>
    %141 = vector.shape_cast %140 : vector<5xf32> to vector<5x1xf32>
    %cst_93 = arith.constant 3.200000e+01 : f32
    %142 = vector.broadcast %cst_93 : f32 to vector<5x1xf32>
    %143 = arith.divf %141, %142 : vector<5x1xf32>
    %144 = vector.broadcast %136 : vector<5x1xf32> to vector<5x32xf32>
    %145 = arith.subf %130, %144 : vector<5x32xf32>
    %cst_94 = arith.constant 9.99999974E-6 : f32
    %146 = vector.broadcast %cst_94 : f32 to vector<5x1xf32>
    %147 = arith.addf %143, %146 : vector<5x1xf32>
    %148 = math.rsqrt %147 : vector<5x1xf32>
    %149 = vector.broadcast %148 : vector<5x1xf32> to vector<5x32xf32>
    %150 = arith.mulf %145, %149 : vector<5x32xf32>
    %151 = vector.broadcast %131 : vector<1x32xf32> to vector<5x32xf32>
    %152 = arith.mulf %150, %151 : vector<5x32xf32>
    %153 = vector.broadcast %132 : vector<1x32xf32> to vector<5x32xf32>
    %154 = arith.addf %152, %153 : vector<5x32xf32>
    %c0_95 = arith.constant 0 : index
    %c0_96 = arith.constant 0 : index
    %155 = vector.load %arg12[%c0_95, %c0_96] : memref<32x16xf32, #tpu.memory_space<vmem>>, vector<32x16xf32>
    %cst_97 = arith.constant dense<0.000000e+00> : vector<5x16xf32>
    %156 = tpu.matmul %154, %155, %cst_97 {dimension_numbers = #tpu.dot_dimension_numbers<[1], [0], [0], [1], [0, 0, 1, 1], [], []>} : vector<5x32xf32>, vector<32x16xf32>, vector<5x16xf32> -> vector<5x16xf32>
    %c0_98 = arith.constant 0 : index
    %c0_99 = arith.constant 0 : index
    %157 = vector.load %arg13[%c0_98, %c0_99] : memref<1x16xf32, #tpu.memory_space<vmem>>, vector<1x16xf32>
    %158 = vector.broadcast %157 : vector<1x16xf32> to vector<5x16xf32>
    %159 = arith.addf %156, %158 : vector<5x16xf32>
    %c0_100 = arith.constant 0 : index
    %c0_101 = arith.constant 0 : index
    %c0_102 = arith.constant 0 : index
    %160 = vector.load %arg14[%c0_100, %c0_101, %c0_102] : memref<1x5x16xf32, #tpu.memory_space<vmem>>, vector<1x5x16xf32>
    %161 = vector.shape_cast %160 : vector<1x5x16xf32> to vector<5x16xf32>
    %162 = vector.shape_cast %159 : vector<5x16xf32> to vector<1x5x16xf32>
    tpu.vector_store %arg14[%c0_100, %c0_101, %c0_102], %162 {strides = array<i32>} : memref<1x5x16xf32, #tpu.memory_space<vmem>>, vector<1x5x16xf32>,
    return
  }
  func.func @transform_0(%arg0: i32) -> (i32, i32, i32, i32) {
    %c0_i32 = arith.constant 0 : i32
    %c0_i32_0 = arith.constant 0 : i32
    %c0_i32_1 = arith.constant 0 : i32
    %c0_i32_2 = arith.constant 0 : i32
    return %arg0, %c0_i32, %c0_i32_0, %c0_i32_1 : i32, i32, i32, i32
  }
  func.func @transform_1(%arg0: i32) -> (i32, i32, i32) {
    %c0_i32 = arith.constant 0 : i32
    %c0_i32_0 = arith.constant 0 : i32
    %c0_i32_1 = arith.constant 0 : i32
    %c0_i32_2 = arith.constant 0 : i32
    return %c0_i32, %c0_i32_0, %c0_i32_1 : i32, i32, i32
  }
  func.func @transform_2(%arg0: i32) -> (i32, i32, i32) {
    %c0_i32 = arith.constant 0 : i32
    %c0_i32_0 = arith.constant 0 : i32
    %c0_i32_1 = arith.constant 0 : i32
    %c0_i32_2 = arith.constant 0 : i32
    return %c0_i32, %c0_i32_0, %c0_i32_1 : i32, i32, i32
  }
  func.func @transform_3(%arg0: i32) -> (i32, i32, i32, i32) {
    %c0_i32 = arith.constant 0 : i32
    %c0_i32_0 = arith.constant 0 : i32
    %c0_i32_1 = arith.constant 0 : i32
    %c0_i32_2 = arith.constant 0 : i32
    %c0_i32_3 = arith.constant 0 : i32
    return %c0_i32, %c0_i32_0, %c0_i32_1, %c0_i32_2 : i32, i32, i32, i32
  }
  func.func @transform_4(%arg0: i32) -> (i32, i32, i32) {
    %c0_i32 = arith.constant 0 : i32
    %c0_i32_0 = arith.constant 0 : i32
    %c0_i32_1 = arith.constant 0 : i32
    %c0_i32_2 = arith.constant 0 : i32
    return %c0_i32, %c0_i32_0, %c0_i32_1 : i32, i32, i32
  }
  func.func @transform_5(%arg0: i32) -> (i32, i32, i32) {
    %c0_i32 = arith.constant 0 : i32
    %c0_i32_0 = arith.constant 0 : i32
    %c0_i32_1 = arith.constant 0 : i32
    %c0_i32_2 = arith.constant 0 : i32
    return %c0_i32, %c0_i32_0, %c0_i32_1 : i32, i32, i32
  }
  func.func @transform_6(%arg0: i32) -> (i32, i32, i32) {
    %c0_i32 = arith.constant 0 : i32
    %c0_i32_0 = arith.constant 0 : i32
    %c0_i32_1 = arith.constant 0 : i32
    %c0_i32_2 = arith.constant 0 : i32
    return %c0_i32, %c0_i32_0, %c0_i32_1 : i32, i32, i32
  }
  func.func @transform_7(%arg0: i32) -> (i32, i32, i32) {
    %c0_i32 = arith.constant 0 : i32
    %c0_i32_0 = arith.constant 0 : i32
    %c0_i32_1 = arith.constant 0 : i32
    %c0_i32_2 = arith.constant 0 : i32
    return %c0_i32, %c0_i32_0, %c0_i32_1 : i32, i32, i32
  }
  func.func @transform_8(%arg0: i32) -> (i32, i32, i32) {
    %c0_i32 = arith.constant 0 : i32
    %c0_i32_0 = arith.constant 0 : i32
    %c0_i32_1 = arith.constant 0 : i32
    %c0_i32_2 = arith.constant 0 : i32
    return %c0_i32, %c0_i32_0, %c0_i32_1 : i32, i32, i32
  }
  func.func @transform_9(%arg0: i32) -> (i32, i32) {
    %c0_i32 = arith.constant 0 : i32
    %c0_i32_0 = arith.constant 0 : i32
    %c0_i32_1 = arith.constant 0 : i32
    return %c0_i32, %c0_i32_0 : i32, i32
  }
  func.func @transform_10(%arg0: i32) -> (i32, i32) {
    %c0_i32 = arith.constant 0 : i32
    %c0_i32_0 = arith.constant 0 : i32
    %c0_i32_1 = arith.constant 0 : i32
    return %c0_i32, %c0_i32_0 : i32, i32
  }
  func.func @transform_11(%arg0: i32) -> (i32, i32) {
    %c0_i32 = arith.constant 0 : i32
    %c0_i32_0 = arith.constant 0 : i32
    %c0_i32_1 = arith.constant 0 : i32
    return %c0_i32, %c0_i32_0 : i32, i32
  }
  func.func @transform_12(%arg0: i32) -> (i32, i32) {
    %c0_i32 = arith.constant 0 : i32
    %c0_i32_0 = arith.constant 0 : i32
    %c0_i32_1 = arith.constant 0 : i32
    return %c0_i32, %c0_i32_0 : i32, i32
  }
  func.func @transform_13(%arg0: i32) -> (i32, i32, i32) {
    %c0_i32 = arith.constant 0 : i32
    %c0_i32_0 = arith.constant 0 : i32
    %c0_i32_1 = arith.constant 0 : i32
    return %arg0, %c0_i32, %c0_i32_0 : i32, i32, i32
  }
}

module attributes {stable_mosaic.version = 11 : i64} {
  func.func @kernel(%arg0: i32, %arg1: i32, %arg2: memref<1x17x16xf32, #tpu.memory_space<vmem>>, %arg3: memref<1x1x16xf32, #tpu.memory_space<vmem>>, %arg4: memref<1x1x16xf32, #tpu.memory_space<vmem>>, %arg5: memref<1x16x48xf32, #tpu.memory_space<vmem>>, %arg6: memref<1x1x48xf32, #tpu.memory_space<vmem>>, %arg7: memref<1x16x16xf32, #tpu.memory_space<vmem>>, %arg8: memref<1x1x16xf32, #tpu.memory_space<vmem>>, %arg9: memref<1x1x16xf32, #tpu.memory_space<vmem>>, %arg10: memref<1x1x16xf32, #tpu.memory_space<vmem>>, %arg11: memref<1x16x64xf32, #tpu.memory_space<vmem>>, %arg12: memref<1x1x64xf32, #tpu.memory_space<vmem>>, %arg13: memref<1x64x16xf32, #tpu.memory_space<vmem>>, %arg14: memref<1x1x16xf32, #tpu.memory_space<vmem>>, %arg15: memref<1x17x16xf32, #tpu.memory_space<vmem>>, %arg16: memref<17x16xf32, #tpu.memory_space<vmem>>) attributes {dimension_semantics = [#tpu.dimension_semantics<parallel>, #tpu.dimension_semantics<arbitrary>], iteration_bounds = array<i64: 2, 2>, scalar_prefetch = 0 : i64, scratch_operands = 1 : i64, tpu.core_type = #tpu.core_type<tc>, window_params = [{transform_indices = @transform_0, window_bounds = array<i64: 1, 17, 16>}, {transform_indices = @transform_1, window_bounds = array<i64: 1, 1, 16>}, {transform_indices = @transform_2, window_bounds = array<i64: 1, 1, 16>}, {transform_indices = @transform_3, window_bounds = array<i64: 1, 16, 48>}, {transform_indices = @transform_4, window_bounds = array<i64: 1, 1, 48>}, {transform_indices = @transform_5, window_bounds = array<i64: 1, 16, 16>}, {transform_indices = @transform_6, window_bounds = array<i64: 1, 1, 16>}, {transform_indices = @transform_7, window_bounds = array<i64: 1, 1, 16>}, {transform_indices = @transform_8, window_bounds = array<i64: 1, 1, 16>}, {transform_indices = @transform_9, window_bounds = array<i64: 1, 16, 64>}, {transform_indices = @transform_10, window_bounds = array<i64: 1, 1, 64>}, {transform_indices = @transform_11, window_bounds = array<i64: 1, 64, 16>}, {transform_indices = @transform_12, window_bounds = array<i64: 1, 1, 16>}, {transform_indices = @transform_13, window_bounds = array<i64: 1, 17, 16>}]} {
    %c0_i32 = arith.constant 0 : i32
    %0 = arith.cmpi eq, %arg1, %c0_i32 : i32
    %1 = arith.extui %0 : i1 to i32
    %c0_i32_0 = arith.constant 0 : i32
    %2 = arith.cmpi ne, %1, %c0_i32_0 : i32
    scf.if %2 {
      %c0_82 = arith.constant 0 : index
      %c0_83 = arith.constant 0 : index
      %c0_84 = arith.constant 0 : index
      %190 = vector.load %arg2[%c0_82, %c0_83, %c0_84] : memref<1x17x16xf32, #tpu.memory_space<vmem>>, vector<1x17x16xf32>
      %191 = vector.shape_cast %190 : vector<1x17x16xf32> to vector<17x16xf32>
      %c0_85 = arith.constant 0 : index
      %c0_86 = arith.constant 0 : index
      %192 = vector.load %arg16[%c0_85, %c0_86] : memref<17x16xf32, #tpu.memory_space<vmem>>, vector<17x16xf32>
      tpu.vector_store %arg16[%c0_85, %c0_86], %191 {strides = array<i32>} : memref<17x16xf32, #tpu.memory_space<vmem>>, vector<17x16xf32>,
    } else {
    }
    %c0 = arith.constant 0 : index
    %c0_1 = arith.constant 0 : index
    %3 = vector.load %arg16[%c0, %c0_1] : memref<17x16xf32, #tpu.memory_space<vmem>>, vector<17x16xf32>
    %c0_2 = arith.constant 0 : index
    %c0_3 = arith.constant 0 : index
    %c0_4 = arith.constant 0 : index
    %4 = vector.load %arg3[%c0_2, %c0_3, %c0_4] : memref<1x1x16xf32, #tpu.memory_space<vmem>>, vector<1x1x16xf32>
    %5 = vector.shape_cast %4 : vector<1x1x16xf32> to vector<1x16xf32>
    %c0_5 = arith.constant 0 : index
    %c0_6 = arith.constant 0 : index
    %c0_7 = arith.constant 0 : index
    %6 = vector.load %arg4[%c0_5, %c0_6, %c0_7] : memref<1x1x16xf32, #tpu.memory_space<vmem>>, vector<1x1x16xf32>
    %7 = vector.shape_cast %6 : vector<1x1x16xf32> to vector<1x16xf32>
    %cst = arith.constant dense<0.000000e+00> : vector<17xf32>
    %8 = vector.multi_reduction <add>, %3, %cst [1] : vector<17x16xf32> to vector<17xf32>
    %9 = vector.shape_cast %8 : vector<17xf32> to vector<17x1xf32>
    %cst_8 = arith.constant 1.600000e+01 : f32
    %10 = vector.broadcast %cst_8 : f32 to vector<17x1xf32>
    %11 = arith.divf %9, %10 : vector<17x1xf32>
    %12 = vector.broadcast %11 : vector<17x1xf32> to vector<17x16xf32>
    %13 = arith.subf %3, %12 : vector<17x16xf32>
    %14 = arith.mulf %13, %13 : vector<17x16xf32>
    %cst_9 = arith.constant dense<0.000000e+00> : vector<17xf32>
    %15 = vector.multi_reduction <add>, %14, %cst_9 [1] : vector<17x16xf32> to vector<17xf32>
    %16 = vector.shape_cast %15 : vector<17xf32> to vector<17x1xf32>
    %cst_10 = arith.constant 1.600000e+01 : f32
    %17 = vector.broadcast %cst_10 : f32 to vector<17x1xf32>
    %18 = arith.divf %16, %17 : vector<17x1xf32>
    %19 = vector.broadcast %11 : vector<17x1xf32> to vector<17x16xf32>
    %20 = arith.subf %3, %19 : vector<17x16xf32>
    %cst_11 = arith.constant 9.99999974E-6 : f32
    %21 = vector.broadcast %cst_11 : f32 to vector<17x1xf32>
    %22 = arith.addf %18, %21 : vector<17x1xf32>
    %23 = math.rsqrt %22 : vector<17x1xf32>
    %24 = vector.broadcast %23 : vector<17x1xf32> to vector<17x16xf32>
    %25 = arith.mulf %20, %24 : vector<17x16xf32>
    %26 = vector.broadcast %5 : vector<1x16xf32> to vector<17x16xf32>
    %27 = arith.mulf %25, %26 : vector<17x16xf32>
    %28 = vector.broadcast %7 : vector<1x16xf32> to vector<17x16xf32>
    %29 = arith.addf %27, %28 : vector<17x16xf32>
    %c0_12 = arith.constant 0 : index
    %c0_13 = arith.constant 0 : index
    %c0_14 = arith.constant 0 : index
    %30 = vector.load %arg5[%c0_12, %c0_13, %c0_14] : memref<1x16x48xf32, #tpu.memory_space<vmem>>, vector<1x16x48xf32>
    %31 = vector.shape_cast %30 : vector<1x16x48xf32> to vector<16x48xf32>
    %cst_15 = arith.constant dense<0.000000e+00> : vector<17x48xf32>
    %32 = tpu.matmul %29, %31, %cst_15 {dimension_numbers = #tpu.dot_dimension_numbers<[1], [0], [0], [1], [0, 0, 1, 1], [], []>} : vector<17x16xf32>, vector<16x48xf32>, vector<17x48xf32> -> vector<17x48xf32>
    %c0_16 = arith.constant 0 : index
    %c0_17 = arith.constant 0 : index
    %c0_18 = arith.constant 0 : index
    %33 = vector.load %arg6[%c0_16, %c0_17, %c0_18] : memref<1x1x48xf32, #tpu.memory_space<vmem>>, vector<1x1x48xf32>
    %34 = vector.shape_cast %33 : vector<1x1x48xf32> to vector<1x48xf32>
    %35 = vector.broadcast %34 : vector<1x48xf32> to vector<17x48xf32>
    %36 = arith.addf %32, %35 : vector<17x48xf32>
    %37 = vector.extract_strided_slice %36 {offsets = [0, 0], sizes = [17, 16], strides = [1, 1]} : vector<17x48xf32> to vector<17x16xf32>
    %38 = vector.extract_strided_slice %36 {offsets = [0, 16], sizes = [17, 16], strides = [1, 1]} : vector<17x48xf32> to vector<17x16xf32>
    %39 = vector.extract_strided_slice %36 {offsets = [0, 32], sizes = [17, 16], strides = [1, 1]} : vector<17x48xf32> to vector<17x16xf32>
    %c0_19 = arith.constant 0 : index
    %c0_20 = arith.constant 0 : index
    %c0_21 = arith.constant 0 : index
    %40 = vector.load %arg7[%c0_19, %c0_20, %c0_21] : memref<1x16x16xf32, #tpu.memory_space<vmem>>, vector<1x16x16xf32>
    %41 = vector.shape_cast %40 : vector<1x16x16xf32> to vector<16x16xf32>
    %cst_22 = arith.constant 0.000000e+00 : f32
    %42 = vector.broadcast %cst_22 : f32 to vector<17x16xf32>
    %43 = vector.extract_strided_slice %37 {offsets = [0, 0], sizes = [17, 4], strides = [1, 1]} : vector<17x16xf32> to vector<17x4xf32>
    %44 = vector.extract_strided_slice %38 {offsets = [0, 0], sizes = [17, 4], strides = [1, 1]} : vector<17x16xf32> to vector<17x4xf32>
    %45 = tpu.transpose %44, [1, 0] : vector<17x4xf32> -> vector<4x17xf32>
    %cst_23 = arith.constant dense<0.000000e+00> : vector<17x17xf32>
    %46 = tpu.matmul %43, %45, %cst_23 {dimension_numbers = #tpu.dot_dimension_numbers<[1], [0], [0], [1], [0, 0, 1, 1], [], []>} : vector<17x4xf32>, vector<4x17xf32>, vector<17x17xf32> -> vector<17x17xf32>
    %cst_24 = arith.constant 5.000000e-01 : f32
    %47 = vector.broadcast %cst_24 : f32 to vector<17x17xf32>
    %48 = arith.mulf %46, %47 : vector<17x17xf32>
    %cst_25 = arith.constant dense<0xFF800000> : vector<17xf32>
    %49 = vector.multi_reduction <maximumf>, %48, %cst_25 [1] : vector<17x17xf32> to vector<17xf32>
    %50 = vector.shape_cast %49 : vector<17xf32> to vector<17x1xf32>
    %51 = vector.broadcast %50 : vector<17x1xf32> to vector<17x17xf32>
    %52 = arith.subf %48, %51 : vector<17x17xf32>
    %53 = math.exp %52 : vector<17x17xf32>
    %cst_26 = arith.constant dense<0.000000e+00> : vector<17xf32>
    %54 = vector.multi_reduction <add>, %53, %cst_26 [1] : vector<17x17xf32> to vector<17xf32>
    %55 = vector.shape_cast %54 : vector<17xf32> to vector<17x1xf32>
    %56 = tpu.reciprocal %55 {approx = true} : vector<17x1xf32> -> vector<17x1xf32>
    %57 = vector.broadcast %56 : vector<17x1xf32> to vector<17x17xf32>
    %58 = arith.mulf %53, %57 : vector<17x17xf32>
    %59 = vector.extract_strided_slice %39 {offsets = [0, 0], sizes = [17, 4], strides = [1, 1]} : vector<17x16xf32> to vector<17x4xf32>
    %cst_27 = arith.constant dense<0.000000e+00> : vector<17x4xf32>
    %60 = tpu.matmul %58, %59, %cst_27 {dimension_numbers = #tpu.dot_dimension_numbers<[1], [0], [0], [1], [0, 0, 1, 1], [], []>} : vector<17x17xf32>, vector<17x4xf32>, vector<17x4xf32> -> vector<17x4xf32>
    %61 = vector.extract_strided_slice %41 {offsets = [0, 0], sizes = [4, 16], strides = [1, 1]} : vector<16x16xf32> to vector<4x16xf32>
    %cst_28 = arith.constant dense<0.000000e+00> : vector<17x16xf32>
    %62 = tpu.matmul %60, %61, %cst_28 {dimension_numbers = #tpu.dot_dimension_numbers<[1], [0], [0], [1], [0, 0, 1, 1], [], []>} : vector<17x4xf32>, vector<4x16xf32>, vector<17x16xf32> -> vector<17x16xf32>
    %63 = arith.addf %42, %62 : vector<17x16xf32>
    %64 = vector.extract_strided_slice %37 {offsets = [0, 4], sizes = [17, 4], strides = [1, 1]} : vector<17x16xf32> to vector<17x4xf32>
    %65 = vector.extract_strided_slice %38 {offsets = [0, 4], sizes = [17, 4], strides = [1, 1]} : vector<17x16xf32> to vector<17x4xf32>
    %66 = tpu.transpose %65, [1, 0] : vector<17x4xf32> -> vector<4x17xf32>
    %cst_29 = arith.constant dense<0.000000e+00> : vector<17x17xf32>
    %67 = tpu.matmul %64, %66, %cst_29 {dimension_numbers = #tpu.dot_dimension_numbers<[1], [0], [0], [1], [0, 0, 1, 1], [], []>} : vector<17x4xf32>, vector<4x17xf32>, vector<17x17xf32> -> vector<17x17xf32>
    %cst_30 = arith.constant 5.000000e-01 : f32
    %68 = vector.broadcast %cst_30 : f32 to vector<17x17xf32>
    %69 = arith.mulf %67, %68 : vector<17x17xf32>
    %cst_31 = arith.constant dense<0xFF800000> : vector<17xf32>
    %70 = vector.multi_reduction <maximumf>, %69, %cst_31 [1] : vector<17x17xf32> to vector<17xf32>
    %71 = vector.shape_cast %70 : vector<17xf32> to vector<17x1xf32>
    %72 = vector.broadcast %71 : vector<17x1xf32> to vector<17x17xf32>
    %73 = arith.subf %69, %72 : vector<17x17xf32>
    %74 = math.exp %73 : vector<17x17xf32>
    %cst_32 = arith.constant dense<0.000000e+00> : vector<17xf32>
    %75 = vector.multi_reduction <add>, %74, %cst_32 [1] : vector<17x17xf32> to vector<17xf32>
    %76 = vector.shape_cast %75 : vector<17xf32> to vector<17x1xf32>
    %77 = tpu.reciprocal %76 {approx = true} : vector<17x1xf32> -> vector<17x1xf32>
    %78 = vector.broadcast %77 : vector<17x1xf32> to vector<17x17xf32>
    %79 = arith.mulf %74, %78 : vector<17x17xf32>
    %80 = vector.extract_strided_slice %39 {offsets = [0, 4], sizes = [17, 4], strides = [1, 1]} : vector<17x16xf32> to vector<17x4xf32>
    %cst_33 = arith.constant dense<0.000000e+00> : vector<17x4xf32>
    %81 = tpu.matmul %79, %80, %cst_33 {dimension_numbers = #tpu.dot_dimension_numbers<[1], [0], [0], [1], [0, 0, 1, 1], [], []>} : vector<17x17xf32>, vector<17x4xf32>, vector<17x4xf32> -> vector<17x4xf32>
    %82 = vector.extract_strided_slice %41 {offsets = [4, 0], sizes = [4, 16], strides = [1, 1]} : vector<16x16xf32> to vector<4x16xf32>
    %cst_34 = arith.constant dense<0.000000e+00> : vector<17x16xf32>
    %83 = tpu.matmul %81, %82, %cst_34 {dimension_numbers = #tpu.dot_dimension_numbers<[1], [0], [0], [1], [0, 0, 1, 1], [], []>} : vector<17x4xf32>, vector<4x16xf32>, vector<17x16xf32> -> vector<17x16xf32>
    %84 = arith.addf %63, %83 : vector<17x16xf32>
    %85 = vector.extract_strided_slice %37 {offsets = [0, 8], sizes = [17, 4], strides = [1, 1]} : vector<17x16xf32> to vector<17x4xf32>
    %86 = vector.extract_strided_slice %38 {offsets = [0, 8], sizes = [17, 4], strides = [1, 1]} : vector<17x16xf32> to vector<17x4xf32>
    %87 = tpu.transpose %86, [1, 0] : vector<17x4xf32> -> vector<4x17xf32>
    %cst_35 = arith.constant dense<0.000000e+00> : vector<17x17xf32>
    %88 = tpu.matmul %85, %87, %cst_35 {dimension_numbers = #tpu.dot_dimension_numbers<[1], [0], [0], [1], [0, 0, 1, 1], [], []>} : vector<17x4xf32>, vector<4x17xf32>, vector<17x17xf32> -> vector<17x17xf32>
    %cst_36 = arith.constant 5.000000e-01 : f32
    %89 = vector.broadcast %cst_36 : f32 to vector<17x17xf32>
    %90 = arith.mulf %88, %89 : vector<17x17xf32>
    %cst_37 = arith.constant dense<0xFF800000> : vector<17xf32>
    %91 = vector.multi_reduction <maximumf>, %90, %cst_37 [1] : vector<17x17xf32> to vector<17xf32>
    %92 = vector.shape_cast %91 : vector<17xf32> to vector<17x1xf32>
    %93 = vector.broadcast %92 : vector<17x1xf32> to vector<17x17xf32>
    %94 = arith.subf %90, %93 : vector<17x17xf32>
    %95 = math.exp %94 : vector<17x17xf32>
    %cst_38 = arith.constant dense<0.000000e+00> : vector<17xf32>
    %96 = vector.multi_reduction <add>, %95, %cst_38 [1] : vector<17x17xf32> to vector<17xf32>
    %97 = vector.shape_cast %96 : vector<17xf32> to vector<17x1xf32>
    %98 = tpu.reciprocal %97 {approx = true} : vector<17x1xf32> -> vector<17x1xf32>
    %99 = vector.broadcast %98 : vector<17x1xf32> to vector<17x17xf32>
    %100 = arith.mulf %95, %99 : vector<17x17xf32>
    %101 = vector.extract_strided_slice %39 {offsets = [0, 8], sizes = [17, 4], strides = [1, 1]} : vector<17x16xf32> to vector<17x4xf32>
    %cst_39 = arith.constant dense<0.000000e+00> : vector<17x4xf32>
    %102 = tpu.matmul %100, %101, %cst_39 {dimension_numbers = #tpu.dot_dimension_numbers<[1], [0], [0], [1], [0, 0, 1, 1], [], []>} : vector<17x17xf32>, vector<17x4xf32>, vector<17x4xf32> -> vector<17x4xf32>
    %103 = vector.extract_strided_slice %41 {offsets = [8, 0], sizes = [4, 16], strides = [1, 1]} : vector<16x16xf32> to vector<4x16xf32>
    %cst_40 = arith.constant dense<0.000000e+00> : vector<17x16xf32>
    %104 = tpu.matmul %102, %103, %cst_40 {dimension_numbers = #tpu.dot_dimension_numbers<[1], [0], [0], [1], [0, 0, 1, 1], [], []>} : vector<17x4xf32>, vector<4x16xf32>, vector<17x16xf32> -> vector<17x16xf32>
    %105 = arith.addf %84, %104 : vector<17x16xf32>
    %106 = vector.extract_strided_slice %37 {offsets = [0, 12], sizes = [17, 4], strides = [1, 1]} : vector<17x16xf32> to vector<17x4xf32>
    %107 = vector.extract_strided_slice %38 {offsets = [0, 12], sizes = [17, 4], strides = [1, 1]} : vector<17x16xf32> to vector<17x4xf32>
    %108 = tpu.transpose %107, [1, 0] : vector<17x4xf32> -> vector<4x17xf32>
    %cst_41 = arith.constant dense<0.000000e+00> : vector<17x17xf32>
    %109 = tpu.matmul %106, %108, %cst_41 {dimension_numbers = #tpu.dot_dimension_numbers<[1], [0], [0], [1], [0, 0, 1, 1], [], []>} : vector<17x4xf32>, vector<4x17xf32>, vector<17x17xf32> -> vector<17x17xf32>
    %cst_42 = arith.constant 5.000000e-01 : f32
    %110 = vector.broadcast %cst_42 : f32 to vector<17x17xf32>
    %111 = arith.mulf %109, %110 : vector<17x17xf32>
    %cst_43 = arith.constant dense<0xFF800000> : vector<17xf32>
    %112 = vector.multi_reduction <maximumf>, %111, %cst_43 [1] : vector<17x17xf32> to vector<17xf32>
    %113 = vector.shape_cast %112 : vector<17xf32> to vector<17x1xf32>
    %114 = vector.broadcast %113 : vector<17x1xf32> to vector<17x17xf32>
    %115 = arith.subf %111, %114 : vector<17x17xf32>
    %116 = math.exp %115 : vector<17x17xf32>
    %cst_44 = arith.constant dense<0.000000e+00> : vector<17xf32>
    %117 = vector.multi_reduction <add>, %116, %cst_44 [1] : vector<17x17xf32> to vector<17xf32>
    %118 = vector.shape_cast %117 : vector<17xf32> to vector<17x1xf32>
    %119 = tpu.reciprocal %118 {approx = true} : vector<17x1xf32> -> vector<17x1xf32>
    %120 = vector.broadcast %119 : vector<17x1xf32> to vector<17x17xf32>
    %121 = arith.mulf %116, %120 : vector<17x17xf32>
    %122 = vector.extract_strided_slice %39 {offsets = [0, 12], sizes = [17, 4], strides = [1, 1]} : vector<17x16xf32> to vector<17x4xf32>
    %cst_45 = arith.constant dense<0.000000e+00> : vector<17x4xf32>
    %123 = tpu.matmul %121, %122, %cst_45 {dimension_numbers = #tpu.dot_dimension_numbers<[1], [0], [0], [1], [0, 0, 1, 1], [], []>} : vector<17x17xf32>, vector<17x4xf32>, vector<17x4xf32> -> vector<17x4xf32>
    %124 = vector.extract_strided_slice %41 {offsets = [12, 0], sizes = [4, 16], strides = [1, 1]} : vector<16x16xf32> to vector<4x16xf32>
    %cst_46 = arith.constant dense<0.000000e+00> : vector<17x16xf32>
    %125 = tpu.matmul %123, %124, %cst_46 {dimension_numbers = #tpu.dot_dimension_numbers<[1], [0], [0], [1], [0, 0, 1, 1], [], []>} : vector<17x4xf32>, vector<4x16xf32>, vector<17x16xf32> -> vector<17x16xf32>
    %126 = arith.addf %105, %125 : vector<17x16xf32>
    %127 = arith.addf %3, %126 : vector<17x16xf32>
    %c0_47 = arith.constant 0 : index
    %c0_48 = arith.constant 0 : index
    %c0_49 = arith.constant 0 : index
    %128 = vector.load %arg8[%c0_47, %c0_48, %c0_49] : memref<1x1x16xf32, #tpu.memory_space<vmem>>, vector<1x1x16xf32>
    %129 = vector.shape_cast %128 : vector<1x1x16xf32> to vector<1x16xf32>
    %130 = vector.broadcast %129 : vector<1x16xf32> to vector<17x16xf32>
    %131 = arith.addf %127, %130 : vector<17x16xf32>
    %c0_50 = arith.constant 0 : index
    %c0_51 = arith.constant 0 : index
    %c0_52 = arith.constant 0 : index
    %132 = vector.load %arg9[%c0_50, %c0_51, %c0_52] : memref<1x1x16xf32, #tpu.memory_space<vmem>>, vector<1x1x16xf32>
    %133 = vector.shape_cast %132 : vector<1x1x16xf32> to vector<1x16xf32>
    %c0_53 = arith.constant 0 : index
    %c0_54 = arith.constant 0 : index
    %c0_55 = arith.constant 0 : index
    %134 = vector.load %arg10[%c0_53, %c0_54, %c0_55] : memref<1x1x16xf32, #tpu.memory_space<vmem>>, vector<1x1x16xf32>
    %135 = vector.shape_cast %134 : vector<1x1x16xf32> to vector<1x16xf32>
    %cst_56 = arith.constant dense<0.000000e+00> : vector<17xf32>
    %136 = vector.multi_reduction <add>, %131, %cst_56 [1] : vector<17x16xf32> to vector<17xf32>
    %137 = vector.shape_cast %136 : vector<17xf32> to vector<17x1xf32>
    %cst_57 = arith.constant 1.600000e+01 : f32
    %138 = vector.broadcast %cst_57 : f32 to vector<17x1xf32>
    %139 = arith.divf %137, %138 : vector<17x1xf32>
    %140 = vector.broadcast %139 : vector<17x1xf32> to vector<17x16xf32>
    %141 = arith.subf %131, %140 : vector<17x16xf32>
    %142 = arith.mulf %141, %141 : vector<17x16xf32>
    %cst_58 = arith.constant dense<0.000000e+00> : vector<17xf32>
    %143 = vector.multi_reduction <add>, %142, %cst_58 [1] : vector<17x16xf32> to vector<17xf32>
    %144 = vector.shape_cast %143 : vector<17xf32> to vector<17x1xf32>
    %cst_59 = arith.constant 1.600000e+01 : f32
    %145 = vector.broadcast %cst_59 : f32 to vector<17x1xf32>
    %146 = arith.divf %144, %145 : vector<17x1xf32>
    %147 = vector.broadcast %139 : vector<17x1xf32> to vector<17x16xf32>
    %148 = arith.subf %131, %147 : vector<17x16xf32>
    %cst_60 = arith.constant 9.99999974E-6 : f32
    %149 = vector.broadcast %cst_60 : f32 to vector<17x1xf32>
    %150 = arith.addf %146, %149 : vector<17x1xf32>
    %151 = math.rsqrt %150 : vector<17x1xf32>
    %152 = vector.broadcast %151 : vector<17x1xf32> to vector<17x16xf32>
    %153 = arith.mulf %148, %152 : vector<17x16xf32>
    %154 = vector.broadcast %133 : vector<1x16xf32> to vector<17x16xf32>
    %155 = arith.mulf %153, %154 : vector<17x16xf32>
    %156 = vector.broadcast %135 : vector<1x16xf32> to vector<17x16xf32>
    %157 = arith.addf %155, %156 : vector<17x16xf32>
    %c0_61 = arith.constant 0 : index
    %c0_62 = arith.constant 0 : index
    %c0_63 = arith.constant 0 : index
    %158 = vector.load %arg11[%c0_61, %c0_62, %c0_63] : memref<1x16x64xf32, #tpu.memory_space<vmem>>, vector<1x16x64xf32>
    %159 = vector.shape_cast %158 : vector<1x16x64xf32> to vector<16x64xf32>
    %cst_64 = arith.constant dense<0.000000e+00> : vector<17x64xf32>
    %160 = tpu.matmul %157, %159, %cst_64 {dimension_numbers = #tpu.dot_dimension_numbers<[1], [0], [0], [1], [0, 0, 1, 1], [], []>} : vector<17x16xf32>, vector<16x64xf32>, vector<17x64xf32> -> vector<17x64xf32>
    %c0_65 = arith.constant 0 : index
    %c0_66 = arith.constant 0 : index
    %c0_67 = arith.constant 0 : index
    %161 = vector.load %arg12[%c0_65, %c0_66, %c0_67] : memref<1x1x64xf32, #tpu.memory_space<vmem>>, vector<1x1x64xf32>
    %162 = vector.shape_cast %161 : vector<1x1x64xf32> to vector<1x64xf32>
    %163 = vector.broadcast %162 : vector<1x64xf32> to vector<17x64xf32>
    %164 = arith.addf %160, %163 : vector<17x64xf32>
    %cst_68 = arith.constant 5.000000e-01 : f32
    %165 = vector.broadcast %cst_68 : f32 to vector<17x64xf32>
    %166 = arith.mulf %165, %164 : vector<17x64xf32>
    %cst_69 = arith.constant 4.471500e-02 : f32
    %167 = vector.broadcast %cst_69 : f32 to vector<17x64xf32>
    %168 = arith.mulf %167, %164 : vector<17x64xf32>
    %169 = arith.mulf %168, %164 : vector<17x64xf32>
    %170 = arith.mulf %169, %164 : vector<17x64xf32>
    %171 = arith.addf %164, %170 : vector<17x64xf32>
    %cst_70 = arith.constant 0.797884583 : f32
    %172 = vector.broadcast %cst_70 : f32 to vector<17x64xf32>
    %173 = arith.mulf %172, %171 : vector<17x64xf32>
    %174 = math.tanh %173 : vector<17x64xf32>
    %cst_71 = arith.constant 1.000000e+00 : f32
    %175 = vector.broadcast %cst_71 : f32 to vector<17x64xf32>
    %176 = arith.addf %175, %174 : vector<17x64xf32>
    %177 = arith.mulf %166, %176 : vector<17x64xf32>
    %c0_72 = arith.constant 0 : index
    %c0_73 = arith.constant 0 : index
    %c0_74 = arith.constant 0 : index
    %178 = vector.load %arg13[%c0_72, %c0_73, %c0_74] : memref<1x64x16xf32, #tpu.memory_space<vmem>>, vector<1x64x16xf32>
    %179 = vector.shape_cast %178 : vector<1x64x16xf32> to vector<64x16xf32>
    %cst_75 = arith.constant dense<0.000000e+00> : vector<17x16xf32>
    %180 = tpu.matmul %177, %179, %cst_75 {dimension_numbers = #tpu.dot_dimension_numbers<[1], [0], [0], [1], [0, 0, 1, 1], [], []>} : vector<17x64xf32>, vector<64x16xf32>, vector<17x16xf32> -> vector<17x16xf32>
    %c0_76 = arith.constant 0 : index
    %c0_77 = arith.constant 0 : index
    %c0_78 = arith.constant 0 : index
    %181 = vector.load %arg14[%c0_76, %c0_77, %c0_78] : memref<1x1x16xf32, #tpu.memory_space<vmem>>, vector<1x1x16xf32>
    %182 = vector.shape_cast %181 : vector<1x1x16xf32> to vector<1x16xf32>
    %183 = vector.broadcast %182 : vector<1x16xf32> to vector<17x16xf32>
    %184 = arith.addf %180, %183 : vector<17x16xf32>
    %185 = arith.addf %131, %184 : vector<17x16xf32>
    %c0_79 = arith.constant 0 : index
    %c0_80 = arith.constant 0 : index
    %186 = vector.load %arg16[%c0_79, %c0_80] : memref<17x16xf32, #tpu.memory_space<vmem>>, vector<17x16xf32>
    tpu.vector_store %arg16[%c0_79, %c0_80], %185 {strides = array<i32>} : memref<17x16xf32, #tpu.memory_space<vmem>>, vector<17x16xf32>,
    %c1_i32 = arith.constant 1 : i32
    %187 = arith.cmpi eq, %arg1, %c1_i32 : i32
    %188 = arith.extui %187 : i1 to i32
    %c0_i32_81 = arith.constant 0 : i32
    %189 = arith.cmpi ne, %188, %c0_i32_81 : i32
    scf.if %189 {
      %c0_82 = arith.constant 0 : index
      %c0_83 = arith.constant 0 : index
      %c0_84 = arith.constant 0 : index
      %190 = vector.load %arg15[%c0_82, %c0_83, %c0_84] : memref<1x17x16xf32, #tpu.memory_space<vmem>>, vector<1x17x16xf32>
      %191 = vector.shape_cast %190 : vector<1x17x16xf32> to vector<17x16xf32>
      %192 = vector.shape_cast %185 : vector<17x16xf32> to vector<1x17x16xf32>
      tpu.vector_store %arg15[%c0_82, %c0_83, %c0_84], %192 {strides = array<i32>} : memref<1x17x16xf32, #tpu.memory_space<vmem>>, vector<1x17x16xf32>,
    } else {
    }
    return
  }
  func.func @transform_0(%arg0: i32, %arg1: i32) -> (i32, i32, i32) {
    %c0_i32 = arith.constant 0 : i32
    %c0_i32_0 = arith.constant 0 : i32
    %c0_i32_1 = arith.constant 0 : i32
    return %arg0, %c0_i32, %c0_i32_0 : i32, i32, i32
  }
  func.func @transform_1(%arg0: i32, %arg1: i32) -> (i32, i32, i32) {
    %c0_i32 = arith.constant 0 : i32
    %c0_i32_0 = arith.constant 0 : i32
    %c0_i32_1 = arith.constant 0 : i32
    return %arg1, %c0_i32, %c0_i32_0 : i32, i32, i32
  }
  func.func @transform_2(%arg0: i32, %arg1: i32) -> (i32, i32, i32) {
    %c0_i32 = arith.constant 0 : i32
    %c0_i32_0 = arith.constant 0 : i32
    %c0_i32_1 = arith.constant 0 : i32
    return %arg1, %c0_i32, %c0_i32_0 : i32, i32, i32
  }
  func.func @transform_3(%arg0: i32, %arg1: i32) -> (i32, i32, i32) {
    %c0_i32 = arith.constant 0 : i32
    %c0_i32_0 = arith.constant 0 : i32
    %c0_i32_1 = arith.constant 0 : i32
    return %arg1, %c0_i32, %c0_i32_0 : i32, i32, i32
  }
  func.func @transform_4(%arg0: i32, %arg1: i32) -> (i32, i32, i32) {
    %c0_i32 = arith.constant 0 : i32
    %c0_i32_0 = arith.constant 0 : i32
    %c0_i32_1 = arith.constant 0 : i32
    return %arg1, %c0_i32, %c0_i32_0 : i32, i32, i32
  }
  func.func @transform_5(%arg0: i32, %arg1: i32) -> (i32, i32, i32) {
    %c0_i32 = arith.constant 0 : i32
    %c0_i32_0 = arith.constant 0 : i32
    %c0_i32_1 = arith.constant 0 : i32
    return %arg1, %c0_i32, %c0_i32_0 : i32, i32, i32
  }
  func.func @transform_6(%arg0: i32, %arg1: i32) -> (i32, i32, i32) {
    %c0_i32 = arith.constant 0 : i32
    %c0_i32_0 = arith.constant 0 : i32
    %c0_i32_1 = arith.constant 0 : i32
    return %arg1, %c0_i32, %c0_i32_0 : i32, i32, i32
  }
  func.func @transform_7(%arg0: i32, %arg1: i32) -> (i32, i32, i32) {
    %c0_i32 = arith.constant 0 : i32
    %c0_i32_0 = arith.constant 0 : i32
    %c0_i32_1 = arith.constant 0 : i32
    return %arg1, %c0_i32, %c0_i32_0 : i32, i32, i32
  }
  func.func @transform_8(%arg0: i32, %arg1: i32) -> (i32, i32, i32) {
    %c0_i32 = arith.constant 0 : i32
    %c0_i32_0 = arith.constant 0 : i32
    %c0_i32_1 = arith.constant 0 : i32
    return %arg1, %c0_i32, %c0_i32_0 : i32, i32, i32
  }
  func.func @transform_9(%arg0: i32, %arg1: i32) -> (i32, i32, i32) {
    %c0_i32 = arith.constant 0 : i32
    %c0_i32_0 = arith.constant 0 : i32
    %c0_i32_1 = arith.constant 0 : i32
    return %arg1, %c0_i32, %c0_i32_0 : i32, i32, i32
  }
  func.func @transform_10(%arg0: i32, %arg1: i32) -> (i32, i32, i32) {
    %c0_i32 = arith.constant 0 : i32
    %c0_i32_0 = arith.constant 0 : i32
    %c0_i32_1 = arith.constant 0 : i32
    return %arg1, %c0_i32, %c0_i32_0 : i32, i32, i32
  }
  func.func @transform_11(%arg0: i32, %arg1: i32) -> (i32, i32, i32) {
    %c0_i32 = arith.constant 0 : i32
    %c0_i32_0 = arith.constant 0 : i32
    %c0_i32_1 = arith.constant 0 : i32
    return %arg1, %c0_i32, %c0_i32_0 : i32, i32, i32
  }
  func.func @transform_12(%arg0: i32, %arg1: i32) -> (i32, i32, i32) {
    %c0_i32 = arith.constant 0 : i32
    %c0_i32_0 = arith.constant 0 : i32
    %c0_i32_1 = arith.constant 0 : i32
    return %arg1, %c0_i32, %c0_i32_0 : i32, i32, i32
  }
  func.func @transform_13(%arg0: i32, %arg1: i32) -> (i32, i32, i32) {
    %c0_i32 = arith.constant 0 : i32
    %c0_i32_0 = arith.constant 0 : i32
    %c0_i32_1 = arith.constant 0 : i32
    return %arg0, %c0_i32, %c0_i32_0 : i32, i32, i32
  }
}

module attributes {stable_mosaic.version = 11 : i64} {
  func.func @kernel(%arg0: i32, %arg1: memref<1x17x16xf32, #tpu.memory_space<vmem>>, %arg2: memref<1x16xf32, #tpu.memory_space<vmem>>, %arg3: memref<1x16xf32, #tpu.memory_space<vmem>>, %arg4: memref<16x32xf32, #tpu.memory_space<vmem>>, %arg5: memref<1x32xf32, #tpu.memory_space<vmem>>, %arg6: memref<1x16x32xf32, #tpu.memory_space<vmem>>, %arg7: memref<1x16x1xf32, #tpu.memory_space<vmem>>) attributes {dimension_semantics = [#tpu.dimension_semantics<parallel>], iteration_bounds = array<i64: 2>, scalar_prefetch = 0 : i64, scratch_operands = 0 : i64, tpu.core_type = #tpu.core_type<tc>, window_params = [{transform_indices = @transform_0, window_bounds = array<i64: 1, 17, 16>}, {pipeline_mode = #tpu.pipeline_mode<synchronous>, transform_indices = @transform_1, window_bounds = array<i64: 1, 16>}, {pipeline_mode = #tpu.pipeline_mode<synchronous>, transform_indices = @transform_2, window_bounds = array<i64: 1, 16>}, {pipeline_mode = #tpu.pipeline_mode<synchronous>, transform_indices = @transform_3, window_bounds = array<i64: 16, 32>}, {pipeline_mode = #tpu.pipeline_mode<synchronous>, transform_indices = @transform_4, window_bounds = array<i64: 1, 32>}, {transform_indices = @transform_5, window_bounds = array<i64: 1, 16, 32>}, {transform_indices = @transform_6, window_bounds = array<i64: 1, 16, 1>}]} {
    %c0 = arith.constant 0 : index
    %c0_0 = arith.constant 0 : index
    %c0_1 = arith.constant 0 : index
    %0 = vector.load %arg1[%c0, %c0_0, %c0_1] : memref<1x17x16xf32, #tpu.memory_space<vmem>>, vector<1x17x16xf32>
    %1 = vector.shape_cast %0 : vector<1x17x16xf32> to vector<17x16xf32>
    %c0_2 = arith.constant 0 : index
    %c0_3 = arith.constant 0 : index
    %2 = vector.load %arg2[%c0_2, %c0_3] : memref<1x16xf32, #tpu.memory_space<vmem>>, vector<1x16xf32>
    %c0_4 = arith.constant 0 : index
    %c0_5 = arith.constant 0 : index
    %3 = vector.load %arg3[%c0_4, %c0_5] : memref<1x16xf32, #tpu.memory_space<vmem>>, vector<1x16xf32>
    %cst = arith.constant dense<0.000000e+00> : vector<17xf32>
    %4 = vector.multi_reduction <add>, %1, %cst [1] : vector<17x16xf32> to vector<17xf32>
    %5 = vector.shape_cast %4 : vector<17xf32> to vector<17x1xf32>
    %cst_6 = arith.constant 1.600000e+01 : f32
    %6 = vector.broadcast %cst_6 : f32 to vector<17x1xf32>
    %7 = arith.divf %5, %6 : vector<17x1xf32>
    %8 = vector.broadcast %7 : vector<17x1xf32> to vector<17x16xf32>
    %9 = arith.subf %1, %8 : vector<17x16xf32>
    %10 = arith.mulf %9, %9 : vector<17x16xf32>
    %cst_7 = arith.constant dense<0.000000e+00> : vector<17xf32>
    %11 = vector.multi_reduction <add>, %10, %cst_7 [1] : vector<17x16xf32> to vector<17xf32>
    %12 = vector.shape_cast %11 : vector<17xf32> to vector<17x1xf32>
    %cst_8 = arith.constant 1.600000e+01 : f32
    %13 = vector.broadcast %cst_8 : f32 to vector<17x1xf32>
    %14 = arith.divf %12, %13 : vector<17x1xf32>
    %15 = vector.broadcast %7 : vector<17x1xf32> to vector<17x16xf32>
    %16 = arith.subf %1, %15 : vector<17x16xf32>
    %cst_9 = arith.constant 9.99999974E-6 : f32
    %17 = vector.broadcast %cst_9 : f32 to vector<17x1xf32>
    %18 = arith.addf %14, %17 : vector<17x1xf32>
    %19 = math.rsqrt %18 : vector<17x1xf32>
    %20 = vector.broadcast %19 : vector<17x1xf32> to vector<17x16xf32>
    %21 = arith.mulf %16, %20 : vector<17x16xf32>
    %22 = vector.broadcast %2 : vector<1x16xf32> to vector<17x16xf32>
    %23 = arith.mulf %21, %22 : vector<17x16xf32>
    %24 = vector.broadcast %3 : vector<1x16xf32> to vector<17x16xf32>
    %25 = arith.addf %23, %24 : vector<17x16xf32>
    %c0_10 = arith.constant 0 : index
    %c0_11 = arith.constant 0 : index
    %26 = vector.load %arg4[%c0_10, %c0_11] : memref<16x32xf32, #tpu.memory_space<vmem>>, vector<16x32xf32>
    %cst_12 = arith.constant dense<0.000000e+00> : vector<17x32xf32>
    %27 = tpu.matmul %25, %26, %cst_12 {dimension_numbers = #tpu.dot_dimension_numbers<[1], [0], [0], [1], [0, 0, 1, 1], [], []>} : vector<17x16xf32>, vector<16x32xf32>, vector<17x32xf32> -> vector<17x32xf32>
    %c0_13 = arith.constant 0 : index
    %c0_14 = arith.constant 0 : index
    %28 = vector.load %arg5[%c0_13, %c0_14] : memref<1x32xf32, #tpu.memory_space<vmem>>, vector<1x32xf32>
    %29 = vector.broadcast %28 : vector<1x32xf32> to vector<17x32xf32>
    %30 = arith.addf %27, %29 : vector<17x32xf32>
    %31 = vector.extract_strided_slice %30 {offsets = [1, 0], sizes = [16, 32], strides = [1, 1]} : vector<17x32xf32> to vector<16x32xf32>
    %c0_15 = arith.constant 0 : index
    %c0_16 = arith.constant 0 : index
    %c0_17 = arith.constant 0 : index
    %32 = vector.load %arg6[%c0_15, %c0_16, %c0_17] : memref<1x16x32xf32, #tpu.memory_space<vmem>>, vector<1x16x32xf32>
    %33 = vector.shape_cast %32 : vector<1x16x32xf32> to vector<16x32xf32>
    %cst_18 = arith.constant dense<0.000000e+00> : vector<32xf32>
    %34 = vector.multi_reduction <add>, %33, %cst_18 [0] : vector<16x32xf32> to vector<32xf32>
    %35 = vector.shape_cast %34 : vector<32xf32> to vector<1x32xf32>
    %cst_19 = arith.constant 1.600000e+01 : f32
    %36 = vector.broadcast %cst_19 : f32 to vector<1x32xf32>
    %37 = arith.divf %35, %36 : vector<1x32xf32>
    %38 = vector.broadcast %37 : vector<1x32xf32> to vector<16x32xf32>
    %39 = arith.subf %33, %38 : vector<16x32xf32>
    %40 = arith.mulf %39, %39 : vector<16x32xf32>
    %cst_20 = arith.constant dense<0.000000e+00> : vector<32xf32>
    %41 = vector.multi_reduction <add>, %40, %cst_20 [0] : vector<16x32xf32> to vector<32xf32>
    %42 = vector.shape_cast %41 : vector<32xf32> to vector<1x32xf32>
    %cst_21 = arith.constant 1.500000e+01 : f32
    %43 = vector.broadcast %cst_21 : f32 to vector<1x32xf32>
    %44 = arith.divf %42, %43 : vector<1x32xf32>
    %45 = vector.broadcast %37 : vector<1x32xf32> to vector<16x32xf32>
    %46 = arith.subf %33, %45 : vector<16x32xf32>
    %cst_22 = arith.constant 9.99999997E-7 : f32
    %47 = vector.broadcast %cst_22 : f32 to vector<1x32xf32>
    %48 = arith.addf %44, %47 : vector<1x32xf32>
    %49 = math.rsqrt %48 : vector<1x32xf32>
    %50 = vector.broadcast %49 : vector<1x32xf32> to vector<16x32xf32>
    %51 = arith.mulf %46, %50 : vector<16x32xf32>
    %52 = arith.subf %31, %51 : vector<16x32xf32>
    %53 = arith.mulf %52, %52 : vector<16x32xf32>
    %cst_23 = arith.constant dense<0.000000e+00> : vector<16xf32>
    %54 = vector.multi_reduction <add>, %53, %cst_23 [1] : vector<16x32xf32> to vector<16xf32>
    %55 = vector.shape_cast %54 : vector<16xf32> to vector<16x1xf32>
    %cst_24 = arith.constant 3.200000e+01 : f32
    %56 = vector.broadcast %cst_24 : f32 to vector<16x1xf32>
    %57 = arith.divf %55, %56 : vector<16x1xf32>
    %c0_25 = arith.constant 0 : index
    %c0_26 = arith.constant 0 : index
    %c0_27 = arith.constant 0 : index
    %58 = vector.load %arg7[%c0_25, %c0_26, %c0_27] : memref<1x16x1xf32, #tpu.memory_space<vmem>>, vector<1x16x1xf32>
    %59 = vector.shape_cast %58 : vector<1x16x1xf32> to vector<16x1xf32>
    %60 = vector.shape_cast %57 : vector<16x1xf32> to vector<1x16x1xf32>
    tpu.vector_store %arg7[%c0_25, %c0_26, %c0_27], %60 {strides = array<i32>} : memref<1x16x1xf32, #tpu.memory_space<vmem>>, vector<1x16x1xf32>,
    return
  }
  func.func @transform_0(%arg0: i32) -> (i32, i32, i32) {
    %c0_i32 = arith.constant 0 : i32
    %c0_i32_0 = arith.constant 0 : i32
    %c0_i32_1 = arith.constant 0 : i32
    return %arg0, %c0_i32, %c0_i32_0 : i32, i32, i32
  }
  func.func @transform_1(%arg0: i32) -> (i32, i32) {
    %c0_i32 = arith.constant 0 : i32
    %c0_i32_0 = arith.constant 0 : i32
    %c0_i32_1 = arith.constant 0 : i32
    return %c0_i32, %c0_i32_0 : i32, i32
  }
  func.func @transform_2(%arg0: i32) -> (i32, i32) {
    %c0_i32 = arith.constant 0 : i32
    %c0_i32_0 = arith.constant 0 : i32
    %c0_i32_1 = arith.constant 0 : i32
    return %c0_i32, %c0_i32_0 : i32, i32
  }
  func.func @transform_3(%arg0: i32) -> (i32, i32) {
    %c0_i32 = arith.constant 0 : i32
    %c0_i32_0 = arith.constant 0 : i32
    %c0_i32_1 = arith.constant 0 : i32
    return %c0_i32, %c0_i32_0 : i32, i32
  }
  func.func @transform_4(%arg0: i32) -> (i32, i32) {
    %c0_i32 = arith.constant 0 : i32
    %c0_i32_0 = arith.constant 0 : i32
    %c0_i32_1 = arith.constant 0 : i32
    return %c0_i32, %c0_i32_0 : i32, i32
  }
  func.func @transform_5(%arg0: i32) -> (i32, i32, i32) {
    %c0_i32 = arith.constant 0 : i32
    %c0_i32_0 = arith.constant 0 : i32
    %c0_i32_1 = arith.constant 0 : i32
    return %arg0, %c0_i32, %c0_i32_0 : i32, i32, i32
  }
  func.func @transform_6(%arg0: i32) -> (i32, i32, i32) {
    %c0_i32 = arith.constant 0 : i32
    %c0_i32_0 = arith.constant 0 : i32
    %c0_i32_1 = arith.constant 0 : i32
    return %arg0, %c0_i32, %c0_i32_0 : i32, i32, i32
  }
}

</mosaic_0001>

<bundles_post_ra>
// kernel: run.5
= control target key start
LH: loop header
LB: loop body
LE: loop exit
PB: predicated region body
PF: predicated region fallthrough
CT: control target
= control target key end

     0   :  { %s449_s15 = smov 0   ;;  %s493_s0 = inlined_call_operand.vmem [shape: f32[2,16,48], index: 0, kind: input, shape index: {}]   ;;  %s494_s1 = inlined_call_operand.vmem [shape: f32[48,32], index: 1, kind: input, shape index: {}]   ;;  %s495_s2 = inlined_call_operand.vmem [shape: f32[1,32], index: 2, kind: input, shape index: {}]   ;;  %s496_s3 = inlined_call_operand.vmem [shape: f32[16,32], index: 3, kind: input, shape index: {}]   ;;  %s497_s4 = inlined_call_operand.vmem [shape: f32[2,16,32], index: 4, kind: output, shape index: {}]  }
   0x1 LB: > { %s357_s16 = sadd.s32 4294967295, %s422_s15   ;;  %p361_p0 = scmp.ge.s32.totalorder %s422_s15, 1  ;;  %s422_s15 = sphi %s449_s15, %s14_s15  }
   0x2   : > { %p162_p1 = scmp.lt.s32.totalorder %s422_s15, 3 }
   0x4   : > { %p163_p2 = pnand %p361_p0, %p162_p1 }
   0x5   : > { %v200_v0 = vld [vmem:[%s494_s1] sm:$0xff] (!%p163_p2)  ;;  %v201_v1 = vld [vmem:[%s494_s1 + $0x8] sm:$0xff] (!%p163_p2)  ;;  %v202_v2 = vld [vmem:[%s494_s1 + $0x10] sm:$0xff] (!%p163_p2)  ;;  %p188_p3 = scmp.lt.s32.totalorder (!%p163_p2), %s357_s16, 1  ;;  %vm213_vm0 = vcmask (!%p163_p2), 392192   ;;  %vm299_vm1 = vcmask (!%p163_p2), 261120  }
   0x6   : > { %166 = sbr.rel (%p163_p2) target bundleno = 238 (0xee), region = 36  ;;  %v396_v3 = vpack.c.bf16 (!%p163_p2), %v201_v1, %v200_v0  ;;  %v203_v4 = vld [vmem:[%s494_s1 + $0x18] sm:$0xff] (!%p163_p2)  ;;  %v204_v6 = vld [vmem:[%s494_s1 + $0x20] sm:$0xff] (!%p163_p2)  ;;  %v205_v7 = vld [vmem:[%s494_s1 + $0x28] sm:$0xff] (!%p163_p2) }
   0x7   : > { %v400_v5 = vpack.c.bf16 (!%p163_p2), %v203_v4, %v202_v2  ;;  %v404_v8 = vpack.c.bf16 (!%p163_p2), %v205_v7, %v204_v6  ;;  %v366_v11 = vld [vmem:[%s495_s2] ss:$0 sm:$0xff] (!%p163_p2)  ;;  %v296_v13 = vld [vmem:[%s496_s3 + $0x8] sm:$0xff] (!%p163_p2) }
   0x8   : > { %397 = vmatprep.subr.bf16.mxu0 (!%p163_p2), %v396_v3  ;;  %v295_v16 = vld [vmem:[%s496_s3] sm:$0xff] (!%p163_p2) }
   0x9   : > { %399 = vmatpush3.bf16.msra.mxu0 (!%p163_p2), %v396_v3 }
   0xa   : > { %401 = vmatprep.subr.bf16.mxu0 (!%p163_p2), %v400_v5 }
   0xd   : > { %s499_s16 = smov (!%p188_p3, %s357_s16), 1  ;;  %403 = vmatpush3.bf16.msra.mxu0 %v400_v5 }
   0xe   : > { %s371_s29 = sshll.u32 %s499_s16, 4  ;;  %405 = vmatprep.subr.bf16.mxu0 %v404_v8 }
   0xf   : > { %s192_s6 = scalar_lea.vmem %s493_s0, %s371_s29  ;;  %s197_s16 = scalar_lea.vmem %s497_s4, %s371_s29 }
  0x10   : > { %v198_v9 = vld [vmem:[%s192_s6] sm:$0xff]  ;;  %v199_v10 = vld [vmem:[%s192_s6 + $0x8] sm:$0xff] }
  0x11   : > { %393 = vmatprep.mubr.msk.f32.mxu0 %vm213_vm0, %v198_v9  ;;  %407 = vmatpush3.bf16.msra.mxu0 %v404_v8 }
  0x14   : > { %394 = vmatmul.mubr.msk.f32.vlgmr.msra.gmra.mrb[0].mxu0 %vm213_vm0, %v199_v10 }
  0xe7   : > { %v395_v12 = vpop.f32.mrb[0].mxu0 }
  0xe8   : > { %v292_v14 = vadd.f32 %v395_v12, %v366_v11  ;;  %v286_v15 = vpop.f32.mrb[1].mxu0 }
  0xe9   : > { %v287_v17 = vadd.f32 %v366_v11, %v286_v15 }
  0xea   : > { %v298_v18 = vadd.f32 %v296_v13, %v292_v14 }
  0xeb   : > { %v297_v19 = vadd.f32 %v295_v16, %v287_v17 }
  0xec   : > { %301 = vst.msk [vmem:[%s197_s16 + $0x8] sm:$0xff] %vm299_vm1, %v298_v18 }
  0xed   : > { %300 = vst.msk [vmem:[%s197_s16] sm:$0xff] %vm299_vm1, %v297_v19 }
  0xee PF: > { %s14_s15 = sadd.s32 1, %s422_s15  }
  0xef   : > { %p11_p4 = scmp.ge.s32.totalorder %s14_s15, 4  }
  0xf1   :  { %13 = sbr.rel (!%p11_p4) target bundleno = 1 (0x1), region = 66 }

// kernel: run.6
= control target key start
LH: loop header
LB: loop body
LE: loop exit
PB: predicated region body
PF: predicated region fallthrough
CT: control target
= control target key end

     0   :  { %s2735_s18 = smov 0   ;;  %s2737_s19 = smov 0   ;;  %s3045_s0 = inlined_call_operand.vmem [shape: f32[2,5,32], index: 0, kind: input, shape index: {}]   ;;  %s3046_s1 = inlined_call_operand.vmem [shape: f32[6,1,32], index: 1, kind: input, shape index: {}]   ;;  %s3047_s2 = inlined_call_operand.vmem [shape: f32[6,1,32], index: 2, kind: input, shape index: {}]   ;;  %s3048_s3 = inlined_call_operand.vmem [shape: f32[6,32,96], index: 3, kind: input, shape index: {}]   ;;  %s3049_s4 = inlined_call_operand.vmem [shape: f32[6,1,96], index: 4, kind: input, shape index: {}]   ;;  %s3050_s5 = inlined_call_operand.vmem [shape: f32[6,32,32], index: 5, kind: input, shape index: {}]   ;;  %s3051_s6 = inlined_call_operand.vmem [shape: f32[6,1,32], index: 6, kind: input, shape index: {}]   ;;  %s3052_s7 = inlined_call_operand.vmem [shape: f32[6,1,32], index: 7, kind: input, shape index: {}]   ;;  %s3053_s8 = inlined_call_operand.vmem [shape: f32[6,1,32], index: 8, kind: input, shape index: {}]   ;;  %s3054_s9 = inlined_call_operand.vmem [shape: f32[6,32,128], index: 9, kind: input, shape index: {}]   ;;  %s3055_s10 = inlined_call_operand.vmem [shape: f32[6,1,128], index: 10, kind: input, shape index: {}]   ;;  %s3056_s11 = inlined_call_operand.vmem [shape: f32[6,128,32], index: 11, kind: input, shape index: {}]   ;;  %s3057_s12 = inlined_call_operand.vmem [shape: f32[6,1,32], index: 12, kind: input, shape index: {}]   ;;  %s3058_s13 = inlined_call_operand.vmem [shape: f32[1,32], index: 13, kind: input, shape index: {}]   ;;  %s3059_s14 = inlined_call_operand.vmem [shape: f32[1,32], index: 14, kind: input, shape index: {}]   ;;  %s3060_s15 = inlined_call_operand.vmem [shape: f32[2,6,5,32], index: 15, kind: output, shape index: {}]  }
   0x1   :  { %3065 = sst [smem:[#allocation9_spill]] %s3045_s0  ;;  %s2739_s20 = smov 0  }
   0x2   :  { %3066 = sst [smem:[#allocation10_spill]] %s3047_s2  ;;  %s2741_s21 = smov 0  }
   0x3   :  { %3067 = sst [smem:[#allocation11_spill]] %s3048_s3  ;;  %s2743_s22 = smov 0  }
   0x4   :  { %3068 = sst [smem:[#allocation12_spill]] %s3050_s5 }
   0x5   :  { %3069 = sst [smem:[#allocation13_spill]] %s3054_s9 }
   0x6   :  { %3070 = sst [smem:[#allocation14_spill]] %s3058_s13 }
   0x7   :  { %3071 = sst [smem:[#allocation15_spill]] %s3059_s14 }
   0x8   :  { %3072 = sst [smem:[#allocation16_spill]] %s3060_s15 }
   0x9 LB: > { %3073 = sst [smem:[#allocation3_spill]] %s2623_s18  ;;  %s34_s23 = sadd.s32 1, %s2631_s20  ;;  %s2639_s22 = sphi %s2743_s22, %s25_s22   ;;  %s2635_s21 = sphi %s2741_s21, %s3101_s21   ;;  %s2631_s20 = sphi %s2739_s20, %s3100_s20   ;;  %s2627_s19 = sphi %s2737_s19, %s3099_s19   ;;  %s2623_s18 = sphi %s2735_s18, %s3098_s18  }
   0xa   : > { %3074 = sst [smem:[#allocation4_spill]] %s2631_s20  ;;  %s37_s24 = sadd.s32 1, %s2635_s21 }
   0xb   : > { %3075 = sst [smem:[#allocation5_spill]] %s2635_s21  ;;  %p35_p0 = scmp.ge.s32.totalorder %s34_s23, 6 }
   0xc   : > { %3076 = sst [smem:[#allocation6_spill]] %s2639_s22  ;;  %p2266_p1 = scmp.ge.s32.totalorder %s2639_s22, 1 }
   0xd   : > { %p554_p2 = scmp.lt.s32.totalorder %s2639_s22, 13  ;;  %s3103_s23 = smov (%p35_p0, %s34_s23), 0 }
   0xe   : > { %3077 = sst [smem:[#allocation7_spill]] %s3103_s23  ;;  %s3105_s24 = smov (!%p35_p0, %s37_s24), %s2635_s21 }
   0xf   : > { %p555_p3 = pnand %p2266_p1, %p554_p2  ;;  %p39_p4 = scmp.ge.s32.totalorder %s3105_s24, 2 }
  0x10   : > { %p648_p5 = scmp.lt.s32.totalorder (!%p555_p3), %s2627_s19, 1  ;;  %p652_p6 = scmp.lt.s32.totalorder (!%p555_p3), %s2623_s18, 5 }
  0x11   : > { %s3107_s24 = smov (%p39_p4, %s3105_s24), 0  ;;  %558 = sbr.rel (%p555_p3) target bundleno = 4550 (0x11c6), region = 80 }
  0x12   : > { %3078 = sst [smem:[#allocation8_spill]] %s3107_s24  ;;  %s3079_s0 = sld [smem:[#allocation9_spill]] (!%p555_p3) }
  0x13   : > { %s3081_s3 = sld [smem:[#allocation11_spill]] (!%p555_p3)  ;;  %s3082_s5 = sld [smem:[#allocation12_spill]] (!%p555_p3) }
  0x14   : > { %s3083_s9 = sld [smem:[#allocation13_spill]] (!%p555_p3) }
  0x18   : > { %s3109_s19 = smov (!%p648_p5, %s2627_s19), 1 }
  0x19   : > { %s2769_s25 = scalar_select %p652_p6, %s2623_s18, 5 }
  0x1a   : > { %s2267_s26 = sshll.u32 %s3109_s19, 3  ;;  %s2522_s27 = smul.u32 6, %s3109_s19 }
  0x1b   : > { %s651_s30 = scalar_lea.vmem %s3079_s0, %s2267_s26  ;;  %s2314_s22 = sshll.u32 %s2769_s25, 5 }
  0x1c   : > { %s2786_s18 = scalar_lea.vmem %s3081_s3, %s2314_s22  ;;  %s2795_s0 = scalar_lea.vmem %s3082_s5, %s2314_s22 }
  0x1d   : > { %s2812_s19 = scalar_lea.vmem %s3083_s9, %s2314_s22  ;;  %s687_s28 = scalar_lea.vmem %s3055_s10, %s2769_s25 }
  0x1e   : > { %s2317_s5 = sshll.u32 %s2769_s25, 7  ;;  %s695_s21 = scalar_lea.vmem %s3057_s12, %s2769_s25 }
  0x1f   : > { %s2826_s24 = scalar_lea.vmem %s3056_s11, %s2317_s5  ;;  %s701_s13 = sadd.s32 %s2522_s27, %s2769_s25 }
  0x20   : > { %s2276_s14 = sshll.u32 %s701_s13, 3  ;;  %s3084_s22 = sld [smem:[#allocation16_spill]] }
  0x21   : > { %s3085_s9 = sld [smem:[#allocation3_spill]] }
  0x26   : > { %s2832_s15 = scalar_lea.vmem %s3084_s22, %s2276_s14 }
  0x27   : > { %p2277_p7 = scmp.ne.s32.totalorder %s3085_s9, 0 }
  0x28   : > { %v708_v0 = vld [vmem:[%s651_s30] sm:$0x1f] (!%p2277_p7)  ;;  %vm709_vm0 = vcmask (!%p2277_p7), 258048  }
  0x29   : > { %707 = sbr.rel (%p2277_p7) target bundleno = 48 (0x30), region = 84  ;;  %710 = vst.msk [vmem:[#allocation2] sm:$0x1f] (!%p2277_p7), %vm709_vm0, %v708_v0 }
  0x30 PF: > { %v2835_v1 = vld [vmem:[#allocation2] sm:$0x1f]  ;;  %vm714_vm1 = vcmask 258048   ;;  %v744_v9 = vld [vmem:[%s2786_s18 + $0x8] sm:$0xff]  ;;  %v745_v10 = vld [vmem:[%s2786_s18 + $0x10] sm:$0xff]  ;;  %v2641_v11 = vmov 0.0|0.0   ;;  %s3086_s9 = scalar_lea.vmem %s3046_s1, %s2769_s25  ;;  %s3089_s17 = scalar_lea.vmem %s3049_s4, %s2769_s25 }
  0x31   : > { %v715_v2 = vsel %vm714_vm1, %v2835_v1, 0.0  ;;  %v743_v8 = vld [vmem:[%s2786_s18] sm:$0xff]  ;;  %2486 = vmatprep.subr.bf16.mxu0 %v2641_v11  ;;  %v746_v13 = vld [vmem:[%s2786_s18 + $0x18] sm:$0xff]  ;;  %vm2642_vm2 = vmmov 0   ;;  %v2643_v14 = vmov 0.0   ;;  %s3087_s30 = sld [smem:[#allocation10_spill]] }
  0x32   : > { %716 = vadd.xlane.f32.xlu0 %v715_v2  ;;  %v2487_v12 = vpack.c.bf16 %v744_v9, %v743_v8  ;;  %2377 = vmatprep.mubr.msk.f32.mxu0 %vm2642_vm2, %v2643_v14  ;;  %v2490_v15 = vpack.c.bf16 %v746_v13, %v745_v10  ;;  %v2278_v20 = vld [vmem:[%s3086_s9] ss:$0 sm:$0xff]  ;;  %vm754_vm3 = vcmask 261120   ;;  %s2644_s20 = smov 64   ;;  %s2645_s23 = smov 96   ;;  %vm835_vm4 = vcmask 64512  }
  0x33   : > { %2405 = vmatprep.subr.mxu1 %v2643_v14  ;;  %2407 = vmatprep.mubr.msk.f32.mxu1 %vm2642_vm2, %v2643_v14  ;;  %v2280_v25 = vld [vmem:[%s3089_s17] ss:$0 sm:$0xff]  ;;  %s2646_s13 = smov 88   ;;  %vm929_vm5 = vcmask 1044480   ;;  %vm911_vm6 = vcmask 36864   ;;  %s2647_s14 = smov 120  }
  0x34   : > { %2488 = vmatpush3.bf16.msra.mxu0 %v2487_v12  ;;  %vm925_vm7 = vcmask 39936   ;;  %v828_v45 = vld [vmem:[%s2795_s0] sm:$0xff]  ;;  %s2648_s2 = smov 56   ;;  %s2649_s22 = smov 80   ;;  %v829_v0 = vld [vmem:[%s2795_s0 + $0x8] sm:$0xff] }
  0x35   : > { %2489 = vmatprep.subr.bf16.mxu0 %v2641_v11  ;;  %2406 = vmatpush3.msra.mxu1 %v828_v45  ;;  %s2650_s3 = smov 112   ;;  %s2651_s5 = smov 48  }
  0x36   : > { %2415 = vmatprep.subr.mxu1 %v2643_v14  ;;  %s2652_s9 = smov 72   ;;  %s2653_s18 = smov 104  }
  0x37   : > { %s3088_s29 = scalar_lea.vmem %s3087_s30, %s2769_s25  ;;  %s2654_s27 = smov 40  }
  0x38   : > { %2491 = vmatpush3.bf16.msra.mxu0 %v2490_v15  ;;  %v2279_v22 = vld [vmem:[%s3088_s29] ss:$0 sm:$0xff]  ;;  %s3090_s29 = scalar_lea.vmem %s3051_s6, %s2769_s25 }
  0x39   : > { %2380 = vmatprep.subr.mxu0 %v2643_v14 }
  0xbf   : > { %v717_v3 = vpop.xlane.xlu0 %716 }
  0xc0   : > { %v719_v4 = vmul.f32 0.03125, %v717_v3 }
  0xc2   : > { %v720_v5 = vsub.f32 %v2835_v1, %v719_v4 }
  0xc4   : > { %v721_v6 = vmul.f32 %v720_v5, %v720_v5 }
  0xc6   : > { %v722_v7 = vsel %vm714_vm1, %v721_v6, 0.0 }
  0xc7   : > { %723 = vadd.xlane.f32.xlu0 %v722_v7 }
 0x154   : > { %v724_v16 = vpop.xlane.xlu0 %723 }
 0x155   : > { %v725_v17 = vmul.f32 0.03125, %v724_v16 }
 0x157   : > { %v726_v18 = vadd.f32 1e-05, %v725_v17 }
 0x159   : > { %2577 = vrsqrt.f32 %v726_v18 }
 0x163   : > { %v2578_v19 = vpop.eup %2577 }
 0x164   : > { %v728_v21 = vmul.f32 %v2578_v19, %v720_v5 }
 0x166   : > { %v735_v23 = vmul.f32 %v2278_v20, %v728_v21 }
 0x168   : > { %v742_v24 = vadd.f32 %v2279_v22, %v735_v23 }
 0x16a   : > { %2378 = vmatmul.mubr.msk.f32.vlgmr.msra.gmra.mrb[0].mxu0 %vm754_vm3, %v742_v24 }
 0x16b   : > { %2382 = vmatprep.mubr.msk.f32.mxu0 %vm2642_vm2, %v2643_v14 }
 0x23d   : > { %v824_v26 = vpop.f32.mrb[0].mxu0 }
 0x23e   : > { %v2871_v27 = vadd.f32 %v2280_v25, %v824_v26  ;;  %v2379_v28 = vpop.f32.mrb[1].mxu0  ;;  %v830_v25 = vld [vmem:[%s2795_s0 + $0x10] sm:$0xff] }
 0x240   : > { %923 = vrot.lane.b32.xlu0 %v2871_v27, %s2644_s20  ;;  %833 = vrot.lane.b32.xlu1 %v2871_v27, %s2645_s23  ;;  %s3092_s23 = scalar_lea.vmem %s3053_s8, %s2769_s25 }
 0x244   : > { %1004 = vrot.lane.b32.xlu0 %v2871_v27, %s2646_s13 }
 0x2b2   : > { %v834_v29 = vpop.permute.xlu1 %833  ;;  %v924_v30 = vpop.permute.xlu0 %923 }
 0x2b3   : > { %2381 = vmatpush3.xpose.msk.msra.mxu0 %vm835_vm4, %v834_v29 }
 0x2b4   : > { %2385 = vmatprep.subr.mxu0 %v2643_v14 }
 0x2b6   : > { %2383 = vmatmul.mubr.msk.f32.vlgmr.msra.gmra.mrb[2].mxu0 %vm835_vm4, %v2871_v27  ;;  %v1005_v40 = vpop.permute.xlu0 %1004 }
 0x2b7   : > { %2386 = vmatpush3.msk.msra.mxu0 %vm929_vm5, %v924_v30  ;;  %2387 = vmatprep.mubr.msk.f32.mxu0 %vm2642_vm2, %v2643_v14 }
 0x2b8   : > { %2390 = vmatprep.subr.mxu0 %v2643_v14 }
 0x389   : > { %v906_v31 = vpop.f32.mrb[2].mxu0 }
 0x38a   : > { %v910_v32 = vmul.f32 0.35355338, %v906_v31  ;;  %v2384_v33 = vpop.f32.mrb[3].mxu0 }
 0x38c   : > { %v912_v34 = vsel %vm911_vm6, %v910_v32, -inf }
 0x38d   : > { %913 = vmax.xlane.f32.xlu1 %v912_v34 }
 0x41a   : > { %v914_v35 = vpop.xlane.xlu1 %913 }
 0x41b   : > { %v915_v36 = vsub.f32 %v910_v32, %v914_v35 }
 0x41d   : > { %v916_v37 = vmul.f32 1.442695, %v915_v36 }
 0x41f   : > { %2579 = vpow2.f32 %v916_v37 }
 0x429   : > { %v2580_v38 = vpop.eup %2579 }
 0x42a   : > { %v918_v39 = vsel %vm911_vm6, %v2580_v38, 0.0 }
 0x42b   : > { %919 = vadd.xlane.f32.xlu0 %v918_v39  ;;  %v831_v39 = vld [vmem:[%s2795_s0 + $0x18] sm:$0xff] }
 0x441   : > { %1002 = vrot.lane.b32.xlu0 %v2871_v27, %s2647_s14 }
 0x4b8   : > { %v920_v41 = vpop.xlane.xlu0 %919 }
 0x4b9   : > { %2581 = vrcp.f32 %v920_v41 }
 0x4bc   : > { %v1003_v44 = vpop.permute.xlu0 %1002 }
 0x4c3   : > { %v2582_v42 = vpop.eup %2581 }
 0x4c4   : > { %v922_v43 = vmul.f32 %v2582_v42, %v2580_v38 }
 0x4c6   : > { %2388 = vmatmul.mubr.msk.f32.vlgmr.msra.gmra.mrb[4].mxu0 %vm925_vm7, %v922_v43 }
 0x4c7   : > { %2391 = vmatpush3.xpose.msk.msra.mxu0 %vm835_vm4, %v1005_v40  ;;  %2392 = vmatprep.mubr.msk.f32.mxu0 %vm2642_vm2, %v2643_v14 }
 0x4c8   : > { %2395 = vmatprep.subr.mxu0 %v2643_v14 }
 0x4ca   : > { %2393 = vmatmul.mubr.msk.f32.vlgmr.msra.gmra.mrb[6].mxu0 %vm835_vm4, %v1003_v44 }
 0x4cb   : > { %2397 = vmatprep.mubr.msk.f32.mxu0 %vm2642_vm2, %v2643_v14 }
 0x599   : > { %v998_v46 = vpop.f32.mrb[4].mxu0 }
 0x59a   : > { %v2389_v47 = vpop.f32.mrb[5].mxu0  ;;  %2408 = vmatmul.mubr.msk.f32.vlgmr.msra.gmra.mrb[0].mxu1 %vm835_vm4, %v998_v46 }
 0x59b   : > { %2417 = vmatprep.mubr.msk.f32.mxu1 %vm2642_vm2, %v2643_v14 }
 0x59d   : > { %v1076_v48 = vpop.f32.mrb[6].mxu0 }
 0x59e   : > { %v1080_v49 = vmul.f32 0.35355338, %v1076_v48  ;;  %v2394_v50 = vpop.f32.mrb[7].mxu0 }
 0x59f   : > { %v2302_v50 = vld [vmem:[%s3090_s29] ss:$0 sm:$0xff] }
 0x5a0   : > { %v1081_v51 = vsel %vm911_vm6, %v1080_v49, -inf }
 0x5a1   : > { %1082 = vmax.xlane.f32.xlu1 %v1081_v51 }
 0x5b2   : > { %1092 = vrot.lane.b32.xlu1 %v2871_v27, %s2648_s2 }
 0x5b6   : > { %1317 = vrot.lane.b32.xlu1 %v2871_v27, %s2649_s22 }
 0x5ba   : > { %1315 = vrot.lane.b32.xlu1 %v2871_v27, %s2650_s3 }
 0x62e   : > { %v1083_v52 = vpop.xlane.xlu1 %1082 }
 0x62f   : > { %v1084_v53 = vsub.f32 %v1080_v49, %v1083_v52 }
 0x631   : > { %v1085_v54 = vmul.f32 1.442695, %v1084_v53 }
 0x632   : > { %v1093_v55 = vpop.permute.xlu1 %1092 }
 0x633   : > { %2583 = vpow2.f32 %v1085_v54  ;;  %2396 = vmatpush3.msk.msra.mxu0 %vm929_vm5, %v1093_v55 }
 0x634   : > { %2400 = vmatprep.subr.mxu0 %v2643_v14 }
 0x636   : > { %v1318_v2 = vpop.permute.xlu1 %1317 }
 0x63a   : > { %v1316_v5 = vpop.permute.xlu1 %1315 }
 0x63d   : > { %v2584_v56 = vpop.eup %2583 }
 0x63e   : > { %v1087_v57 = vsel %vm911_vm6, %v2584_v56, 0.0 }
 0x63f   : > { %1088 = vadd.xlane.f32.xlu0 %v1087_v57 }
 0x655   : > { %1405 = vrot.lane.b32.xlu0 %v2871_v27, %s2651_s5 }
 0x659   : > { %1558 = vrot.lane.b32.xlu0 %v2871_v27, %s2652_s9 }
 0x66d   : > { %v1311_v58 = vpop.f32.mrb[0].mxu1 }
 0x66e   : > { %v2409_v59 = vpop.f32.mrb[1].mxu1 }
 0x66f   : > { %v1836_v59 = vld [vmem:[%s2812_s19 + $0x8] sm:$0xff] }
 0x6cc   : > { %v1089_v60 = vpop.xlane.xlu0 %1088 }
 0x6cd   : > { %2585 = vrcp.f32 %v1089_v60  ;;  %v1837_v60 = vld [vmem:[%s2812_s19 + $0x10] sm:$0xff] }
 0x6d0   : > { %v1406_v61 = vpop.permute.xlu0 %1405 }
 0x6d1   : > { %2416 = vmatpush3.msk.msra.mxu1 %vm929_vm5, %v1406_v61  ;;  %v1838_v61 = vld [vmem:[%s2812_s19 + $0x18] sm:$0xff] }
 0x6d2   : > { %2425 = vmatprep.subr.mxu1 %v2643_v14 }
 0x6d4   : > { %v1559_v20 = vpop.permute.xlu0 %1558 }
 0x6d7   : > { %v2586_v62 = vpop.eup %2585 }
 0x6d8   : > { %v1091_v63 = vmul.f32 %v2586_v62, %v2584_v56  ;;  %v2496_v62 = vpack.c.bf16 %v1838_v61, %v1837_v60 }
 0x6da   : > { %2398 = vmatmul.mubr.msk.f32.vlgmr.msra.gmra.mrb[8].mxu0 %vm925_vm7, %v1091_v63  ;;  %v1928_v63 = vld [vmem:[%s2826_s24] sm:$0xff] }
 0x6db   : > { %2401 = vmatpush3.msra.mxu0 %v829_v0  ;;  %2402 = vmatprep.mubr.msk.f32.mxu0 %vm2642_vm2, %v2643_v14  ;;  %v1929_v0 = vld [vmem:[%s2826_s24 + $0x8] sm:$0xff] }
 0x6dc   : > { %2410 = vmatprep.subr.mxu0 %v2643_v14 }
 0x7ad   : > { %v1165_v3 = vpop.f32.mrb[8].mxu0 }
 0x7ae   : > { %v2399_v4 = vpop.f32.mrb[9].mxu0  ;;  %2403 = vmatmul.mubr.msk.f32.vlgmr.msra.gmra.mrb[10].mxu0 %vm835_vm4, %v1165_v3 }
 0x7af   : > { %2411 = vmatpush3.xpose.msk.msra.mxu0 %vm835_vm4, %v1318_v2  ;;  %2412 = vmatprep.mubr.msk.f32.mxu0 %vm2642_vm2, %v2643_v14  ;;  %v2499_v2 = vpack.c.bf16 %v1929_v0, %v1928_v63 }
 0x7b0   : > { %2420 = vmatprep.subr.mxu0 %v2643_v14 }
 0x7b2   : > { %2413 = vmatmul.mubr.msk.f32.vlgmr.msra.gmra.mrb[12].mxu0 %vm835_vm4, %v1316_v5 }
 0x7b3   : > { %2422 = vmatprep.mubr.msk.f32.mxu0 %vm2642_vm2, %v2643_v14  ;;  %2421 = vmatpush3.msra.mxu0 %v830_v25 }
 0x7b4   : > { %2430 = vmatprep.subr.mxu0 %v2643_v14 }
 0x881   : > { %v1238_v6 = vpop.f32.mrb[10].mxu0 }
 0x882   : > { %v1312_v7 = vadd.f32 %v1311_v58, %v1238_v6  ;;  %v2404_v8 = vpop.f32.mrb[11].mxu0  ;;  %v1835_v58 = vld [vmem:[%s2812_s19] sm:$0xff]  ;;  %s3091_s19 = scalar_lea.vmem %s3052_s7, %s2769_s25 }
 0x885   : > { %v1389_v9 = vpop.f32.mrb[12].mxu0 }
 0x886   : > { %v1393_v10 = vmul.f32 0.35355338, %v1389_v9  ;;  %v2414_v12 = vpop.f32.mrb[13].mxu0  ;;  %v2304_v9 = vld [vmem:[%s3092_s23] ss:$0 sm:$0xff] }
 0x888   : > { %v1394_v13 = vsel %vm911_vm6, %v1393_v10, -inf }
 0x889   : > { %1395 = vmax.xlane.f32.xlu1 %v1394_v13  ;;  %v1930_v13 = vld [vmem:[%s2826_s24 + $0x10] sm:$0xff] }
 0x916   : > { %v1396_v15 = vpop.xlane.xlu1 %1395 }
 0x917   : > { %v1397_v16 = vsub.f32 %v1393_v10, %v1396_v15  ;;  %v1931_v15 = vld [vmem:[%s2826_s24 + $0x18] sm:$0xff] }
 0x919   : > { %v1398_v17 = vmul.f32 1.442695, %v1397_v16  ;;  %v2502_v16 = vpack.c.bf16 %v1931_v15, %v1930_v13 }
 0x91b   : > { %2587 = vpow2.f32 %v1398_v17  ;;  %v1932_v17 = vld [vmem:[%s2826_s24 + $0x20] sm:$0xff] }
 0x925   : > { %v2588_v18 = vpop.eup %2587 }
 0x926   : > { %v1400_v19 = vsel %vm911_vm6, %v2588_v18, 0.0 }
 0x927   : > { %1401 = vadd.xlane.f32.xlu0 %v1400_v19 }
 0x93d   : > { %1556 = vrot.lane.b32.xlu0 %v2871_v27, %s2653_s18 }
 0x9b4   : > { %v1402_v21 = vpop.xlane.xlu0 %1401 }
 0x9b5   : > { %2589 = vrcp.f32 %v1402_v21  ;;  %v1935_v21 = vld [vmem:[%s2826_s24 + $0x38] sm:$0xff] }
 0x9b8   : > { %v1557_v24 = vpop.permute.xlu0 %1556 }
 0x9bf   : > { %v2590_v22 = vpop.eup %2589 }
 0x9c0   : > { %v1404_v23 = vmul.f32 %v2590_v22, %v2588_v18  ;;  %v1933_v18 = vld [vmem:[%s2826_s24 + $0x28] sm:$0xff] }
 0x9c1   : > { %v2505_v19 = vpack.c.bf16 %v1933_v18, %v1932_v17 }
 0x9c2   : > { %2418 = vmatmul.mubr.msk.f32.vlgmr.msra.gmra.mrb[2].mxu1 %vm925_vm7, %v1404_v23  ;;  %v1936_v23 = vld [vmem:[%s2826_s24 + $0x40] sm:$0xff] }
 0x9c3   : > { %2426 = vmatpush3.xpose.msk.msra.mxu1 %vm835_vm4, %v1559_v20  ;;  %2427 = vmatprep.mubr.msk.f32.mxu1 %vm2642_vm2, %v2643_v14  ;;  %v1934_v20 = vld [vmem:[%s2826_s24 + $0x30] sm:$0xff] }
 0x9c4   : > { %2435 = vmatprep.subr.mxu1 %v2643_v14  ;;  %v2508_v22 = vpack.c.bf16 %v1935_v21, %v1934_v20 }
 0x9c6   : > { %2428 = vmatmul.mubr.msk.f32.vlgmr.msra.gmra.mrb[4].mxu1 %vm835_vm4, %v1557_v24  ;;  %v1937_v24 = vld [vmem:[%s2826_s24 + $0x48] sm:$0xff] }
 0x9c7   : > { %2437 = vmatprep.mubr.msk.f32.mxu1 %vm2642_vm2, %v2643_v14  ;;  %2436 = vmatpush3.msra.mxu1 %v831_v39  ;;  %v2511_v25 = vpack.c.bf16 %v1937_v24, %v1936_v23 }
 0x9c8   : > { %2498 = vmatprep.subr.bf16.mxu1 %v2641_v11 }
 0xa95   : > { %v1478_v26 = vpop.f32.mrb[2].mxu1 }
 0xa96   : > { %v2419_v28 = vpop.f32.mrb[3].mxu1  ;;  %2423 = vmatmul.mubr.msk.f32.vlgmr.msra.gmra.mrb[14].mxu0 %vm835_vm4, %v1478_v26  ;;  %v1938_v26 = vld [vmem:[%s2826_s24 + $0x50] sm:$0xff] }
 0xa97   : > { %2432 = vmatprep.mubr.msk.f32.mxu0 %vm2642_vm2, %v2643_v14  ;;  %v1939_v28 = vld [vmem:[%s2826_s24 + $0x58] sm:$0xff] }
 0xa99   : > { %v1630_v29 = vpop.f32.mrb[4].mxu1 }
 0xa9a   : > { %v1634_v30 = vmul.f32 0.35355338, %v1630_v29  ;;  %v2429_v31 = vpop.f32.mrb[5].mxu1  ;;  %v2514_v29 = vpack.c.bf16 %v1939_v28, %v1938_v26 }
 0xa9b   : > { %v1941_v31 = vld [vmem:[%s2826_s24 + $0x68] sm:$0xff] }
 0xa9c   : > { %v1635_v32 = vsel %vm911_vm6, %v1634_v30, -inf }
 0xa9d   : > { %1636 = vmax.xlane.f32.xlu1 %v1635_v32 }
 0xaae   : > { %1646 = vrot.lane.b32.xlu1 %v2871_v27, %s2654_s27 }
 0xb2a   : > { %v1637_v33 = vpop.xlane.xlu1 %1636 }
 0xb2b   : > { %v1638_v34 = vsub.f32 %v1634_v30, %v1637_v33  ;;  %v1940_v30 = vld [vmem:[%s2826_s24 + $0x60] sm:$0xff]  ;;  %v1942_v33 = vld [vmem:[%s2826_s24 + $0x70] sm:$0xff] }
 0xb2c   : > { %v2517_v32 = vpack.c.bf16 %v1941_v31, %v1940_v30 }
 0xb2d   : > { %v1639_v35 = vmul.f32 1.442695, %v1638_v34  ;;  %v1943_v34 = vld [vmem:[%s2826_s24 + $0x78] sm:$0xff] }
 0xb2e   : > { %v1647_v36 = vpop.permute.xlu1 %1646 }
 0xb2f   : > { %2591 = vpow2.f32 %v1639_v35  ;;  %2431 = vmatpush3.msk.msra.mxu0 %vm929_vm5, %v1647_v36  ;;  %v2520_v35 = vpack.c.bf16 %v1943_v34, %v1942_v33  ;;  %v2305_v36 = vld [vmem:[%s687_s28] ss:$0 sm:$0xff]  ;;  %s3093_s28 = sld [smem:[#allocation3_spill]] }
 0xb30   : > { %2492 = vmatprep.subr.bf16.mxu0 %v2641_v11 }
 0xb35   : > { %p2308_p8 = scmp.ge.s32.totalorder %s3093_s28, 5 }
 0xb39   : > { %v2592_v37 = vpop.eup %2591 }
 0xb3a   : > { %v1641_v38 = vsel %vm911_vm6, %v2592_v37, 0.0 }
 0xb3b   : > { %1642 = vadd.xlane.f32.xlu0 %v1641_v38 }
 0xb69   : > { %v1551_v40 = vpop.f32.mrb[14].mxu0 }
 0xb6a   : > { %v1555_v27 = vadd.f32 %v1551_v40, %v1312_v7  ;;  %v2424_v41 = vpop.f32.mrb[15].mxu0  ;;  %v2303_v7 = vld [vmem:[%s3091_s19] ss:$0 sm:$0xff] }
 0xbc8   : > { %v1643_v42 = vpop.xlane.xlu0 %1642 }
 0xbc9   : > { %2593 = vrcp.f32 %v1643_v42 }
 0xbd3   : > { %v2594_v43 = vpop.eup %2593 }
 0xbd4   : > { %v1645_v44 = vmul.f32 %v2594_v43, %v2592_v37 }
 0xbd6   : > { %2433 = vmatmul.mubr.msk.f32.vlgmr.msra.gmra.mrb[16].mxu0 %vm925_vm7, %v1645_v44 }
 0xbd7   : > { %2448 = vmatprep.mubr.msk.f32.mxu0 %vm2642_vm2, %v2643_v14 }
 0xca9   : > { %v1719_v45 = vpop.f32.mrb[16].mxu0 }
 0xcaa   : > { %v2434_v46 = vpop.f32.mrb[17].mxu0  ;;  %2438 = vmatmul.mubr.msk.f32.vlgmr.msra.gmra.mrb[6].mxu1 %vm835_vm4, %v1719_v45 }
 0xcab   : > { %2483 = vmatprep.mubr.msk.f32.mxu1 %vm2642_vm2, %v2643_v14  ;;  %2500 = vmatpush3.bf16.msra.mxu1 %v2499_v2 }
 0xcac   : > { %2501 = vmatprep.subr.bf16.mxu1 %v2641_v11 }
 0xcaf   : > { %2503 = vmatpush3.bf16.msra.mxu1 %v2502_v16 }
 0xcb0   : > { %2504 = vmatprep.subr.bf16.mxu1 %v2641_v11 }
 0xcb3   : > { %2506 = vmatpush3.bf16.msra.mxu1 %v2505_v19 }
 0xcb4   : > { %2507 = vmatprep.subr.bf16.mxu1 %v2641_v11 }
 0xcb7   : > { %2509 = vmatpush3.bf16.msra.mxu1 %v2508_v22 }
 0xcb8   : > { %2510 = vmatprep.subr.bf16.mxu1 %v2641_v11 }
 0xcbb   : > { %2512 = vmatpush3.bf16.msra.mxu1 %v2511_v25 }
 0xcbc   : > { %2513 = vmatprep.subr.bf16.mxu1 %v2641_v11 }
 0xcbf   : > { %2515 = vmatpush3.bf16.msra.mxu1 %v2514_v29 }
 0xcc0   : > { %2516 = vmatprep.subr.bf16.mxu1 %v2641_v11 }
 0xcc3   : > { %2518 = vmatpush3.bf16.msra.mxu1 %v2517_v32 }
 0xcc4   : > { %2519 = vmatprep.subr.bf16.mxu1 %v2641_v11 }
 0xcc7   : > { %2521 = vmatpush3.bf16.msra.mxu1 %v2520_v35 }
 0xd7d   : > { %v1792_v47 = vpop.f32.mrb[6].mxu1 }
 0xd7e   : > { %v1796_v48 = vadd.f32 %v1792_v47, %v1555_v27  ;;  %v2439_v49 = vpop.f32.mrb[7].mxu1  ;;  %v2307_v47 = vld [vmem:[%s695_s21] ss:$0 sm:$0xff] }
 0xd80   : > { %v1797_v51 = vadd.f32 %v1796_v48, %v2835_v1  ;;  %v2493_v1 = vpack.c.bf16 %v1836_v59, %v1835_v58 }
 0xd82   : > { %v2959_v52 = vadd.f32 %v2302_v50, %v1797_v51  ;;  %2494 = vmatpush3.bf16.msra.mxu0 %v2493_v1 }
 0xd83   : > { %2495 = vmatprep.subr.bf16.mxu0 %v2641_v11 }
 0xd84   : > { %v1808_v53 = vsel %vm714_vm1, %v2959_v52, 0.0 }
 0xd85   : > { %1809 = vadd.xlane.f32.xlu1 %v1808_v53 }
 0xd86   : > { %2497 = vmatpush3.bf16.msra.mxu0 %v2496_v62 }
 0xe12   : > { %v1810_v14 = vpop.xlane.xlu1 %1809 }
 0xe13   : > { %v1811_v54 = vmul.f32 0.03125, %v1810_v14 }
 0xe15   : > { %v1812_v55 = vsub.f32 %v2959_v52, %v1811_v54 }
 0xe17   : > { %v1813_v56 = vmul.f32 %v1812_v55, %v1812_v55 }
 0xe19   : > { %v1814_v57 = vsel %vm714_vm1, %v1813_v56, 0.0 }
 0xe1a   : > { %1815 = vadd.xlane.f32.xlu0 %v1814_v57 }
 0xea7   : > { %v1816_v3 = vpop.xlane.xlu0 %1815 }
 0xea8   : > { %v1817_v4 = vmul.f32 0.03125, %v1816_v3 }
 0xeaa   : > { %v1818_v5 = vadd.f32 1e-05, %v1817_v4 }
 0xeac   : > { %2595 = vrsqrt.f32 %v1818_v5 }
 0xeb6   : > { %v2596_v6 = vpop.eup %2595 }
 0xeb7   : > { %v1820_v8 = vmul.f32 %v2596_v6, %v1812_v55 }
 0xeb9   : > { %v1827_v10 = vmul.f32 %v2303_v7, %v1820_v8 }
 0xebb   : > { %v1834_v12 = vadd.f32 %v2304_v9, %v1827_v10 }
 0xebd   : > { %2449 = vmatmul.mubr.msk.f32.vlgmr.msra.gmra.mrb[18].mxu0 %vm754_vm3, %v1834_v12 }
 0xf90   : > { %v1915_v37 = vpop.f32.mrb[18].mxu0 }
 0xf91   : > { %v1916_v38 = vadd.f32 %v2305_v36, %v1915_v37  ;;  %v2450_v39 = vpop.f32.mrb[19].mxu0 }
 0xf93   : > { %v1920_v40 = vmul.f32 0.044715, %v1916_v38  ;;  %v1919_v45 = vmul.f32 0.5, %v1916_v38 }
 0xf95   : > { %v1921_v27 = vmul.f32 %v1920_v40, %v1916_v38 }
 0xf97   : > { %v1922_v41 = vmul.f32 %v1921_v27, %v1916_v38 }
 0xf99   : > { %v1923_v42 = vadd.f32 %v1922_v41, %v1916_v38 }
 0xf9b   : > { %v1924_v43 = vmul.f32 0.7978846, %v1923_v42 }
 0xf9d   : > { %2597 = vtanh.f32 %v1924_v43 }
 0xfa7   : > { %v2598_v44 = vpop.eup %2597 }
 0xfa8   : > { %v1926_v46 = vadd.f32 1.0, %v2598_v44 }
 0xfaa   : > { %v1927_v11 = vmul.f32 %v1926_v46, %v1919_v45 }
 0xfac   : > { %2484 = vmatmul.mubr.f32.vlgmr.msra.gmra.mrb[8].mxu1 %v1927_v11 }
0x107e   : > { %2026 = sbr.rel (%p2308_p8) target bundleno = 4229 (0x1085), region = 88 }
0x107f   : > { %v2017_v48 = vpop.f32.mrb[8].mxu1 }
0x1080   : > { %v2018_v49 = vadd.f32 %v2307_v47, %v2017_v48  ;;  %v2485_v50 = vpop.f32.mrb[9].mxu1 }
0x1082   : > { %v2021_v51 = vadd.f32 %v2018_v49, %v2959_v52 }
0x1084   : > { %2022 = vst.msk [vmem:[#allocation2] sm:$0x1f] %vm714_vm1, %v2021_v51  ;;  %2027 = vst.msk [vmem:[%s2832_s15] sm:$0x1f] (!%p2308_p8), %vm714_vm1, %v2021_v51 }
0x1085 PF: > { %s3094_s22 = sld [smem:[#allocation3_spill]] }
0x108b   : > { %p2309_p9 = scmp.ne.s32.totalorder %s3094_s22, 5 }
0x108c   : > { %v2034_v53 = vsel (!%p2309_p9), %vm714_vm1, %v2021_v51, 0.0  ;;  %s3095_s3 = sld [smem:[#allocation14_spill]] (!%p2309_p9)  ;;  %s3096_s18 = sld [smem:[#allocation15_spill]] (!%p2309_p9) }
0x108d   : > { %2031 = sbr.rel (%p2309_p9) target bundleno = 4550 (0x11c6), region = 92  ;;  %2035 = vadd.xlane.f32.xlu0 (!%p2309_p9), %v2034_v53 }
0x1092   : > { %v2310_v60 = vld [vmem:[%s3095_s3] ss:$0 sm:$0xff] (!%p2309_p9) }
0x1093   : > { %v2311_v62 = vld [vmem:[%s3096_s18] ss:$0 sm:$0xff] (!%p2309_p9) }
0x111a   : > { %v2036_v14 = vpop.xlane.xlu0 %2035 }
0x111b   : > { %v2037_v54 = vmul.f32 0.03125, %v2036_v14 }
0x111d   : > { %v2038_v55 = vsub.f32 %v2021_v51, %v2037_v54 }
0x111f   : > { %v2039_v52 = vmul.f32 %v2038_v55, %v2038_v55 }
0x1121   : > { %v2040_v56 = vsel %vm714_vm1, %v2039_v52, 0.0 }
0x1122   : > { %2041 = vadd.xlane.f32.xlu0 %v2040_v56 }
0x11af   : > { %v2042_v57 = vpop.xlane.xlu0 %2041 }
0x11b0   : > { %v2043_v58 = vmul.f32 0.03125, %v2042_v57 }
0x11b2   : > { %v2044_v59 = vadd.f32 1e-05, %v2043_v58 }
0x11b4   : > { %2599 = vrsqrt.f32 %v2044_v59 }
0x11be   : > { %v2600_v1 = vpop.eup %2599 }
0x11bf   : > { %v2046_v61 = vmul.f32 %v2600_v1, %v2038_v55 }
0x11c1   : > { %v2053_v63 = vmul.f32 %v2310_v60, %v2046_v61 }
0x11c3   : > { %v2060_v0 = vadd.f32 %v2311_v62, %v2053_v63 }
0x11c5   : > { %2061 = vst.msk [vmem:[%s2832_s15] sm:$0x1f] %vm714_vm1, %v2060_v0 }
0x11c6 PF: > { %s3097_s27 = sld [smem:[#allocation6_spill]]  ;;  %s3098_s18 = sld [smem:[#allocation4_spill]] }
0x11c7   : > { %s3099_s19 = sld [smem:[#allocation5_spill]]  ;;  %s3100_s20 = sld [smem:[#allocation7_spill]] }
0x11c8   : > { %s3101_s21 = sld [smem:[#allocation8_spill]] }
0x11cc   : > { %s25_s22 = sadd.s32 1, %s3097_s27  }
0x11cd   : > { %p22_p10 = scmp.ge.s32.totalorder %s25_s22, 14  }
0x11cf   :  { %24 = sbr.rel (!%p22_p10) target bundleno = 9 (0x9), region = 158 }

// kernel: run.7
= control target key start
LH: loop header
LB: loop body
LE: loop exit
PB: predicated region body
PF: predicated region fallthrough
CT: control target
= control target key end

     0   :  { %s2117_s25 = smov 0   ;;  %s2484_s0 = inlined_call_operand.vmem [shape: f32[2,6,5,32], index: 0, kind: input, shape index: {}]   ;;  %s2485_s1 = inlined_call_operand.vmem [shape: f32[6,1,32], index: 1, kind: input, shape index: {}]   ;;  %s2486_s2 = inlined_call_operand.vmem [shape: f32[6,1,32], index: 2, kind: input, shape index: {}]   ;;  %s2487_s3 = inlined_call_operand.vmem [shape: f32[2,3,32,32], index: 3, kind: input, shape index: {}]   ;;  %s2488_s4 = inlined_call_operand.vmem [shape: f32[2,1,32], index: 4, kind: input, shape index: {}]   ;;  %s2489_s5 = inlined_call_operand.vmem [shape: f32[2,32,64], index: 5, kind: input, shape index: {}]   ;;  %s2490_s6 = inlined_call_operand.vmem [shape: f32[2,1,64], index: 6, kind: input, shape index: {}]   ;;  %s2491_s7 = inlined_call_operand.vmem [shape: f32[2,64,32], index: 7, kind: input, shape index: {}]   ;;  %s2492_s8 = inlined_call_operand.vmem [shape: f32[2,1,32], index: 8, kind: input, shape index: {}]   ;;  %s2493_s9 = inlined_call_operand.vmem [shape: f32[1,32], index: 9, kind: input, shape index: {}]   ;;  %s2494_s10 = inlined_call_operand.vmem [shape: f32[1,32], index: 10, kind: input, shape index: {}]   ;;  %s2495_s11 = inlined_call_operand.vmem [shape: f32[32,16], index: 11, kind: input, shape index: {}]   ;;  %s2496_s12 = inlined_call_operand.vmem [shape: f32[1,16], index: 12, kind: input, shape index: {}]   ;;  %s2497_s13 = inlined_call_operand.vmem [shape: f32[2,5,16], index: 13, kind: output, shape index: {}]  }
   0x1 LB: > { %s1652_s26 = sadd.s32 4294967295, %s2042_s25   ;;  %p1656_p0 = scmp.ge.s32.totalorder %s2042_s25, 1  ;;  %s2042_s25 = sphi %s2117_s25, %s23_s25  }
   0x2   : > { %p387_p1 = scmp.lt.s32.totalorder %s2042_s25, 3 }
   0x4   : > { %p388_p2 = pnand %p1656_p0, %p387_p1 }
   0x5   : > { %p430_p3 = scmp.lt.s32.totalorder (!%p388_p2), %s1652_s26, 1  ;;  %vm445_vm0 = vcmask (!%p388_p2), 258048   ;;  %vm464_vm1 = vcmask (!%p388_p2), 1044480   ;;  %v630_v48 = vld [vmem:[%s2487_s3] sm:$0xff] (!%p388_p2)  ;;  %v631_v49 = vld [vmem:[%s2487_s3 + $0x8] sm:$0xff] (!%p388_p2)  ;;  %v632_v50 = vld [vmem:[%s2487_s3 + $0x10] sm:$0xff] (!%p388_p2) }
   0x6   : > { %391 = sbr.rel (%p388_p2) target bundleno = 1821 (0x71d), region = 72  ;;  %v2044_v51 = vmov (!%p388_p2), 0.0|0.0   ;;  %v1929_v52 = vpack.c.bf16 (!%p388_p2), %v631_v49, %v630_v48  ;;  %v633_v53 = vld [vmem:[%s2487_s3 + $0x18] sm:$0xff] (!%p388_p2)  ;;  %vm2045_vm2 = vmmov (!%p388_p2), 0   ;;  %v2046_v54 = vmov (!%p388_p2), 0.0   ;;  %v867_v56 = vld [vmem:[%s2489_s5] sm:$0xff] (!%p388_p2) }
   0x7   : > { %1928 = vmatprep.subr.bf16.mxu0 (!%p388_p2), %v2044_v51  ;;  %1799 = vmatprep.mubr.msk.f32.mxu0 (!%p388_p2), %vm2045_vm2, %v2046_v54  ;;  %v1932_v55 = vpack.c.bf16 (!%p388_p2), %v633_v53, %v632_v50  ;;  %v868_v57 = vld [vmem:[%s2489_s5 + $0x8] sm:$0xff] (!%p388_p2)  ;;  %vm634_vm3 = vcmask (!%p388_p2), 261120   ;;  %v1691_v48 = vld [vmem:[%s2487_s3 + $0x70] sm:$0xff] (!%p388_p2)  ;;  %v1692_v49 = vld [vmem:[%s2487_s3 + $0x78] sm:$0xff] (!%p388_p2)  ;;  %vm975_vm4 = vcmask (!%p388_p2), 523264   ;;  %vm1597_vm5 = vcmask (!%p388_p2), 126976  }
   0x8   : > { %1946 = vmatprep.subr.bf16.mxu1 (!%p388_p2), %v2044_v51  ;;  %1832 = vmatprep.mubr.msk.f32.mxu1 (!%p388_p2), %vm2045_vm2, %v2046_v54  ;;  %v1947_v58 = vpack.c.bf16 (!%p388_p2), %v868_v57, %v867_v56  ;;  %v1968_v53 = vpack.c.bf16 (!%p388_p2), %v1692_v49, %v1691_v48  ;;  %v1694_v56 = vld [vmem:[%s2487_s3 + $0x80] sm:$0xff] (!%p388_p2) }
   0x9   : > { %1930 = vmatpush3.bf16.msra.mxu0 (!%p388_p2), %v1929_v52  ;;  %v1662_v52 = vld [vmem:[%s2485_s1 + $0x3] ss:$0 sm:$0xff] (!%p388_p2) }
   0xa   : > { %1931 = vmatprep.subr.bf16.mxu0 (!%p388_p2), %v2044_v51  ;;  %1948 = vmatpush3.bf16.msra.mxu1 (!%p388_p2), %v1947_v58  ;;  %v1668_v57 = vld [vmem:[%s2486_s2 + $0x3] ss:$0 sm:$0xff] (!%p388_p2) }
   0xb   : > { %1949 = vmatprep.subr.bf16.mxu1 (!%p388_p2), %v2044_v51 }
   0xd   : > { %s2499_s26 = smov (!%p430_p3, %s1652_s26), 1  ;;  %1933 = vmatpush3.bf16.msra.mxu0 %v1932_v55 }
   0xe   : > { %s2016_s27 = smul.u32 48, %s2499_s26  ;;  %1934 = vmatprep.subr.bf16.mxu0 %v2044_v51  ;;  %s1658_s23 = sshll.u32 %s2499_s26, 3 }
  0x10   : > { %s434_s30 = scalar_lea.vmem %s2484_s0, %s2016_s27 }
  0x11   : > { %v439_v0 = vld [vmem:[%s434_s30] sm:$0x1f]  ;;  %v441_v1 = vld [vmem:[%s434_s30 + $0x10] sm:$0x1f]  ;;  %v440_v2 = vld [vmem:[%s434_s30 + $0x8] sm:$0x1f] }
  0x12   : > { %v446_v3 = vsel %vm445_vm0, %v439_v0, 0.0  ;;  %v452_v4 = vsel %vm445_vm0, %v441_v1, 0.0  ;;  %v442_v5 = vld [vmem:[%s434_s30 + $0x18] sm:$0x1f]  ;;  %v449_v6 = vsel %vm445_vm0, %v440_v2, 0.0 }
  0x13   : > { %447 = vadd.xlane.f32.xlu0 %v446_v3  ;;  %453 = vadd.xlane.f32.xlu1 %v452_v4  ;;  %v455_v7 = vsel %vm445_vm0, %v442_v5, 0.0  ;;  %v443_v8 = vld [vmem:[%s434_s30 + $0x20] sm:$0x1f]  ;;  %v444_v9 = vld [vmem:[%s434_s30 + $0x28] sm:$0x1f]  ;;  %s438_s30 = scalar_lea.vmem %s2497_s13, %s1658_s23 }
  0x14   : > { %v458_v10 = vsel %vm445_vm0, %v443_v8, 0.0  ;;  %v461_v11 = vsel %vm445_vm0, %v444_v9, 0.0 }
  0x17   : > { %450 = vadd.xlane.f32.xlu0 %v449_v6  ;;  %456 = vadd.xlane.f32.xlu1 %v455_v7 }
  0x1b   : > { %459 = vadd.xlane.f32.xlu0 %v458_v10  ;;  %462 = vadd.xlane.f32.xlu1 %v461_v11 }
  0xa0   : > { %v448_v12 = vpop.xlane.xlu0 %447  ;;  %v454_v13 = vpop.xlane.xlu1 %453 }
  0xa1   : > { %v465_v16 = vsel %vm464_vm1, %v448_v12, 0.0  ;;  %v468_v19 = vsel %vm464_vm1, %v454_v13, 0.0 }
  0xa4   : > { %v451_v14 = vpop.xlane.xlu0 %450  ;;  %v457_v15 = vpop.xlane.xlu1 %456 }
  0xa5   : > { %v466_v17 = vsel %vm464_vm1, %v451_v14, 0.0  ;;  %v470_v20 = vsel %vm464_vm1, %v457_v15, 0.0  ;;  %v1659_v15 = vld [vmem:[%s2485_s1] ss:$0 sm:$0xff] }
  0xa6   : > { %v467_v18 = vadd.f32 %v466_v17, %v465_v16  ;;  %v1673_v17 = vld [vmem:[%s2487_s3 + $0x20] sm:$0xff] }
  0xa8   : > { %v469_v21 = vadd.f32 %v468_v19, %v467_v18  ;;  %v460_v22 = vpop.xlane.xlu0 %459  ;;  %v463_v23 = vpop.xlane.xlu1 %462  ;;  %v1674_v18 = vld [vmem:[%s2487_s3 + $0x28] sm:$0xff]  ;;  %v1665_v19 = vld [vmem:[%s2486_s2] ss:$0 sm:$0xff] }
  0xa9   : > { %v472_v24 = vsel %vm464_vm1, %v460_v22, 0.0  ;;  %v474_v26 = vsel %vm464_vm1, %v463_v23, 0.0  ;;  %v1675_v23 = vld [vmem:[%s2487_s3 + $0x30] sm:$0xff] }
  0xaa   : > { %v471_v25 = vadd.f32 %v470_v20, %v469_v21  ;;  %v1935_v21 = vpack.c.bf16 %v1674_v18, %v1673_v17 }
  0xac   : > { %v473_v27 = vadd.f32 %v472_v24, %v471_v25  ;;  %v1676_v24 = vld [vmem:[%s2487_s3 + $0x38] sm:$0xff] }
  0xae   : > { %v475_v28 = vadd.f32 %v474_v26, %v473_v27  ;;  %v1660_v26 = vld [vmem:[%s2485_s1 + $0x1] ss:$0 sm:$0xff]  ;;  %v1938_v27 = vpack.c.bf16 %v1676_v24, %v1675_v23  ;;  %v961_v23 = vld [vmem:[%s2491_s7 + $0x8] sm:$0xff] }
  0xb0   : > { %v476_v29 = vmul.f32 0.0052083335, %v475_v28 }
  0xb2   : > { %v2143_v30 = vsub.f32 %v440_v2, %v476_v29  ;;  %v2145_v31 = vsub.f32 %v439_v0, %v476_v29  ;;  %v2147_v32 = vsub.f32 %v442_v5, %v476_v29  ;;  %v2149_v33 = vsub.f32 %v441_v1, %v476_v29 }
  0xb3   : > { %v2155_v36 = vsub.f32 %v444_v9, %v476_v29  ;;  %v2157_v37 = vsub.f32 %v443_v8, %v476_v29  ;;  %v1678_v29 = vld [vmem:[%s2487_s3 + $0x40] sm:$0xff] }
  0xb4   : > { %v484_v34 = vmul.f32 %v2143_v30, %v2143_v30  ;;  %v483_v35 = vmul.f32 %v2145_v31, %v2145_v31  ;;  %v486_v40 = vmul.f32 %v2147_v32, %v2147_v32  ;;  %v485_v41 = vmul.f32 %v2149_v33, %v2149_v33 }
  0xb5   : > { %v488_v44 = vmul.f32 %v2155_v36, %v2155_v36  ;;  %v487_v45 = vmul.f32 %v2157_v37, %v2157_v37 }
  0xb6   : > { %v492_v38 = vsel %vm445_vm0, %v484_v34, 0.0  ;;  %v489_v39 = vsel %vm445_vm0, %v483_v35, 0.0  ;;  %v498_v42 = vsel %vm445_vm0, %v486_v40, 0.0  ;;  %v495_v43 = vsel %vm445_vm0, %v485_v41, 0.0  ;;  %v1661_v41 = vld [vmem:[%s2485_s1 + $0x2] ss:$0 sm:$0xff] }
  0xb7   : > { %493 = vadd.xlane.f32.xlu1 %v492_v38  ;;  %490 = vadd.xlane.f32.xlu0 %v489_v39  ;;  %v504_v46 = vsel %vm445_vm0, %v488_v44, 0.0  ;;  %v501_v47 = vsel %vm445_vm0, %v487_v45, 0.0  ;;  %v1680_v38 = vld [vmem:[%s2487_s3 + $0x50] sm:$0xff]  ;;  %v1681_v39 = vld [vmem:[%s2487_s3 + $0x58] sm:$0xff]  ;;  %v1689_v44 = vld [vmem:[%s2487_s3 + $0x60] sm:$0xff] }
  0xb8   : > { %v1667_v45 = vld [vmem:[%s2486_s2 + $0x2] ss:$0 sm:$0xff] }
  0xbb   : > { %499 = vadd.xlane.f32.xlu1 %v498_v42  ;;  %496 = vadd.xlane.f32.xlu0 %v495_v43  ;;  %v1944_v42 = vpack.c.bf16 %v1681_v39, %v1680_v38  ;;  %v1683_v38 = vld [vmem:[%s2490_s6] ss:$0 sm:$0xff] }
  0xbf   : > { %505 = vadd.xlane.f32.xlu1 %v504_v46  ;;  %502 = vadd.xlane.f32.xlu0 %v501_v47 }
 0x144   : > { %v494_v59 = vpop.xlane.xlu1 %493  ;;  %v491_v60 = vpop.xlane.xlu0 %490 }
 0x145   : > { %v508_v61 = vsel %vm464_vm1, %v494_v59, 0.0  ;;  %v507_v62 = vsel %vm464_vm1, %v491_v60, 0.0  ;;  %v1696_v60 = vld [vmem:[%s2487_s3 + $0x90] sm:$0xff] }
 0x146   : > { %v509_v63 = vadd.f32 %v508_v61, %v507_v62  ;;  %v1697_v61 = vld [vmem:[%s2487_s3 + $0x98] sm:$0xff] }
 0x148   : > { %v500_v0 = vpop.xlane.xlu1 %499  ;;  %v497_v1 = vpop.xlane.xlu0 %496 }
 0x149   : > { %v510_v2 = vsel %vm464_vm1, %v497_v1, 0.0  ;;  %v512_v4 = vsel %vm464_vm1, %v500_v0, 0.0  ;;  %v1974_v0 = vpack.c.bf16 %v1697_v61, %v1696_v60  ;;  %v1712_v60 = vld [vmem:[%s2491_s7 + $0x48] sm:$0xff] }
 0x14a   : > { %v511_v3 = vadd.f32 %v510_v2, %v509_v63  ;;  %v1663_v63 = vld [vmem:[%s2485_s1 + $0x4] ss:$0 sm:$0xff] }
 0x14b   : > { %v1699_v2 = vld [vmem:[%s2487_s3 + $0xa0] sm:$0xff] }
 0x14c   : > { %v506_v5 = vpop.xlane.xlu1 %505  ;;  %v513_v6 = vadd.f32 %v512_v4, %v511_v3  ;;  %v503_v7 = vpop.xlane.xlu0 %502  ;;  %v1669_v3 = vld [vmem:[%s2486_s2 + $0x4] ss:$0 sm:$0xff] }
 0x14d   : > { %v514_v8 = vsel %vm464_vm1, %v503_v7, 0.0  ;;  %v516_v10 = vsel %vm464_vm1, %v506_v5, 0.0  ;;  %v1702_v7 = vld [vmem:[%s2487_s3 + $0xb8] sm:$0xff] }
 0x14e   : > { %v515_v9 = vadd.f32 %v514_v8, %v513_v6  ;;  %v1701_v6 = vld [vmem:[%s2487_s3 + $0xb0] sm:$0xff] }
 0x150   : > { %v517_v11 = vadd.f32 %v516_v10, %v515_v9  ;;  %v1664_v9 = vld [vmem:[%s2485_s1 + $0x5] ss:$0 sm:$0xff]  ;;  %v1980_v10 = vpack.c.bf16 %v1702_v7, %v1701_v6  ;;  %v1709_v7 = vld [vmem:[%s2490_s6 + $0x1] ss:$0 sm:$0xff] }
 0x152   : > { %v518_v12 = vmul.f32 0.0052083335, %v517_v11 }
 0x154   : > { %v519_v13 = vadd.f32 1e-05, %v518_v12  ;;  %v1670_v12 = vld [vmem:[%s2486_s2 + $0x5] ss:$0 sm:$0xff] }
 0x156   : > { %2028 = vrsqrt.f32 %v519_v13  ;;  %v869_v13 = vld [vmem:[%s2489_s5 + $0x10] sm:$0xff] }
 0x160   : > { %v2206_v14 = vpop.eup %2028 }
 0x161   : > { %v521_v16 = vmul.f32 %v2206_v14, %v2145_v31  ;;  %v522_v25 = vmul.f32 %v2206_v14, %v2143_v30  ;;  %v1679_v30 = vld [vmem:[%s2487_s3 + $0x48] sm:$0xff]  ;;  %v1666_v31 = vld [vmem:[%s2486_s2 + $0x1] ss:$0 sm:$0xff]  ;;  %v523_v40 = vmul.f32 %v2206_v14, %v2149_v33  ;;  %v524_v50 = vmul.f32 %v2206_v14, %v2147_v32 }
 0x162   : > { %v1941_v34 = vpack.c.bf16 %v1679_v30, %v1678_v29  ;;  %v1690_v33 = vld [vmem:[%s2487_s3 + $0x68] sm:$0xff]  ;;  %v525_v62 = vmul.f32 %v2206_v14, %v2157_v37  ;;  %v526_v8 = vmul.f32 %v2206_v14, %v2155_v36  ;;  %v870_v14 = vld [vmem:[%s2489_s5 + $0x18] sm:$0xff] }
 0x163   : > { %v569_v20 = vmul.f32 %v1659_v15, %v521_v16  ;;  %v570_v28 = vmul.f32 %v1660_v26, %v522_v25  ;;  %v571_v43 = vmul.f32 %v1661_v41, %v523_v40  ;;  %v1965_v46 = vpack.c.bf16 %v1690_v33, %v1689_v44  ;;  %v1695_v32 = vld [vmem:[%s2487_s3 + $0x88] sm:$0xff]  ;;  %v1671_v16 = vld [vmem:[%s2488_s4] ss:$0 sm:$0xff]  ;;  %v962_v25 = vld [vmem:[%s2491_s7 + $0x10] sm:$0xff] }
 0x164   : > { %v572_v55 = vmul.f32 %v1662_v52, %v524_v50  ;;  %v1971_v58 = vpack.c.bf16 %v1695_v32, %v1694_v56  ;;  %v573_v1 = vmul.f32 %v1663_v63, %v525_v62  ;;  %v1700_v37 = vld [vmem:[%s2487_s3 + $0xa8] sm:$0xff]  ;;  %v574_v11 = vmul.f32 %v1664_v9, %v526_v8  ;;  %v963_v26 = vld [vmem:[%s2491_s7 + $0x18] sm:$0xff]  ;;  %v1713_v62 = vld [vmem:[%s2491_s7 + $0x50] sm:$0xff] }
 0x165   : > { %v617_v22 = vadd.f32 %v1665_v19, %v569_v20  ;;  %v618_v35 = vadd.f32 %v1666_v31, %v570_v28  ;;  %v619_v47 = vadd.f32 %v1667_v45, %v571_v43  ;;  %v1977_v4 = vpack.c.bf16 %v1700_v37, %v1699_v2  ;;  %v964_v28 = vld [vmem:[%s2491_s7 + $0x20] sm:$0xff]  ;;  %v965_v29 = vld [vmem:[%s2491_s7 + $0x28] sm:$0xff]  ;;  %v966_v31 = vld [vmem:[%s2491_s7 + $0x30] sm:$0xff] }
 0x166   : > { %v620_v59 = vadd.f32 %v1668_v57, %v572_v55  ;;  %v621_v5 = vadd.f32 %v1669_v3, %v573_v1  ;;  %v622_v36 = vadd.f32 %v1670_v12, %v574_v11  ;;  %v1950_v15 = vpack.c.bf16 %v870_v14, %v869_v13  ;;  %v1706_v55 = vld [vmem:[%s2489_s5 + $0x30] sm:$0xff]  ;;  %v1707_v56 = vld [vmem:[%s2489_s5 + $0x38] sm:$0xff]  ;;  %v1688_v57 = vld [vmem:[%s2488_s4 + $0x1] ss:$0 sm:$0xff] }
 0x167   : > { %1800 = vmatmul.mubr.msk.f32.vlgmr.msra.gmra.mrb[0].mxu0 %vm634_vm3, %v617_v22  ;;  %v960_v22 = vld [vmem:[%s2491_s7] sm:$0xff]  ;;  %v1959_v30 = vpack.c.bf16 %v965_v29, %v964_v28  ;;  %v1986_v32 = vpack.c.bf16 %v1707_v56, %v1706_v55  ;;  %v1714_v63 = vld [vmem:[%s2491_s7 + $0x58] sm:$0xff]  ;;  %v1716_v1 = vld [vmem:[%s2491_s7 + $0x68] sm:$0xff] }
 0x168   : > { %1936 = vmatpush3.bf16.msra.mxu0 %v1935_v21  ;;  %1810 = vmatprep.mubr.msk.f32.mxu0 %vm2045_vm2, %v2046_v54  ;;  %v1953_v24 = vpack.c.bf16 %v961_v23, %v960_v22  ;;  %v1717_v37 = vld [vmem:[%s2491_s7 + $0x70] sm:$0xff]  ;;  %v1718_v3 = vld [vmem:[%s2491_s7 + $0x78] sm:$0xff]  ;;  %v1720_v22 = vld [vmem:[%s2492_s8 + $0x1] ss:$0 sm:$0xff] }
 0x169   : > { %1937 = vmatprep.subr.bf16.mxu0 %v2044_v51  ;;  %1951 = vmatpush3.bf16.msra.mxu1 %v1950_v15 }
 0x16a   : > { %1952 = vmatprep.subr.bf16.mxu1 %v2044_v51 }
 0x16c   : > { %1939 = vmatpush3.bf16.msra.mxu0 %v1938_v27  ;;  %v1956_v27 = vpack.c.bf16 %v963_v26, %v962_v25 }
 0x16d   : > { %1940 = vmatprep.subr.bf16.mxu0 %v2044_v51 }
 0x16f   : > { %1811 = vmatmul.mubr.msk.f32.vlgmr.msra.gmra.mrb[0].mxu0 %vm634_vm3, %v618_v35 }
 0x170   : > { %1942 = vmatpush3.bf16.msra.mxu0 %v1941_v34  ;;  %1821 = vmatprep.mubr.msk.f32.mxu0 %vm2045_vm2, %v2046_v54  ;;  %v967_v34 = vld [vmem:[%s2491_s7 + $0x38] sm:$0xff] }
 0x171   : > { %1943 = vmatprep.subr.bf16.mxu0 %v2044_v51  ;;  %v1962_v35 = vpack.c.bf16 %v967_v34, %v966_v31 }
 0x174   : > { %1945 = vmatpush3.bf16.msra.mxu0 %v1944_v42 }
 0x175   : > { %1964 = vmatprep.subr.bf16.mxu0 %v2044_v51 }
 0x177   : > { %1822 = vmatmul.mubr.msk.f32.vlgmr.msra.gmra.mrb[0].mxu0 %vm634_vm3, %v619_v47  ;;  %v1705_v47 = vld [vmem:[%s2489_s5 + $0x28] sm:$0xff] }
 0x178   : > { %1966 = vmatpush3.bf16.msra.mxu0 %v1965_v46  ;;  %1862 = vmatprep.mubr.msk.f32.mxu0 %vm2045_vm2, %v2046_v54  ;;  %v1704_v46 = vld [vmem:[%s2489_s5 + $0x20] sm:$0xff] }
 0x179   : > { %1967 = vmatprep.subr.bf16.mxu0 %v2044_v51  ;;  %v1983_v52 = vpack.c.bf16 %v1705_v47, %v1704_v46 }
 0x17c   : > { %1969 = vmatpush3.bf16.msra.mxu0 %v1968_v53 }
 0x17d   : > { %1970 = vmatprep.subr.bf16.mxu0 %v2044_v51 }
 0x17f   : > { %1863 = vmatmul.mubr.msk.f32.vlgmr.msra.gmra.mrb[2].mxu0 %vm634_vm3, %v620_v59  ;;  %v1711_v59 = vld [vmem:[%s2491_s7 + $0x40] sm:$0xff] }
 0x180   : > { %1972 = vmatpush3.bf16.msra.mxu0 %v1971_v58  ;;  %1873 = vmatprep.mubr.msk.f32.mxu0 %vm2045_vm2, %v2046_v54  ;;  %v1989_v61 = vpack.c.bf16 %v1712_v60, %v1711_v59 }
 0x181   : > { %1973 = vmatprep.subr.bf16.mxu0 %v2044_v51 }
 0x184   : > { %1975 = vmatpush3.bf16.msra.mxu0 %v1974_v0  ;;  %v1715_v0 = vld [vmem:[%s2491_s7 + $0x60] sm:$0xff] }
 0x185   : > { %1976 = vmatprep.subr.bf16.mxu0 %v2044_v51  ;;  %v1995_v2 = vpack.c.bf16 %v1716_v1, %v1715_v0 }
 0x187   : > { %1874 = vmatmul.mubr.msk.f32.vlgmr.msra.gmra.mrb[2].mxu0 %vm634_vm3, %v621_v5 }
 0x188   : > { %1978 = vmatpush3.bf16.msra.mxu0 %v1977_v4  ;;  %1884 = vmatprep.mubr.msk.f32.mxu0 %vm2045_vm2, %v2046_v54  ;;  %v1998_v4 = vpack.c.bf16 %v1718_v3, %v1717_v37 }
 0x189   : > { %1979 = vmatprep.subr.bf16.mxu0 %v2044_v51 }
 0x18c   : > { %1981 = vmatpush3.bf16.msra.mxu0 %v1980_v10 }
 0x18d   : > { %2000 = vmatprep.subr.bf16.mxu0 %v2044_v51 }
 0x18f   : > { %1885 = vmatmul.mubr.msk.f32.vlgmr.msra.gmra.mrb[2].mxu0 %vm634_vm3, %v622_v36 }
 0x190   : > { %1925 = vmatprep.mubr.msk.f32.mxu0 %vm2045_vm2, %v2046_v54 }
 0x24a   : > { %v862_v17 = vpop.f32.mrb[0].mxu0 }
 0x24b   : > { %v2354_v18 = vadd.f32 %v1671_v16, %v862_v17  ;;  %v1823_v19 = vpop.f32.mrb[1].mxu0 }
 0x24d   : > { %1833 = vmatmul.mubr.msk.f32.vlgmr.msra.gmra.mrb[0].mxu1 %vm634_vm3, %v2354_v18 }
 0x24e   : > { %1851 = vmatprep.mubr.msk.f32.mxu1 %vm2045_vm2, %v2046_v54  ;;  %1954 = vmatpush3.bf16.msra.mxu1 %v1953_v24 }
 0x24f   : > { %1955 = vmatprep.subr.bf16.mxu1 %v2044_v51 }
 0x252   : > { %1957 = vmatpush3.bf16.msra.mxu1 %v1956_v27 }
 0x253   : > { %1958 = vmatprep.subr.bf16.mxu1 %v2044_v51 }
 0x256   : > { %1960 = vmatpush3.bf16.msra.mxu1 %v1959_v30 }
 0x257   : > { %1961 = vmatprep.subr.bf16.mxu1 %v2044_v51 }
 0x25a   : > { %1963 = vmatpush3.bf16.msra.mxu1 %v1962_v35 }
 0x25b   : > { %1982 = vmatprep.subr.bf16.mxu1 %v2044_v51 }
 0x262   : > { %v1291_v20 = vpop.f32.mrb[2].mxu0 }
 0x263   : > { %v1886_v21 = vpop.f32.mrb[3].mxu0  ;;  %v2007_v58 = vadd.f32 %v1688_v57, %v1291_v20  ;;  %v1685_v20 = vld [vmem:[%s2492_s8] ss:$0 sm:$0xff] }
 0x320   : > { %v947_v39 = vpop.f32.mrb[0].mxu1 }
 0x321   : > { %v948_v40 = vadd.f32 %v1683_v38, %v947_v39  ;;  %v1834_v41 = vpop.f32.mrb[1].mxu1  ;;  %v1513_v39 = vld [vmem:[%s2495_s11] sm:$0xff] }
 0x322   : > { %v1515_v41 = vld [vmem:[%s2495_s11 + $0x10] sm:$0xff] }
 0x323   : > { %v952_v42 = vmul.f32 0.044715, %v948_v40  ;;  %v951_v49 = vmul.f32 0.5, %v948_v40 }
 0x325   : > { %v953_v43 = vmul.f32 %v952_v42, %v948_v40  ;;  %v1516_v42 = vld [vmem:[%s2495_s11 + $0x18] sm:$0xff] }
 0x327   : > { %v954_v44 = vmul.f32 %v953_v43, %v948_v40  ;;  %v2004_v43 = vpack.c.bf16 %v1516_v42, %v1515_v41 }
 0x329   : > { %v955_v33 = vadd.f32 %v954_v44, %v948_v40 }
 0x32b   : > { %v956_v45 = vmul.f32 0.7978846, %v955_v33 }
 0x32d   : > { %2030 = vtanh.f32 %v956_v45 }
 0x337   : > { %v2031_v48 = vpop.eup %2030 }
 0x338   : > { %v958_v50 = vadd.f32 1.0, %v2031_v48  ;;  %v1723_v48 = vld [vmem:[%s2494_s10] ss:$0 sm:$0xff] }
 0x33a   : > { %v959_v53 = vmul.f32 %v958_v50, %v951_v49 }
 0x33c   : > { %1852 = vmatmul.mubr.msk.f32.vlgmr.msra.gmra.mrb[2].mxu1 %vm975_vm4, %v959_v53 }
 0x33d   : > { %1984 = vmatpush3.bf16.msra.mxu1 %v1983_v52  ;;  %1895 = vmatprep.mubr.msk.f32.mxu1 %vm2045_vm2, %v2046_v54  ;;  %v1724_v52 = vld [vmem:[%s2496_s12] ss:$0 sm:$0xff] }
 0x33e   : > { %1985 = vmatprep.subr.bf16.mxu1 %v2044_v51 }
 0x341   : > { %1987 = vmatpush3.bf16.msra.mxu1 %v1986_v32 }
 0x342   : > { %1988 = vmatprep.subr.bf16.mxu1 %v2044_v51 }
 0x344   : > { %1896 = vmatmul.mubr.msk.f32.vlgmr.msra.gmra.mrb[4].mxu1 %vm634_vm3, %v2007_v58 }
 0x345   : > { %1914 = vmatprep.mubr.msk.f32.mxu1 %vm2045_vm2, %v2046_v54  ;;  %1990 = vmatpush3.bf16.msra.mxu1 %v1989_v61  ;;  %v1992_v54 = vpack.c.bf16 %v1714_v63, %v1713_v62 }
 0x346   : > { %1991 = vmatprep.subr.bf16.mxu1 %v2044_v51 }
 0x349   : > { %1993 = vmatpush3.bf16.msra.mxu1 %v1992_v54 }
 0x34a   : > { %1994 = vmatprep.subr.bf16.mxu1 %v2044_v51 }
 0x34d   : > { %1996 = vmatpush3.bf16.msra.mxu1 %v1995_v2 }
 0x34e   : > { %1997 = vmatprep.subr.bf16.mxu1 %v2044_v51 }
 0x351   : > { %1999 = vmatpush3.bf16.msra.mxu1 %v1998_v4 }
 0x40f   : > { %v1045_v5 = vpop.f32.mrb[2].mxu1 }
 0x410   : > { %v1853_v6 = vpop.f32.mrb[3].mxu1  ;;  %v1046_v21 = vadd.f32 %v1685_v20, %v1045_v5 }
 0x412   : > { %v1050_v24 = vadd.f32 %v2354_v18, %v1046_v21  ;;  %v1514_v18 = vld [vmem:[%s2495_s11 + $0x8] sm:$0xff] }
 0x413   : > { %v2001_v40 = vpack.c.bf16 %v1514_v18, %v1513_v39 }
 0x415   : > { %2002 = vmatpush3.bf16.msra.mxu0 %v2001_v40 }
 0x416   : > { %2003 = vmatprep.subr.bf16.mxu0 %v2044_v51  ;;  %v1722_v51 = vld [vmem:[%s2493_s9] ss:$0 sm:$0xff] }
 0x417   : > { %v1378_v8 = vpop.f32.mrb[4].mxu1 }
 0x418   : > { %v1379_v9 = vadd.f32 %v1709_v7, %v1378_v8  ;;  %v1897_v10 = vpop.f32.mrb[5].mxu1 }
 0x419   : > { %2005 = vmatpush3.bf16.msra.mxu0 %v2004_v43 }
 0x41a   : > { %v1383_v11 = vmul.f32 0.044715, %v1379_v9  ;;  %v1382_v16 = vmul.f32 0.5, %v1379_v9 }
 0x41c   : > { %v1384_v12 = vmul.f32 %v1383_v11, %v1379_v9 }
 0x41e   : > { %v1385_v36 = vmul.f32 %v1384_v12, %v1379_v9 }
 0x420   : > { %v1386_v13 = vadd.f32 %v1385_v36, %v1379_v9 }
 0x422   : > { %v1387_v14 = vmul.f32 0.7978846, %v1386_v13 }
 0x424   : > { %2032 = vtanh.f32 %v1387_v14 }
 0x42e   : > { %v2033_v15 = vpop.eup %2032 }
 0x42f   : > { %v1389_v17 = vadd.f32 1.0, %v2033_v15 }
 0x431   : > { %v1390_v19 = vmul.f32 %v1389_v17, %v1382_v16 }
 0x433   : > { %1915 = vmatmul.mubr.msk.f32.vlgmr.msra.gmra.mrb[6].mxu1 %vm975_vm4, %v1390_v19 }
 0x506   : > { %v1477_v23 = vpop.f32.mrb[6].mxu1 }
 0x507   : > { %v1478_v25 = vadd.f32 %v1720_v22, %v1477_v23  ;;  %v1916_v26 = vpop.f32.mrb[7].mxu1 }
 0x509   : > { %v1481_v27 = vadd.f32 %v1478_v25, %v1050_v24 }
 0x50b   : > { %v1482_v28 = vadd.f32 %v2007_v58, %v1481_v27 }
 0x50d   : > { %v1485_v29 = vsel %vm445_vm0, %v1482_v28, 0.0 }
 0x50e   : > { %1486 = vadd.xlane.f32.xlu0 %v1485_v29 }
 0x59b   : > { %v1487_v30 = vpop.xlane.xlu0 %1486 }
 0x59c   : > { %v1489_v31 = vmul.f32 0.03125, %v1487_v30 }
 0x59e   : > { %v1490_v34 = vsub.f32 %v1482_v28, %v1489_v31 }
 0x5a0   : > { %v1491_v35 = vmul.f32 %v1490_v34, %v1490_v34 }
 0x5a2   : > { %v1492_v38 = vsel %vm445_vm0, %v1491_v35, 0.0 }
 0x5a3   : > { %1493 = vadd.xlane.f32.xlu1 %v1492_v38 }
 0x630   : > { %v1494_v44 = vpop.xlane.xlu1 %1493 }
 0x631   : > { %v1495_v33 = vmul.f32 0.03125, %v1494_v44 }
 0x633   : > { %v1496_v45 = vadd.f32 1e-05, %v1495_v33 }
 0x635   : > { %2034 = vrsqrt.f32 %v1496_v45 }
 0x63f   : > { %v2035_v46 = vpop.eup %2034 }
 0x640   : > { %v1498_v47 = vmul.f32 %v2035_v46, %v1490_v34 }
 0x642   : > { %v1505_v49 = vmul.f32 %v1722_v51, %v1498_v47 }
 0x644   : > { %v1512_v50 = vadd.f32 %v1723_v48, %v1505_v49 }
 0x646   : > { %1926 = vmatmul.mubr.msk.f32.vlgmr.msra.gmra.mrb[4].mxu0 %vm634_vm3, %v1512_v50 }
 0x719   : > { %v1593_v53 = vpop.f32.mrb[4].mxu0 }
 0x71a   : > { %v1594_v55 = vadd.f32 %v1724_v52, %v1593_v53  ;;  %v1927_v56 = vpop.f32.mrb[5].mxu0 }
 0x71c   : > { %1598 = vst.msk [vmem:[%s438_s30] sm:$0x1f] %vm1597_vm5, %v1594_v55 }
 0x71d PF: > { %s23_s25 = sadd.s32 1, %s2042_s25  }
 0x71e   : > { %p20_p4 = scmp.ge.s32.totalorder %s23_s25, 4  }
 0x720   :  { %22 = sbr.rel (!%p20_p4) target bundleno = 1 (0x1), region = 112 }

// kernel: run.8
= control target key start
LH: loop header
LB: loop body
LE: loop exit
PB: predicated region body
PF: predicated region fallthrough
CT: control target
= control target key end

     0   :  { %s3385_s25 = smov 0   ;;  %s3387_s26 = smov 0   ;;  %s3845_s0 = inlined_call_operand.vmem [shape: f32[2,17,16], index: 0, kind: input, shape index: {}]   ;;  %s3846_s1 = inlined_call_operand.vmem [shape: f32[2,1,16], index: 1, kind: input, shape index: {}]   ;;  %s3847_s2 = inlined_call_operand.vmem [shape: f32[2,1,16], index: 2, kind: input, shape index: {}]   ;;  %s3848_s3 = inlined_call_operand.vmem [shape: f32[2,16,48], index: 3, kind: input, shape index: {}]   ;;  %s3849_s4 = inlined_call_operand.vmem [shape: f32[2,1,48], index: 4, kind: input, shape index: {}]   ;;  %s3850_s5 = inlined_call_operand.vmem [shape: f32[2,16,16], index: 5, kind: input, shape index: {}]   ;;  %s3851_s6 = inlined_call_operand.vmem [shape: f32[2,1,16], index: 6, kind: input, shape index: {}]   ;;  %s3852_s7 = inlined_call_operand.vmem [shape: f32[2,1,16], index: 7, kind: input, shape index: {}]   ;;  %s3853_s8 = inlined_call_operand.vmem [shape: f32[2,1,16], index: 8, kind: input, shape index: {}]   ;;  %s3854_s9 = inlined_call_operand.vmem [shape: f32[2,16,64], index: 9, kind: input, shape index: {}]   ;;  %s3855_s10 = inlined_call_operand.vmem [shape: f32[2,1,64], index: 10, kind: input, shape index: {}]   ;;  %s3856_s11 = inlined_call_operand.vmem [shape: f32[2,64,16], index: 11, kind: input, shape index: {}]   ;;  %s3857_s12 = inlined_call_operand.vmem [shape: f32[2,1,16], index: 12, kind: input, shape index: {}]   ;;  %s3858_s13 = inlined_call_operand.vmem [shape: f32[2,17,16], index: 13, kind: output, shape index: {}]  }
   0x1   :  { %3863 = sst [smem:[#allocation9_spill]] %s3845_s0  ;;  %s3389_s27 = smov 0  }
   0x2   :  { %3864 = sst [smem:[#allocation10_spill]] %s3847_s2  ;;  %s3391_s28 = smov 0  }
   0x3   :  { %3865 = sst [smem:[#allocation11_spill]] %s3848_s3  ;;  %s3393_s29 = smov 0  }
   0x4   :  { %3866 = sst [smem:[#allocation12_spill]] %s3850_s5 }
   0x5   :  { %3867 = sst [smem:[#allocation13_spill]] %s3858_s13 }
   0x6 LB: > { %3868 = sst [smem:[#allocation3_spill]] %s3283_s25  ;;  %s32_s30 = sadd.s32 1, %s3291_s27  ;;  %s3299_s29 = sphi %s3393_s29, %s23_s29   ;;  %s3295_s28 = sphi %s3391_s28, %s3894_s28   ;;  %s3291_s27 = sphi %s3389_s27, %s3893_s27   ;;  %s3287_s26 = sphi %s3387_s26, %s3892_s26   ;;  %s3283_s25 = sphi %s3385_s25, %s3891_s25  }
   0x7   : > { %3869 = sst [smem:[#allocation4_spill]] %s3291_s27  ;;  %s35_s14 = sadd.s32 1, %s3295_s28 }
   0x8   : > { %3870 = sst [smem:[#allocation5_spill]] %s3295_s28  ;;  %p33_p0 = scmp.ge.s32.totalorder %s32_s30, 2 }
   0x9   : > { %3871 = sst [smem:[#allocation6_spill]] %s3299_s29  ;;  %p2659_p1 = scmp.ge.s32.totalorder %s3299_s29, 1 }
   0xa   : > { %p503_p2 = scmp.lt.s32.totalorder %s3299_s29, 5  ;;  %s3896_s30 = smov (%p33_p0, %s32_s30), 0 }
   0xb   : > { %3872 = sst [smem:[#allocation7_spill]] %s3896_s30  ;;  %s3898_s14 = smov (!%p33_p0, %s35_s14), %s3295_s28 }
   0xc   : > { %p504_p3 = pnand %p2659_p1, %p503_p2  ;;  %p37_p4 = scmp.ge.s32.totalorder %s3898_s14, 2 }
   0xd   : > { %p591_p5 = scmp.lt.s32.totalorder (!%p504_p3), %s3287_s26, 1  ;;  %p596_p6 = scmp.lt.s32.totalorder (!%p504_p3), %s3283_s25, 1 }
   0xe   : > { %s3900_s14 = smov (%p37_p4, %s3898_s14), 0  ;;  %507 = sbr.rel (%p504_p3) target bundleno = 3769 (0xeb9), region = 72 }
   0xf   : > { %3873 = sst [smem:[#allocation8_spill]] %s3900_s14  ;;  %s3875_s0 = sld [smem:[#allocation9_spill]] (!%p504_p3) }
  0x10   : > { %s3876_s3 = sld [smem:[#allocation11_spill]] (!%p504_p3)  ;;  %s3877_s5 = sld [smem:[#allocation12_spill]] (!%p504_p3) }
  0x15   : > { %s3902_s26 = smov (!%p591_p5, %s3287_s26), 1 }
  0x16   : > { %s3419_s15 = scalar_select %p596_p6, %s3283_s25, 1 }
  0x17   : > { %s3097_s16 = smul.u32 24, %s3902_s26 }
  0x18   : > { %s2747_s30 = sshll.u32 %s3419_s15, 4  ;;  %s631_s13 = scalar_lea.vmem %s3855_s10, %s3419_s15 }
  0x19   : > { %s595_s14 = scalar_lea.vmem %s3875_s0, %s3097_s16  ;;  %s3436_s29 = scalar_lea.vmem %s3876_s3, %s2747_s30 }
  0x1a   : > { %s3445_s19 = scalar_lea.vmem %s3877_s5, %s2747_s30  ;;  %s3462_s26 = scalar_lea.vmem %s3854_s9, %s2747_s30 }
  0x1b   : > { %s2750_s5 = sshll.u32 %s3419_s15, 6  ;;  %s639_s23 = scalar_lea.vmem %s3857_s12, %s3419_s15 }
  0x1c   : > { %s3476_s0 = scalar_lea.vmem %s3856_s11, %s2750_s5  ;;  %s3878_s3 = sld [smem:[#allocation13_spill]] }
  0x1d   : > { %s3879_s30 = sld [smem:[#allocation3_spill]] }
  0x22   : > { %s3481_s2 = scalar_lea.vmem %s3878_s3, %s3097_s16 }
  0x23   : > { %p2670_p7 = scmp.ne.s32.totalorder %s3879_s30, 0 }
  0x24   : > { %v649_v0 = vld [vmem:[%s595_s14] sm:$0xff] (!%p2670_p7)  ;;  %vm652_vm0 = vcmask (!%p2670_p7), 130048   ;;  %v650_v1 = vld [vmem:[%s595_s14 + $0x8] sm:$0xff] (!%p2670_p7)  ;;  %v651_v2 = vld [vmem:[%s595_s14 + $0x10] sm:$0x1] (!%p2670_p7)  ;;  %vm655_vm1 = vcmask (!%p2670_p7), 122880  }
  0x25   : > { %648 = sbr.rel (%p2670_p7) target bundleno = 44 (0x2c), region = 76  ;;  %653 = vst.msk [vmem:[#allocation2] sm:$0xff] (!%p2670_p7), %vm652_vm0, %v649_v0  ;;  %654 = vst.msk [vmem:[#allocation2 + $0x8] sm:$0xff] (!%p2670_p7), %vm652_vm0, %v650_v1 }
  0x26   : > { %656 = vst.msk [vmem:[#allocation2 + $0x10] sm:$0x1] (!%p2670_p7), %vm655_vm1, %v651_v2 }
  0x2c PF: > { %v657_v3 = vld [vmem:[#allocation2] sm:$0xff]  ;;  %vm662_vm2 = vcmask 130048   ;;  %vm669_vm3 = vcmask 122880   ;;  %v658_v5 = vld [vmem:[#allocation2 + $0x8] sm:$0xff]  ;;  %v3301_v26 = vmov 0.0|0.0   ;;  %vm3302_vm4 = vmmov 0   ;;  %s3883_s21 = scalar_lea.vmem %s3849_s4, %s3419_s15  ;;  %s3886_s18 = scalar_lea.vmem %s3851_s6, %s3419_s15 }
  0x2d   : > { %v659_v4 = vld [vmem:[#allocation2 + $0x10] sm:$0x1]  ;;  %v663_v6 = vsel %vm662_vm2, %v657_v3, 0.0  ;;  %v666_v8 = vsel %vm662_vm2, %v658_v5, 0.0  ;;  %v722_v24 = vld [vmem:[%s3436_s29] sm:$0xff]  ;;  %v723_v25 = vld [vmem:[%s3436_s29 + $0x8] sm:$0xff]  ;;  %3051 = vmatprep.subr.bf16.mxu1 %v3301_v26  ;;  %3058 = vmatprep.subr.bf16.mxu0 %v3301_v26  ;;  %s3880_s29 = scalar_lea.vmem %s3846_s1, %s3419_s15 }
  0x2e   : > { %v670_v7 = vsel %vm669_vm3, %v659_v4, 0.0  ;;  %664 = vadd.xlane.f32.xlu0 %v663_v6  ;;  %v3052_v27 = vpack.c.bf16 %v723_v25, %v722_v24  ;;  %v3303_v28 = vmov 0.0   ;;  %v2671_v39 = vld [vmem:[%s3880_s29] ss:$0 sm:$0xff]  ;;  %s3881_s25 = sld [smem:[#allocation10_spill]]  ;;  %s3304_s22 = smov 112  }
  0x2f   : > { %671 = vadd.xlane.f32.xlu1 %v670_v7  ;;  %2840 = vmatprep.mubr.msk.f32.mxu1 %vm3302_vm4, %v3303_v28  ;;  %v2673_v54 = vld [vmem:[%s3883_s21] ss:$0 sm:$0xff]  ;;  %s3305_s24 = smov 124   ;;  %s3306_s27 = smov 108   ;;  %vm831_vm5 = vcmask 31744   ;;  %vm927_vm7 = vcmask 138240  }
  0x30   : > { %2870 = vmatprep.mubr.msk.f32.mxu0 %vm3302_vm4, %v3303_v28  ;;  %3053 = vmatpush3.bf16.msra.mxu1 %v3052_v27  ;;  %vm3542_vm6 = vmpackc.low %vm831_vm5, %vm831_vm5  ;;  %vm934_vm8 = vcmask 131072   ;;  %s3307_s28 = smov 96   ;;  %vm979_vm9 = vcmask 1040384   ;;  %s3308_s30 = smov 92   ;;  %vm1312_vm10 = vcmask 1043456   ;;  %vm2366_vm11 = vcmask 523264  }
  0x31   : > { %3054 = vmatprep.subr.bf16.mxu1 %v3301_v26  ;;  %s3309_s3 = smov 104   ;;  %s3310_s5 = smov 120  }
  0x32   : > { %667 = vadd.xlane.f32.xlu0 %v666_v8  ;;  %s3311_s29 = smov 88   ;;  %s3312_s14 = smov 100  }
  0x33   : > { %s3313_s16 = smov 116  }
  0x34   : > { %s3882_s17 = scalar_lea.vmem %s3881_s25, %s3419_s15 }
  0x35   : > { %v2672_v41 = vld [vmem:[%s3882_s17] ss:$0 sm:$0xff] }
  0xbb   : > { %v665_v9 = vpop.xlane.xlu0 %664 }
  0xbc   : > { %v672_v10 = vpop.xlane.xlu1 %671  ;;  %v674_v11 = vmul.f32 0.0625, %v665_v9 }
  0xbd   : > { %v676_v12 = vmul.f32 0.0625, %v672_v10 }
  0xbe   : > { %v677_v13 = vsub.f32 %v657_v3, %v674_v11 }
  0xbf   : > { %v679_v14 = vsub.f32 %v659_v4, %v676_v12  ;;  %v668_v15 = vpop.xlane.xlu0 %667 }
  0xc0   : > { %v675_v16 = vmul.f32 0.0625, %v668_v15  ;;  %v680_v17 = vmul.f32 %v677_v13, %v677_v13 }
  0xc1   : > { %v682_v18 = vmul.f32 %v679_v14, %v679_v14 }
  0xc2   : > { %v678_v19 = vsub.f32 %v658_v5, %v675_v16  ;;  %v683_v20 = vsel %vm662_vm2, %v680_v17, 0.0 }
  0xc3   : > { %684 = vadd.xlane.f32.xlu1 %v683_v20  ;;  %v689_v21 = vsel %vm669_vm3, %v682_v18, 0.0 }
  0xc4   : > { %v681_v22 = vmul.f32 %v678_v19, %v678_v19 }
  0xc6   : > { %v686_v23 = vsel %vm662_vm2, %v681_v22, 0.0 }
  0xc7   : > { %690 = vadd.xlane.f32.xlu1 %v689_v21  ;;  %687 = vadd.xlane.f32.xlu0 %v686_v23 }
 0x150   : > { %v685_v29 = vpop.xlane.xlu1 %684 }
 0x151   : > { %v692_v30 = vmul.f32 0.0625, %v685_v29 }
 0x153   : > { %v695_v31 = vadd.f32 1e-05, %v692_v30 }
 0x154   : > { %v691_v32 = vpop.xlane.xlu1 %690  ;;  %v688_v33 = vpop.xlane.xlu0 %687 }
 0x155   : > { %3192 = vrsqrt.f32 %v695_v31  ;;  %v694_v34 = vmul.f32 0.0625, %v691_v32  ;;  %v693_v35 = vmul.f32 0.0625, %v688_v33 }
 0x157   : > { %v697_v36 = vadd.f32 1e-05, %v694_v34  ;;  %v696_v37 = vadd.f32 1e-05, %v693_v35 }
 0x159   : > { %3194 = vrsqrt.f32 %v697_v36 }
 0x15a   : > { %3196 = vrsqrt.f32 %v696_v37 }
 0x15f   : > { %v3193_v38 = vpop.eup %3192 }
 0x160   : > { %v701_v40 = vmul.f32 %v3193_v38, %v677_v13 }
 0x162   : > { %v710_v42 = vmul.f32 %v2671_v39, %v701_v40 }
 0x163   : > { %v3195_v43 = vpop.eup %3194 }
 0x164   : > { %v3197_v44 = vpop.eup %3196  ;;  %v719_v45 = vadd.f32 %v2672_v41, %v710_v42  ;;  %v703_v47 = vmul.f32 %v3195_v43, %v679_v14 }
 0x165   : > { %v702_v46 = vmul.f32 %v3197_v44, %v678_v19 }
 0x166   : > { %2841 = vmatmul.mubr.msk.f32.vlgmr.msra.gmra.mrb[0].mxu1 %vm662_vm2, %v719_v45  ;;  %v712_v50 = vmul.f32 %v2671_v39, %v703_v47 }
 0x167   : > { %2843 = vmatprep.mubr.msk.f32.mxu1 %vm3302_vm4, %v3303_v28  ;;  %v711_v48 = vmul.f32 %v2671_v39, %v702_v46 }
 0x168   : > { %v721_v51 = vadd.f32 %v2672_v41, %v712_v50 }
 0x169   : > { %v720_v49 = vadd.f32 %v2672_v41, %v711_v48 }
 0x16b   : > { %2844 = vmatmul.mubr.msk.f32.gmra.mrb[2].mxu1 %vm662_vm2, %v720_v49 }
 0x16c   : > { %2846 = vmatprep.mubr.msk.f32.mxu1 %vm3302_vm4, %v3303_v28 }
 0x16f   : > { %2847 = vmatmul.mubr.msk.f32.gmra.mrb[4].mxu1 %vm662_vm2, %v721_v51 }
 0x170   : > { %2855 = vmatprep.mubr.msk.f32.mxu1 %vm3302_vm4, %v3303_v28 }
 0x239   : > { %v806_v52 = vpop.f32.mrb[0].mxu1 }
 0x23a   : > { %v2842_v53 = vpop.f32.mrb[1].mxu1  ;;  %v3523_v56 = vadd.f32 %v2673_v54, %v806_v52 }
 0x23e   : > { %v811_v55 = vpop.f32.mrb[2].mxu1 }
 0x23f   : > { %v3525_v57 = vadd.f32 %v2673_v54, %v811_v55  ;;  %v2845_v58 = vpop.f32.mrb[3].mxu1 }
 0x241   : > { %v3529_v59 = vpack.i.bf16 %v3525_v57, %v3523_v56 }
 0x242   : > { %v816_v60 = vpop.f32.mrb[4].mxu1 }
 0x243   : > { %v3531_v61 = vadd.f32 %v2673_v54, %v816_v60  ;;  %3153 = vrot.lane.b32.xlu0 %v3529_v59, %s3304_s22  ;;  %v2848_v62 = vpop.f32.mrb[5].mxu1 }
 0x245   : > { %829 = vrot.lane.b32.xlu1 %v3531_v61, %s3304_s22 }
 0x247   : > { %1062 = vrot.lane.b32.xlu0 %v3523_v56, %s3305_s24 }
 0x249   : > { %3158 = vrot.lane.b32.xlu1 %v3529_v59, %s3306_s27 }
 0x24b   : > { %1066 = vrot.lane.b32.xlu0 %v3531_v61, %s3305_s24 }
 0x24d   : > { %1072 = vrot.lane.b32.xlu1 %v3531_v61, %s3306_s27  ;;  %s3888_s27 = scalar_lea.vmem %s3853_s8, %s3419_s15 }
 0x251   : > { %1064 = vrot.lane.b32.xlu1 %v3525_v57, %s3305_s24 }
 0x2b5   : > { %v3154_v63 = vpop.permute.xlu0 %3153 }
 0x2b6   : > { %v3156_v0 = vunpack.i.h.bf16 %v3154_v63  ;;  %v3155_v1 = vunpack.i.l.bf16 %v3154_v63 }
 0x2b7   : > { %v830_v2 = vpop.permute.xlu1 %829 }
 0x2b8   : > { %v3055_v4 = vpack.c.bf16 %v3156_v0, %v3155_v1 }
 0x2b9   : > { %v1063_v10 = vpop.permute.xlu0 %1062 }
 0x2ba   : > { %3057 = vmatpush3.bf16.xpose.msk.msra.mxu1 %vm3542_vm6, %v3055_v4 }
 0x2bb   : > { %2853 = vmatprep.subr.mxu1 %v3303_v28  ;;  %v3159_v5 = vpop.permute.xlu1 %3158 }
 0x2bc   : > { %v3161_v6 = vunpack.i.h.bf16 %v3159_v5  ;;  %v3160_v7 = vunpack.i.l.bf16 %v3159_v5 }
 0x2bd   : > { %v1067_v12 = vpop.permute.xlu0 %1066 }
 0x2be   : > { %v3062_v8 = vpack.c.bf16 %v3161_v6, %v3160_v7 }
 0x2bf   : > { %v1073_v9 = vpop.permute.xlu1 %1072 }
 0x2c2   : > { %2854 = vmatpush3.xpose.msk.msra.mxu1 %vm831_vm5, %v830_v2 }
 0x2c3   : > { %3061 = vmatprep.subr.bf16.mxu1 %v3301_v26  ;;  %v1065_v11 = vpop.permute.xlu1 %1064 }
 0x2c5   : > { %2856 = vmatmul.mubr.msk.f32.vlgmr.msra.gmra.mrb[6].mxu1 %vm831_vm5, %v3523_v56 }
 0x2c6   : > { %3064 = vmatpush3.bf16.xpose.msk.msra.mxu1 %vm3542_vm6, %v3062_v8  ;;  %2858 = vmatprep.mubr.msk.f32.mxu1 %vm3302_vm4, %v3303_v28 }
 0x2c7   : > { %2883 = vmatprep.subr.mxu1 %v3303_v28 }
 0x2c9   : > { %2859 = vmatmul.mubr.msk.f32.gmra.mrb[8].mxu1 %vm831_vm5, %v3525_v57 }
 0x2ca   : > { %2861 = vmatprep.mubr.msk.f32.mxu1 %vm3302_vm4, %v3303_v28 }
 0x2cd   : > { %2862 = vmatmul.mubr.msk.f32.gmra.mrb[10].mxu1 %vm831_vm5, %v3531_v61 }
 0x2ce   : > { %2884 = vmatpush3.xpose.msk.msra.mxu1 %vm831_vm5, %v1073_v9  ;;  %2885 = vmatprep.mubr.msk.f32.mxu1 %vm3302_vm4, %v3303_v28 }
 0x2cf   : > { %2909 = vmatprep.subr.mxu1 %v3303_v28 }
 0x2d1   : > { %2886 = vmatmul.mubr.msk.f32.vlgmr.msra.gmra.mrb[12].mxu1 %vm831_vm5, %v1063_v10 }
 0x2d2   : > { %2888 = vmatprep.mubr.msk.f32.mxu1 %vm3302_vm4, %v3303_v28 }
 0x2d5   : > { %2889 = vmatmul.mubr.msk.f32.gmra.mrb[14].mxu1 %vm831_vm5, %v1065_v11 }
 0x2d6   : > { %2891 = vmatprep.mubr.msk.f32.mxu1 %vm3302_vm4, %v3303_v28 }
 0x2d9   : > { %2892 = vmatmul.mubr.msk.f32.gmra.mrb[16].mxu1 %vm831_vm5, %v1067_v12 }
 0x2da   : > { %2911 = vmatprep.mubr.msk.f32.mxu1 %vm3302_vm4, %v3303_v28 }
 0x398   : > { %v910_v13 = vpop.f32.mrb[6].mxu1 }
 0x399   : > { %v924_v14 = vmul.f32 0.5, %v910_v13  ;;  %v2857_v15 = vpop.f32.mrb[7].mxu1 }
 0x39b   : > { %v928_v16 = vsel %vm927_vm7, %v924_v14, -inf }
 0x39c   : > { %929 = vmax.xlane.f32.xlu1 %v928_v16  ;;  %v915_v17 = vpop.f32.mrb[8].mxu1 }
 0x39d   : > { %v925_v18 = vmul.f32 0.5, %v915_v17  ;;  %v2860_v19 = vpop.f32.mrb[9].mxu1 }
 0x39f   : > { %v931_v20 = vsel %vm927_vm7, %v925_v18, -inf }
 0x3a0   : > { %932 = vmax.xlane.f32.xlu0 %v931_v20  ;;  %v920_v21 = vpop.f32.mrb[10].mxu1 }
 0x3a1   : > { %v926_v22 = vmul.f32 0.5, %v920_v21  ;;  %v2863_v23 = vpop.f32.mrb[11].mxu1 }
 0x3a3   : > { %v935_v24 = vsel %vm934_vm8, %v926_v22, -inf }
 0x3a4   : > { %936 = vmax.xlane.f32.xlu0 %v935_v24  ;;  %v1152_v25 = vpop.f32.mrb[12].mxu1 }
 0x3a5   : > { %v1166_v27 = vmul.f32 0.5, %v1152_v25  ;;  %v2887_v29 = vpop.f32.mrb[13].mxu1 }
 0x3a7   : > { %v1169_v30 = vsel %vm927_vm7, %v1166_v27, -inf }
 0x3a8   : > { %1170 = vmax.xlane.f32.xlu0 %v1169_v30  ;;  %v1157_v31 = vpop.f32.mrb[14].mxu1 }
 0x3a9   : > { %v1167_v32 = vmul.f32 0.5, %v1157_v31  ;;  %v2890_v33 = vpop.f32.mrb[15].mxu1 }
 0x3ab   : > { %v1172_v34 = vsel %vm927_vm7, %v1167_v32, -inf }
 0x3ac   : > { %1173 = vmax.xlane.f32.xlu1 %v1172_v34  ;;  %v1162_v35 = vpop.f32.mrb[16].mxu1 }
 0x3ad   : > { %v1168_v36 = vmul.f32 0.5, %v1162_v35  ;;  %v2893_v37 = vpop.f32.mrb[17].mxu1 }
 0x3af   : > { %v1175_v38 = vsel %vm934_vm8, %v1168_v36, -inf }
 0x3b0   : > { %1176 = vmax.xlane.f32.xlu0 %v1175_v38 }
 0x3bd   : > { %966 = vrot.lane.b32.xlu1 %v3531_v61, %s3307_s28 }
 0x3c6   : > { %3163 = vrot.lane.b32.xlu0 %v3529_v59, %s3307_s28 }
 0x429   : > { %v930_v39 = vpop.xlane.xlu1 %929 }
 0x42a   : > { %v938_v40 = vsub.f32 %v924_v14, %v930_v39 }
 0x42c   : > { %v941_v41 = vmul.f32 1.442695, %v938_v40  ;;  %v820_v40 = vld [vmem:[%s3445_s19] sm:$0xff] }
 0x42d   : > { %v933_v42 = vpop.xlane.xlu0 %932 }
 0x42e   : > { %3198 = vpow2.f32 %v941_v41  ;;  %v939_v43 = vsub.f32 %v925_v18, %v933_v42  ;;  %v1302_v41 = vrot.slane %v820_v40, 4 }
 0x430   : > { %v943_v44 = vmul.f32 1.442695, %v939_v43  ;;  %2910 = vmatpush3.msk.msra.mxu1 %vm1312_vm10, %v1302_v41 }
 0x431   : > { %v937_v45 = vpop.xlane.xlu0 %936  ;;  %3068 = vmatprep.subr.bf16.mxu1 %v3301_v26 }
 0x432   : > { %3200 = vpow2.f32 %v943_v44  ;;  %v940_v46 = vsub.f32 %v926_v22, %v937_v45 }
 0x434   : > { %v945_v47 = vmul.f32 1.442695, %v940_v46 }
 0x435   : > { %v1171_v48 = vpop.xlane.xlu0 %1170 }
 0x436   : > { %3202 = vpow2.f32 %v945_v47  ;;  %v1178_v49 = vsub.f32 %v1166_v27, %v1171_v48 }
 0x438   : > { %v3199_v50 = vpop.eup %3198  ;;  %v1181_v51 = vmul.f32 1.442695, %v1178_v49 }
 0x439   : > { %v1174_v52 = vpop.xlane.xlu1 %1173  ;;  %v947_v53 = vsel %vm927_vm7, %v3199_v50, 0.0 }
 0x43a   : > { %3204 = vpow2.f32 %v1181_v51  ;;  %v1179_v54 = vsub.f32 %v1167_v32, %v1174_v52  ;;  %948 = vadd.xlane.f32.xlu1 %v947_v53 }
 0x43c   : > { %v3201_v55 = vpop.eup %3200  ;;  %v1183_v58 = vmul.f32 1.442695, %v1179_v54 }
 0x43d   : > { %v1177_v60 = vpop.xlane.xlu0 %1176  ;;  %v950_v62 = vsel %vm927_vm7, %v3201_v55, 0.0  ;;  %v967_v11 = vpop.permute.xlu1 %966 }
 0x43e   : > { %3206 = vpow2.f32 %v1183_v58  ;;  %v1180_v63 = vsub.f32 %v1168_v36, %v1177_v60  ;;  %951 = vadd.xlane.f32.xlu0 %v950_v62 }
 0x440   : > { %v3203_v0 = vpop.eup %3202  ;;  %v1185_v1 = vmul.f32 1.442695, %v1180_v63 }
 0x441   : > { %v3164_v2 = vpop.permute.xlu0 %3163  ;;  %v953_v4 = vsel %vm934_vm8, %v3203_v0, 0.0 }
 0x442   : > { %3208 = vpow2.f32 %v1185_v1  ;;  %v3166_v5 = vunpack.i.h.bf16 %v3164_v2  ;;  %v3165_v6 = vunpack.i.l.bf16 %v3164_v2  ;;  %954 = vadd.xlane.f32.xlu1 %v953_v4 }
 0x444   : > { %v3205_v7 = vpop.eup %3204  ;;  %v3059_v8 = vpack.c.bf16 %v3166_v5, %v3165_v6 }
 0x445   : > { %v1187_v9 = vsel %vm927_vm7, %v3205_v7, 0.0 }
 0x446   : > { %1188 = vadd.xlane.f32.xlu0 %v1187_v9  ;;  %3060 = vmatpush3.bf16.msra.mxu0 %v3059_v8 }
 0x447   : > { %2868 = vmatprep.subr.mxu0 %v3303_v28 }
 0x448   : > { %v3207_v10 = vpop.eup %3206 }
 0x449   : > { %v1190_v12 = vsel %vm927_vm7, %v3207_v10, 0.0 }
 0x44a   : > { %1191 = vadd.xlane.f32.xlu1 %v1190_v12  ;;  %2869 = vmatpush3.msk.msra.mxu0 %vm979_vm9, %v967_v11 }
 0x44b   : > { %3065 = vmatprep.subr.bf16.mxu0 %v3301_v26 }
 0x44c   : > { %v3209_v13 = vpop.eup %3208 }
 0x44d   : > { %v1193_v14 = vsel %vm934_vm8, %v3209_v13, 0.0 }
 0x44e   : > { %1194 = vadd.xlane.f32.xlu1 %v1193_v14 }
 0x45c   : > { %1206 = vrot.lane.b32.xlu0 %v3531_v61, %s3308_s30 }
 0x45f   : > { %3168 = vrot.lane.b32.xlu1 %v3529_v59, %s3308_s30 }
 0x460   : > { %1496 = vrot.lane.b32.xlu0 %v3531_v61, %s3309_s3 }
 0x463   : > { %3173 = vrot.lane.b32.xlu1 %v3529_v59, %s3309_s3 }
 0x464   : > { %1488 = vrot.lane.b32.xlu0 %v3525_v57, %s3310_s5 }
 0x467   : > { %1486 = vrot.lane.b32.xlu1 %v3523_v56, %s3310_s5 }
 0x46b   : > { %1490 = vrot.lane.b32.xlu1 %v3531_v61, %s3310_s5 }
 0x4c7   : > { %v949_v15 = vpop.xlane.xlu1 %948 }
 0x4c8   : > { %3210 = vrcp.f32 %v949_v15 }
 0x4cb   : > { %v952_v16 = vpop.xlane.xlu0 %951 }
 0x4cc   : > { %3212 = vrcp.f32 %v952_v16 }
 0x4cf   : > { %v955_v17 = vpop.xlane.xlu1 %954 }
 0x4d0   : > { %3214 = vrcp.f32 %v955_v17 }
 0x4d2   : > { %v3211_v18 = vpop.eup %3210 }
 0x4d3   : > { %v959_v19 = vmul.f32 %v3211_v18, %v3199_v50  ;;  %v1189_v21 = vpop.xlane.xlu0 %1188 }
 0x4d4   : > { %3216 = vrcp.f32 %v1189_v21 }
 0x4d5   : > { %2871 = vmatmul.mubr.msk.f32.vlgmr.msra.gmra.mrb[0].mxu0 %vm927_vm7, %v959_v19 }
 0x4d6   : > { %v3213_v20 = vpop.eup %3212  ;;  %2873 = vmatprep.mubr.msk.f32.mxu0 %vm3302_vm4, %v3303_v28 }
 0x4d7   : > { %v1192_v22 = vpop.xlane.xlu1 %1191  ;;  %v960_v23 = vmul.f32 %v3213_v20, %v3201_v55  ;;  %v1207_v35 = vpop.permute.xlu0 %1206 }
 0x4d8   : > { %3218 = vrcp.f32 %v1192_v22 }
 0x4d9   : > { %2874 = vmatmul.mubr.msk.f32.gmra.mrb[2].mxu0 %vm927_vm7, %v960_v23 }
 0x4da   : > { %v3215_v24 = vpop.eup %3214  ;;  %2876 = vmatprep.mubr.msk.f32.mxu0 %vm3302_vm4, %v3303_v28 }
 0x4db   : > { %v1195_v25 = vpop.xlane.xlu1 %1194  ;;  %v961_v27 = vmul.f32 %v3215_v24, %v3203_v0  ;;  %v1497_v60 = vpop.permute.xlu0 %1496 }
 0x4dc   : > { %3220 = vrcp.f32 %v1195_v25 }
 0x4dd   : > { %2877 = vmatmul.mubr.msk.f32.gmra.mrb[4].mxu0 %vm927_vm7, %v961_v27 }
 0x4de   : > { %2900 = vmatprep.mubr.msk.f32.mxu0 %vm3302_vm4, %v3303_v28  ;;  %v3217_v33 = vpop.eup %3216 }
 0x4df   : > { %v3169_v29 = vpop.permute.xlu1 %3168  ;;  %v1199_v34 = vmul.f32 %v3217_v33, %v3205_v7  ;;  %v1489_v0 = vpop.permute.xlu0 %1488 }
 0x4e0   : > { %v3171_v30 = vunpack.i.h.bf16 %v3169_v29  ;;  %v3170_v31 = vunpack.i.l.bf16 %v3169_v29 }
 0x4e2   : > { %v3066_v32 = vpack.c.bf16 %v3171_v30, %v3170_v31  ;;  %v3219_v36 = vpop.eup %3218 }
 0x4e3   : > { %v1200_v37 = vmul.f32 %v3219_v36, %v3207_v10  ;;  %v3174_v48 = vpop.permute.xlu1 %3173 }
 0x4e4   : > { %3067 = vmatpush3.bf16.msra.mxu0 %v3066_v32  ;;  %v3176_v49 = vunpack.i.h.bf16 %v3174_v48  ;;  %v3175_v50 = vunpack.i.l.bf16 %v3174_v48 }
 0x4e5   : > { %2898 = vmatprep.subr.mxu0 %v3303_v28 }
 0x4e6   : > { %v3221_v38 = vpop.eup %3220  ;;  %v3069_v51 = vpack.c.bf16 %v3176_v49, %v3175_v50 }
 0x4e7   : > { %v1201_v39 = vmul.f32 %v3221_v38, %v3209_v13  ;;  %v1487_v63 = vpop.permute.xlu1 %1486 }
 0x4e8   : > { %2899 = vmatpush3.msk.msra.mxu0 %vm979_vm9, %v1207_v35 }
 0x4e9   : > { %2901 = vmatmul.mubr.msk.f32.vlgmr.msra.gmra.mrb[6].mxu0 %vm927_vm7, %v1199_v34  ;;  %2920 = vmatprep.subr.mxu0 %v3303_v28 }
 0x4ea   : > { %2903 = vmatprep.mubr.msk.f32.mxu0 %vm3302_vm4, %v3303_v28  ;;  %2921 = vmatpush3.msk.msra.mxu0 %vm1312_vm10, %v820_v40 }
 0x4eb   : > { %3072 = vmatprep.subr.bf16.mxu0 %v3301_v26  ;;  %v1491_v1 = vpop.permute.xlu1 %1490 }
 0x4ed   : > { %2904 = vmatmul.mubr.msk.f32.gmra.mrb[8].mxu0 %vm927_vm7, %v1200_v37 }
 0x4ee   : > { %2906 = vmatprep.mubr.msk.f32.mxu0 %vm3302_vm4, %v3303_v28 }
 0x4f1   : > { %2907 = vmatmul.mubr.msk.f32.gmra.mrb[10].mxu0 %vm927_vm7, %v1201_v39 }
 0x4f2   : > { %2922 = vmatprep.mubr.msk.f32.mxu0 %vm3302_vm4, %v3303_v28 }
 0x5a8   : > { %v1048_v42 = vpop.f32.mrb[0].mxu0 }
 0x5a9   : > { %v2872_v43 = vpop.f32.mrb[1].mxu0  ;;  %2923 = vmatmul.mubr.msk.f32.vlgmr.msra.gmra.mrb[12].mxu0 %vm831_vm5, %v1048_v42 }
 0x5aa   : > { %2925 = vmatprep.mubr.msk.f32.mxu0 %vm3302_vm4, %v3303_v28 }
 0x5ac   : > { %v1053_v44 = vpop.f32.mrb[2].mxu0 }
 0x5ad   : > { %v2875_v45 = vpop.f32.mrb[3].mxu0  ;;  %2926 = vmatmul.mubr.msk.f32.gmra.mrb[14].mxu0 %vm831_vm5, %v1053_v44 }
 0x5ae   : > { %2928 = vmatprep.mubr.msk.f32.mxu0 %vm3302_vm4, %v3303_v28 }
 0x5b0   : > { %v1058_v46 = vpop.f32.mrb[4].mxu0 }
 0x5b1   : > { %v2878_v47 = vpop.f32.mrb[5].mxu0  ;;  %2929 = vmatmul.mubr.msk.f32.gmra.mrb[16].mxu0 %vm831_vm5, %v1058_v46 }
 0x5b2   : > { %2952 = vmatprep.mubr.msk.f32.mxu0 %vm3302_vm4, %v3303_v28 }
 0x5bc   : > { %v1287_v52 = vpop.f32.mrb[6].mxu0 }
 0x5bd   : > { %v2902_v53 = vpop.f32.mrb[7].mxu0  ;;  %2912 = vmatmul.mubr.msk.f32.vlgmr.msra.gmra.mrb[18].mxu1 %vm831_vm5, %v1287_v52 }
 0x5be   : > { %3071 = vmatpush3.bf16.xpose.msk.msra.mxu1 %vm3542_vm6, %v3069_v51  ;;  %2914 = vmatprep.mubr.msk.f32.mxu1 %vm3302_vm4, %v3303_v28 }
 0x5bf   : > { %2935 = vmatprep.subr.mxu1 %v3303_v28 }
 0x5c0   : > { %v1292_v54 = vpop.f32.mrb[8].mxu0 }
 0x5c1   : > { %v2905_v55 = vpop.f32.mrb[9].mxu0  ;;  %2915 = vmatmul.mubr.msk.f32.gmra.mrb[20].mxu1 %vm831_vm5, %v1292_v54 }
 0x5c2   : > { %2917 = vmatprep.mubr.msk.f32.mxu1 %vm3302_vm4, %v3303_v28 }
 0x5c4   : > { %v1297_v58 = vpop.f32.mrb[10].mxu0 }
 0x5c5   : > { %v2908_v62 = vpop.f32.mrb[11].mxu0  ;;  %2918 = vmatmul.mubr.msk.f32.gmra.mrb[22].mxu1 %vm831_vm5, %v1297_v58 }
 0x5c6   : > { %2936 = vmatpush3.xpose.msk.msra.mxu1 %vm831_vm5, %v1497_v60  ;;  %2937 = vmatprep.mubr.msk.f32.mxu1 %vm3302_vm4, %v3303_v28 }
 0x5c7   : > { %2961 = vmatprep.subr.mxu1 %v3303_v28 }
 0x5c9   : > { %2938 = vmatmul.mubr.msk.f32.vlgmr.msra.gmra.mrb[24].mxu1 %vm831_vm5, %v1487_v63 }
 0x5ca   : > { %2940 = vmatprep.mubr.msk.f32.mxu1 %vm3302_vm4, %v3303_v28 }
 0x5cd   : > { %2941 = vmatmul.mubr.msk.f32.gmra.mrb[26].mxu1 %vm831_vm5, %v1489_v0 }
 0x5ce   : > { %2943 = vmatprep.mubr.msk.f32.mxu1 %vm3302_vm4, %v3303_v28 }
 0x5d1   : > { %2944 = vmatmul.mubr.msk.f32.gmra.mrb[28].mxu1 %vm831_vm5, %v1491_v1 }
 0x5d2   : > { %2963 = vmatprep.mubr.msk.f32.mxu1 %vm3302_vm4, %v3303_v28 }
 0x67c   : > { %v1472_v2 = vpop.f32.mrb[12].mxu0 }
 0x67d   : > { %v2924_v4 = vpop.f32.mrb[13].mxu0 }
 0x680   : > { %v1477_v5 = vpop.f32.mrb[14].mxu0 }
 0x681   : > { %v2927_v6 = vpop.f32.mrb[15].mxu0 }
 0x684   : > { %v1482_v7 = vpop.f32.mrb[16].mxu0 }
 0x685   : > { %v2930_v8 = vpop.f32.mrb[17].mxu0 }
 0x690   : > { %v1381_v9 = vpop.f32.mrb[18].mxu1 }
 0x691   : > { %v3659_v10 = vadd.f32 %v1472_v2, %v1381_v9  ;;  %v2913_v11 = vpop.f32.mrb[19].mxu1 }
 0x694   : > { %v1386_v12 = vpop.f32.mrb[20].mxu1 }
 0x695   : > { %v3661_v13 = vadd.f32 %v1477_v5, %v1386_v12  ;;  %v2916_v14 = vpop.f32.mrb[21].mxu1 }
 0x698   : > { %v1391_v15 = vpop.f32.mrb[22].mxu1 }
 0x699   : > { %v3663_v16 = vadd.f32 %v1482_v7, %v1391_v15  ;;  %v2919_v17 = vpop.f32.mrb[23].mxu1  ;;  %v821_v7 = vld [vmem:[%s3445_s19 + $0x8] sm:$0xff]  ;;  %s3314_s19 = smov 84  }
 0x69a   : > { %2962 = vmatpush3.msk.msra.mxu1 %vm1312_vm10, %v821_v7  ;;  %v2059_v8 = vrot.slane %v821_v7, 4 }
 0x69b   : > { %3079 = vmatprep.subr.bf16.mxu1 %v3301_v26 }
 0x69c   : > { %v1576_v18 = vpop.f32.mrb[24].mxu1 }
 0x69d   : > { %v1590_v19 = vmul.f32 0.5, %v1576_v18  ;;  %v2939_v20 = vpop.f32.mrb[25].mxu1 }
 0x69f   : > { %v1593_v21 = vsel %vm927_vm7, %v1590_v19, -inf }
 0x6a0   : > { %1594 = vmax.xlane.f32.xlu0 %v1593_v21  ;;  %v1581_v22 = vpop.f32.mrb[26].mxu1 }
 0x6a1   : > { %v1591_v23 = vmul.f32 0.5, %v1581_v22  ;;  %v2942_v24 = vpop.f32.mrb[27].mxu1 }
 0x6a3   : > { %v1596_v25 = vsel %vm927_vm7, %v1591_v23, -inf }
 0x6a4   : > { %1597 = vmax.xlane.f32.xlu1 %v1596_v25  ;;  %v1586_v27 = vpop.f32.mrb[28].mxu1 }
 0x6a5   : > { %v1592_v29 = vmul.f32 0.5, %v1586_v27  ;;  %v2945_v30 = vpop.f32.mrb[29].mxu1 }
 0x6a7   : > { %v1599_v31 = vsel %vm934_vm8, %v1592_v29, -inf }
 0x6a8   : > { %1600 = vmax.xlane.f32.xlu0 %v1599_v31 }
 0x6b5   : > { %1630 = vrot.lane.b32.xlu1 %v3531_v61, %s3311_s29 }
 0x6b9   : > { %3183 = vrot.lane.b32.xlu1 %v3529_v59, %s3312_s14 }
 0x6bd   : > { %1830 = vrot.lane.b32.xlu1 %v3531_v61, %s3312_s14 }
 0x72d   : > { %v1595_v32 = vpop.xlane.xlu0 %1594 }
 0x72e   : > { %v1602_v33 = vsub.f32 %v1590_v19, %v1595_v32 }
 0x730   : > { %v1605_v34 = vmul.f32 1.442695, %v1602_v33 }
 0x731   : > { %v1598_v35 = vpop.xlane.xlu1 %1597 }
 0x732   : > { %3222 = vpow2.f32 %v1605_v34  ;;  %v1603_v36 = vsub.f32 %v1591_v23, %v1598_v35 }
 0x734   : > { %v1607_v37 = vmul.f32 1.442695, %v1603_v36 }
 0x735   : > { %v1601_v38 = vpop.xlane.xlu0 %1600  ;;  %v1631_v47 = vpop.permute.xlu1 %1630 }
 0x736   : > { %3224 = vpow2.f32 %v1607_v37  ;;  %v1604_v39 = vsub.f32 %v1592_v29, %v1601_v38 }
 0x738   : > { %v1609_v40 = vmul.f32 1.442695, %v1604_v39 }
 0x739   : > { %v3184_v48 = vpop.permute.xlu1 %3183 }
 0x73a   : > { %3226 = vpow2.f32 %v1609_v40  ;;  %v3186_v62 = vunpack.i.h.bf16 %v3184_v48  ;;  %v3185_v63 = vunpack.i.l.bf16 %v3184_v48 }
 0x73c   : > { %v3223_v41 = vpop.eup %3222  ;;  %v3076_v2 = vpack.c.bf16 %v3186_v62, %v3185_v63 }
 0x73d   : > { %v1611_v42 = vsel %vm927_vm7, %v3223_v41, 0.0  ;;  %v1831_v50 = vpop.permute.xlu1 %1830 }
 0x73e   : > { %1612 = vadd.xlane.f32.xlu0 %v1611_v42 }
 0x740   : > { %v3225_v43 = vpop.eup %3224 }
 0x741   : > { %v1614_v44 = vsel %vm927_vm7, %v3225_v43, 0.0 }
 0x742   : > { %1615 = vadd.xlane.f32.xlu0 %v1614_v44 }
 0x744   : > { %v3227_v45 = vpop.eup %3226 }
 0x745   : > { %v1617_v46 = vsel %vm934_vm8, %v3227_v45, 0.0 }
 0x746   : > { %1618 = vadd.xlane.f32.xlu1 %v1617_v46 }
 0x757   : > { %1822 = vrot.lane.b32.xlu1 %v3525_v57, %s3313_s16 }
 0x758   : > { %3178 = vrot.lane.b32.xlu0 %v3529_v59, %s3311_s29 }
 0x75c   : > { %1820 = vrot.lane.b32.xlu0 %v3523_v56, %s3313_s16 }
 0x760   : > { %1824 = vrot.lane.b32.xlu0 %v3531_v61, %s3313_s16 }
 0x7cb   : > { %v1613_v49 = vpop.xlane.xlu0 %1612 }
 0x7cc   : > { %3228 = vrcp.f32 %v1613_v49 }
 0x7cf   : > { %v1616_v51 = vpop.xlane.xlu0 %1615 }
 0x7d0   : > { %3230 = vrcp.f32 %v1616_v51 }
 0x7d3   : > { %v1619_v52 = vpop.xlane.xlu1 %1618  ;;  %v3179_v53 = vpop.permute.xlu0 %3178 }
 0x7d4   : > { %v3181_v54 = vunpack.i.h.bf16 %v3179_v53  ;;  %v3180_v55 = vunpack.i.l.bf16 %v3179_v53  ;;  %3232 = vrcp.f32 %v1619_v52 }
 0x7d6   : > { %v3073_v58 = vpack.c.bf16 %v3181_v54, %v3180_v55  ;;  %v3229_v57 = vpop.eup %3228 }
 0x7d7   : > { %v1623_v56 = vmul.f32 %v3229_v57, %v3223_v41  ;;  %v1821_v5 = vpop.permute.xlu0 %1820  ;;  %v1823_v3 = vpop.permute.xlu1 %1822 }
 0x7d8   : > { %3074 = vmatpush3.bf16.msra.mxu0 %v3073_v58 }
 0x7d9   : > { %2950 = vmatprep.subr.mxu0 %v3303_v28 }
 0x7da   : > { %v3231_v60 = vpop.eup %3230 }
 0x7db   : > { %v1624_v0 = vmul.f32 %v3231_v60, %v3225_v43  ;;  %v1825_v6 = vpop.permute.xlu0 %1824 }
 0x7dc   : > { %2951 = vmatpush3.msk.msra.mxu0 %vm979_vm9, %v1631_v47 }
 0x7dd   : > { %2953 = vmatmul.mubr.msk.f32.vlgmr.msra.gmra.mrb[18].mxu0 %vm927_vm7, %v1623_v56  ;;  %3075 = vmatprep.subr.bf16.mxu0 %v3301_v26 }
 0x7de   : > { %2955 = vmatprep.mubr.msk.f32.mxu0 %vm3302_vm4, %v3303_v28  ;;  %v3233_v1 = vpop.eup %3232 }
 0x7df   : > { %v1625_v4 = vmul.f32 %v3233_v1, %v3227_v45 }
 0x7e1   : > { %2956 = vmatmul.mubr.msk.f32.gmra.mrb[20].mxu0 %vm927_vm7, %v1624_v0 }
 0x7e2   : > { %2958 = vmatprep.mubr.msk.f32.mxu0 %vm3302_vm4, %v3303_v28 }
 0x7e3   : > { %3078 = vmatpush3.bf16.xpose.msk.msra.mxu0 %vm3542_vm6, %v3076_v2 }
 0x7e4   : > { %2976 = vmatprep.subr.mxu0 %v3303_v28 }
 0x7e5   : > { %2959 = vmatmul.mubr.msk.f32.gmra.mrb[22].mxu0 %vm927_vm7, %v1625_v4 }
 0x7e6   : > { %2978 = vmatprep.mubr.msk.f32.mxu0 %vm3302_vm4, %v3303_v28 }
 0x7eb   : > { %2977 = vmatpush3.xpose.msk.msra.mxu0 %vm831_vm5, %v1831_v50 }
 0x7ec   : > { %3002 = vmatprep.subr.mxu0 %v3303_v28 }
 0x7ee   : > { %2979 = vmatmul.mubr.msk.f32.vlgmr.msra.gmra.mrb[24].mxu0 %vm831_vm5, %v1821_v5 }
 0x7ef   : > { %2981 = vmatprep.mubr.msk.f32.mxu0 %vm3302_vm4, %v3303_v28  ;;  %3003 = vmatpush3.msk.msra.mxu0 %vm1312_vm10, %v2059_v8 }
 0x7f0   : > { %3085 = vmatprep.subr.bf16.mxu0 %v3301_v26 }
 0x7f2   : > { %2982 = vmatmul.mubr.msk.f32.gmra.mrb[26].mxu0 %vm831_vm5, %v1823_v3 }
 0x7f3   : > { %2984 = vmatprep.mubr.msk.f32.mxu0 %vm3302_vm4, %v3303_v28 }
 0x7f6   : > { %2985 = vmatmul.mubr.msk.f32.gmra.mrb[28].mxu0 %vm831_vm5, %v1825_v6 }
 0x7f7   : > { %3004 = vmatprep.mubr.msk.f32.mxu0 %vm3302_vm4, %v3303_v28 }
 0x8b0   : > { %v1711_v9 = vpop.f32.mrb[18].mxu0 }
 0x8b1   : > { %v2954_v11 = vpop.f32.mrb[19].mxu0  ;;  %2964 = vmatmul.mubr.msk.f32.vlgmr.msra.gmra.mrb[30].mxu1 %vm831_vm5, %v1711_v9 }
 0x8b2   : > { %2966 = vmatprep.mubr.msk.f32.mxu1 %vm3302_vm4, %v3303_v28 }
 0x8b4   : > { %v1716_v12 = vpop.f32.mrb[20].mxu0 }
 0x8b5   : > { %v2957_v14 = vpop.f32.mrb[21].mxu0  ;;  %2967 = vmatmul.mubr.msk.f32.gmra.mrb[32].mxu1 %vm831_vm5, %v1716_v12 }
 0x8b6   : > { %2969 = vmatprep.mubr.msk.f32.mxu1 %vm3302_vm4, %v3303_v28  ;;  %v2733_v14 = vld [vmem:[%s3886_s18] ss:$0 sm:$0xff] }
 0x8b8   : > { %v1721_v15 = vpop.f32.mrb[22].mxu0 }
 0x8b9   : > { %v2960_v17 = vpop.f32.mrb[23].mxu0  ;;  %2970 = vmatmul.mubr.msk.f32.gmra.mrb[34].mxu1 %vm831_vm5, %v1721_v15  ;;  %v3258_v15 = vld [vmem:[#allocation2] sm:$0xff] }
 0x8ba   : > { %2993 = vmatprep.mubr.msk.f32.mxu1 %vm3302_vm4, %v3303_v28 }
 0x8c1   : > { %v1910_v18 = vpop.f32.mrb[24].mxu0 }
 0x8c2   : > { %v1924_v19 = vmul.f32 0.5, %v1910_v18  ;;  %v2980_v20 = vpop.f32.mrb[25].mxu0 }
 0x8c4   : > { %v1927_v21 = vsel %vm927_vm7, %v1924_v19, -inf }
 0x8c5   : > { %1928 = vmax.xlane.f32.xlu1 %v1927_v21  ;;  %v1915_v22 = vpop.f32.mrb[26].mxu0 }
 0x8c6   : > { %v1925_v23 = vmul.f32 0.5, %v1915_v22  ;;  %v2983_v24 = vpop.f32.mrb[27].mxu0  ;;  %v3259_v22 = vld [vmem:[#allocation2 + $0x8] sm:$0xff] }
 0x8c8   : > { %v1930_v25 = vsel %vm927_vm7, %v1925_v23, -inf }
 0x8c9   : > { %1931 = vmax.xlane.f32.xlu0 %v1930_v25  ;;  %v1920_v27 = vpop.f32.mrb[28].mxu0 }
 0x8ca   : > { %v1926_v29 = vmul.f32 0.5, %v1920_v27  ;;  %v2986_v30 = vpop.f32.mrb[29].mxu0 }
 0x8cc   : > { %v1933_v31 = vsel %vm934_vm8, %v1926_v29, -inf }
 0x8cd   : > { %1934 = vmax.xlane.f32.xlu0 %v1933_v31  ;;  %v3260_v31 = vld [vmem:[#allocation2 + $0x10] sm:$0x1] }
 0x952   : > { %v1929_v32 = vpop.xlane.xlu1 %1928 }
 0x953   : > { %v1936_v33 = vsub.f32 %v1924_v19, %v1929_v32 }
 0x955   : > { %v1939_v34 = vmul.f32 1.442695, %v1936_v33 }
 0x956   : > { %v1932_v35 = vpop.xlane.xlu0 %1931 }
 0x957   : > { %3234 = vpow2.f32 %v1939_v34  ;;  %v1937_v36 = vsub.f32 %v1925_v23, %v1932_v35 }
 0x959   : > { %v1941_v37 = vmul.f32 1.442695, %v1937_v36 }
 0x95a   : > { %v1935_v38 = vpop.xlane.xlu0 %1934 }
 0x95b   : > { %3236 = vpow2.f32 %v1941_v37  ;;  %v1938_v39 = vsub.f32 %v1926_v29, %v1935_v38 }
 0x95d   : > { %v1943_v40 = vmul.f32 1.442695, %v1938_v39 }
 0x95f   : > { %3238 = vpow2.f32 %v1943_v40 }
 0x961   : > { %v3235_v41 = vpop.eup %3234 }
 0x962   : > { %v1945_v42 = vsel %vm927_vm7, %v3235_v41, 0.0 }
 0x963   : > { %1946 = vadd.xlane.f32.xlu0 %v1945_v42 }
 0x965   : > { %v3237_v43 = vpop.eup %3236 }
 0x966   : > { %v1948_v44 = vsel %vm927_vm7, %v3237_v43, 0.0 }
 0x967   : > { %1949 = vadd.xlane.f32.xlu1 %v1948_v44 }
 0x969   : > { %v3239_v45 = vpop.eup %3238 }
 0x96a   : > { %v1951_v46 = vsel %vm934_vm8, %v3239_v45, 0.0 }
 0x96b   : > { %1952 = vadd.xlane.f32.xlu0 %v1951_v46 }
 0x978   : > { %3188 = vrot.lane.b32.xlu1 %v3529_v59, %s3314_s19 }
 0x981   : > { %1964 = vrot.lane.b32.xlu0 %v3531_v61, %s3314_s19 }
 0x984   : > { %v1803_v47 = vpop.f32.mrb[30].mxu1 }
 0x985   : > { %v1817_v48 = vadd.f32 %v1803_v47, %v3659_v10  ;;  %v2965_v49 = vpop.f32.mrb[31].mxu1 }
 0x988   : > { %v1808_v50 = vpop.f32.mrb[32].mxu1 }
 0x989   : > { %v1818_v51 = vadd.f32 %v1808_v50, %v3661_v13  ;;  %v2968_v52 = vpop.f32.mrb[33].mxu1 }
 0x98a   : > { %v2227_v52 = vld [vmem:[%s3462_s26 + $0x8] sm:$0xff] }
 0x98c   : > { %v1813_v53 = vpop.f32.mrb[34].mxu1 }
 0x98d   : > { %v1819_v54 = vadd.f32 %v1813_v53, %v3663_v16  ;;  %v2971_v55 = vpop.f32.mrb[35].mxu1 }
 0x9f0   : > { %v1947_v58 = vpop.xlane.xlu0 %1946 }
 0x9f1   : > { %3240 = vrcp.f32 %v1947_v58 }
 0x9f4   : > { %v1950_v57 = vpop.xlane.xlu1 %1949 }
 0x9f5   : > { %3242 = vrcp.f32 %v1950_v57 }
 0x9f8   : > { %v3189_v56 = vpop.permute.xlu1 %3188  ;;  %v1953_v59 = vpop.xlane.xlu0 %1952 }
 0x9f9   : > { %v3191_v60 = vunpack.i.h.bf16 %v3189_v56  ;;  %v3190_v61 = vunpack.i.l.bf16 %v3189_v56  ;;  %3244 = vrcp.f32 %v1953_v59 }
 0x9fb   : > { %v3080_v62 = vpack.c.bf16 %v3191_v60, %v3190_v61  ;;  %v3241_v10 = vpop.eup %3240 }
 0x9fc   : > { %v1957_v13 = vmul.f32 %v3241_v10, %v3235_v41  ;;  %v1965_v63 = vpop.permute.xlu0 %1964 }
 0x9fd   : > { %3081 = vmatpush3.bf16.msra.mxu1 %v3080_v62 }
 0x9fe   : > { %2991 = vmatprep.subr.mxu1 %v3303_v28 }
 0x9ff   : > { %v3243_v0 = vpop.eup %3242 }
 0xa00   : > { %v1958_v16 = vmul.f32 %v3243_v0, %v3237_v43  ;;  %v2735_v0 = vld [vmem:[%s3888_s27] ss:$0 sm:$0xff] }
 0xa01   : > { %2992 = vmatpush3.msk.msra.mxu1 %vm979_vm9, %v1965_v63 }
 0xa02   : > { %2994 = vmatmul.mubr.msk.f32.vlgmr.msra.gmra.mrb[36].mxu1 %vm927_vm7, %v1957_v13  ;;  %3082 = vmatprep.subr.bf16.mxu1 %v3301_v26 }
 0xa03   : > { %2996 = vmatprep.mubr.msk.f32.mxu1 %vm3302_vm4, %v3303_v28  ;;  %v3245_v1 = vpop.eup %3244 }
 0xa04   : > { %v1959_v2 = vmul.f32 %v3245_v1, %v3239_v45 }
 0xa06   : > { %2997 = vmatmul.mubr.msk.f32.gmra.mrb[38].mxu1 %vm927_vm7, %v1958_v16 }
 0xa07   : > { %2999 = vmatprep.mubr.msk.f32.mxu1 %vm3302_vm4, %v3303_v28 }
 0xa0a   : > { %3000 = vmatmul.mubr.msk.f32.gmra.mrb[40].mxu1 %vm927_vm7, %v1959_v2 }
 0xa0b   : > { %3017 = vmatprep.mubr.msk.f32.mxu1 %vm3302_vm4, %v3303_v28 }
 0xad5   : > { %v2045_v4 = vpop.f32.mrb[36].mxu1 }
 0xad6   : > { %v2995_v5 = vpop.f32.mrb[37].mxu1  ;;  %3005 = vmatmul.mubr.msk.f32.vlgmr.msra.gmra.mrb[30].mxu0 %vm831_vm5, %v2045_v4 }
 0xad7   : > { %3007 = vmatprep.mubr.msk.f32.mxu0 %vm3302_vm4, %v3303_v28 }
 0xad9   : > { %v2050_v3 = vpop.f32.mrb[38].mxu1 }
 0xada   : > { %v2998_v6 = vpop.f32.mrb[39].mxu1  ;;  %3008 = vmatmul.mubr.msk.f32.gmra.mrb[32].mxu0 %vm831_vm5, %v2050_v3 }
 0xadb   : > { %3010 = vmatprep.mubr.msk.f32.mxu0 %vm3302_vm4, %v3303_v28 }
 0xadd   : > { %v2055_v7 = vpop.f32.mrb[40].mxu1 }
 0xade   : > { %v3001_v8 = vpop.f32.mrb[41].mxu1  ;;  %3011 = vmatmul.mubr.msk.f32.gmra.mrb[34].mxu0 %vm831_vm5, %v2055_v7 }
 0xadf   : > { %3042 = vmatprep.mubr.msk.f32.mxu0 %vm3302_vm4, %v3303_v28 }
 0xba9   : > { %v2137_v9 = vpop.f32.mrb[30].mxu0 }
 0xbaa   : > { %v2151_v11 = vadd.f32 %v2137_v9, %v1817_v48  ;;  %v3006_v12 = vpop.f32.mrb[31].mxu0 }
 0xbab   : > { %v2352_v12 = vld [vmem:[%s3476_s0 + $0x8] sm:$0xff] }
 0xbac   : > { %v2154_v17 = vadd.f32 %v3258_v15, %v2151_v11  ;;  %v2351_v11 = vld [vmem:[%s3476_s0] sm:$0xff]  ;;  %v2353_v15 = vld [vmem:[%s3476_s0 + $0x10] sm:$0xff] }
 0xbad   : > { %v2142_v18 = vpop.f32.mrb[32].mxu0 }
 0xbae   : > { %v3755_v19 = vadd.f32 %v2733_v14, %v2154_v17  ;;  %v2152_v20 = vadd.f32 %v2142_v18, %v1818_v51  ;;  %v3009_v21 = vpop.f32.mrb[33].mxu0  ;;  %v2226_v51 = vld [vmem:[%s3462_s26] sm:$0xff]  ;;  %s3887_s26 = scalar_lea.vmem %s3852_s7, %s3419_s15  ;;  %v2354_v17 = vld [vmem:[%s3476_s0 + $0x18] sm:$0xff]  ;;  %s3889_s15 = sld [smem:[#allocation3_spill]] }
 0xbaf   : > { %v3083_v53 = vpack.c.bf16 %v2227_v52, %v2226_v51  ;;  %v2734_v13 = vld [vmem:[%s3887_s26] ss:$0 sm:$0xff]  ;;  %v3089_v18 = vpack.c.bf16 %v2354_v17, %v2353_v15  ;;  %v2356_v21 = vld [vmem:[%s3476_s0 + $0x28] sm:$0xff] }
 0xbb0   : > { %v2155_v23 = vadd.f32 %v3259_v22, %v2152_v20  ;;  %v2169_v24 = vsel %vm662_vm2, %v3755_v19, 0.0  ;;  %v2355_v20 = vld [vmem:[%s3476_s0 + $0x20] sm:$0xff] }
 0xbb1   : > { %2170 = vadd.xlane.f32.xlu1 %v2169_v24  ;;  %v2147_v25 = vpop.f32.mrb[34].mxu0  ;;  %3084 = vmatpush3.bf16.msra.mxu1 %v3083_v53  ;;  %v3092_v22 = vpack.c.bf16 %v2356_v21, %v2355_v20  ;;  %v2358_v24 = vld [vmem:[%s3476_s0 + $0x38] sm:$0xff] }
 0xbb2   : > { %v3759_v27 = vadd.f32 %v2733_v14, %v2155_v23  ;;  %v2153_v29 = vadd.f32 %v2147_v25, %v1819_v54  ;;  %v3012_v30 = vpop.f32.mrb[35].mxu0  ;;  %v2357_v23 = vld [vmem:[%s3476_s0 + $0x30] sm:$0xff] }
 0xbb3   : > { %v3095_v25 = vpack.c.bf16 %v2358_v24, %v2357_v23 }
 0xbb4   : > { %v2156_v32 = vadd.f32 %v3260_v31, %v2153_v29  ;;  %v2172_v33 = vsel %vm662_vm2, %v3759_v27, 0.0  ;;  %v2736_v29 = vld [vmem:[%s631_s13] ss:$0 sm:$0xff]  ;;  %p2744_p8 = scmp.ne.s32.totalorder %s3889_s15, 1 }
 0xbb5   : > { %2173 = vadd.xlane.f32.xlu0 %v2172_v33 }
 0xbb6   : > { %v3763_v34 = vadd.f32 %v2733_v14, %v2156_v32  ;;  %v3086_v14 = vpack.c.bf16 %v2352_v12, %v2351_v11 }
 0xbb8   : > { %v2175_v35 = vsel %vm669_vm3, %v3763_v34, 0.0  ;;  %3087 = vmatpush3.bf16.msra.mxu0 %v3086_v14 }
 0xbb9   : > { %2176 = vadd.xlane.f32.xlu1 %v2175_v35  ;;  %3088 = vmatprep.subr.bf16.mxu0 %v3301_v26 }
 0xbbc   : > { %3090 = vmatpush3.bf16.msra.mxu0 %v3089_v18 }
 0xbbd   : > { %3091 = vmatprep.subr.bf16.mxu0 %v3301_v26 }
 0xbc0   : > { %3093 = vmatpush3.bf16.msra.mxu0 %v3092_v22 }
 0xbc1   : > { %3094 = vmatprep.subr.bf16.mxu0 %v3301_v26 }
 0xbc4   : > { %3096 = vmatpush3.bf16.msra.mxu0 %v3095_v25 }
 0xc3e   : > { %v2171_v36 = vpop.xlane.xlu1 %2170 }
 0xc3f   : > { %v2178_v37 = vmul.f32 0.0625, %v2171_v36 }
 0xc41   : > { %v2181_v38 = vsub.f32 %v3755_v19, %v2178_v37 }
 0xc42   : > { %v2174_v39 = vpop.xlane.xlu0 %2173 }
 0xc43   : > { %v2179_v40 = vmul.f32 0.0625, %v2174_v39  ;;  %v2184_v41 = vmul.f32 %v2181_v38, %v2181_v38 }
 0xc45   : > { %v2182_v42 = vsub.f32 %v3759_v27, %v2179_v40  ;;  %v2187_v43 = vsel %vm662_vm2, %v2184_v41, 0.0 }
 0xc46   : > { %2188 = vadd.xlane.f32.xlu0 %v2187_v43  ;;  %v2177_v44 = vpop.xlane.xlu1 %2176 }
 0xc47   : > { %v2180_v45 = vmul.f32 0.0625, %v2177_v44  ;;  %v2185_v46 = vmul.f32 %v2182_v42, %v2182_v42 }
 0xc49   : > { %v2183_v47 = vsub.f32 %v3763_v34, %v2180_v45  ;;  %v2190_v48 = vsel %vm662_vm2, %v2185_v46, 0.0 }
 0xc4a   : > { %2191 = vadd.xlane.f32.xlu1 %v2190_v48 }
 0xc4b   : > { %v2186_v49 = vmul.f32 %v2183_v47, %v2183_v47 }
 0xc4d   : > { %v2193_v50 = vsel %vm669_vm3, %v2186_v49, 0.0 }
 0xc4e   : > { %2194 = vadd.xlane.f32.xlu0 %v2193_v50 }
 0xcd3   : > { %v2189_v54 = vpop.xlane.xlu0 %2188 }
 0xcd4   : > { %v2196_v55 = vmul.f32 0.0625, %v2189_v54 }
 0xcd6   : > { %v2199_v58 = vadd.f32 1e-05, %v2196_v55 }
 0xcd7   : > { %v2192_v57 = vpop.xlane.xlu1 %2191 }
 0xcd8   : > { %3246 = vrsqrt.f32 %v2199_v58  ;;  %v2197_v56 = vmul.f32 0.0625, %v2192_v57 }
 0xcda   : > { %v2200_v59 = vadd.f32 1e-05, %v2197_v56 }
 0xcdb   : > { %v2195_v60 = vpop.xlane.xlu0 %2194 }
 0xcdc   : > { %3248 = vrsqrt.f32 %v2200_v59  ;;  %v2198_v61 = vmul.f32 0.0625, %v2195_v60 }
 0xcde   : > { %v2201_v62 = vadd.f32 1e-05, %v2198_v61 }
 0xce0   : > { %3250 = vrsqrt.f32 %v2201_v62 }
 0xce2   : > { %v3247_v10 = vpop.eup %3246 }
 0xce3   : > { %v2205_v63 = vmul.f32 %v3247_v10, %v2181_v38 }
 0xce5   : > { %v2214_v16 = vmul.f32 %v2734_v13, %v2205_v63 }
 0xce6   : > { %v3249_v1 = vpop.eup %3248 }
 0xce7   : > { %v2223_v2 = vadd.f32 %v2735_v0, %v2214_v16  ;;  %v2206_v4 = vmul.f32 %v3249_v1, %v2182_v42 }
 0xce9   : > { %3018 = vmatmul.mubr.msk.f32.vlgmr.msra.gmra.mrb[42].mxu1 %vm662_vm2, %v2223_v2  ;;  %v2215_v5 = vmul.f32 %v2734_v13, %v2206_v4 }
 0xcea   : > { %v3251_v3 = vpop.eup %3250  ;;  %3020 = vmatprep.mubr.msk.f32.mxu1 %vm3302_vm4, %v3303_v28 }
 0xceb   : > { %v2224_v6 = vadd.f32 %v2735_v0, %v2215_v5  ;;  %v2207_v7 = vmul.f32 %v3251_v3, %v2183_v47 }
 0xced   : > { %3021 = vmatmul.mubr.msk.f32.gmra.mrb[44].mxu1 %vm662_vm2, %v2224_v6  ;;  %v2216_v8 = vmul.f32 %v2734_v13, %v2207_v7 }
 0xcee   : > { %3023 = vmatprep.mubr.msk.f32.mxu1 %vm3302_vm4, %v3303_v28 }
 0xcef   : > { %v2225_v9 = vadd.f32 %v2735_v0, %v2216_v8  ;;  %v2740_v0 = vld [vmem:[%s639_s23] ss:$0 sm:$0xff] }
 0xcf1   : > { %3024 = vmatmul.mubr.msk.f32.gmra.mrb[46].mxu1 %vm662_vm2, %v2225_v9 }
 0xdbc   : > { %v2310_v30 = vpop.f32.mrb[42].mxu1 }
 0xdbd   : > { %v2311_v31 = vadd.f32 %v2736_v29, %v2310_v30  ;;  %v3019_v32 = vpop.f32.mrb[43].mxu1 }
 0xdbf   : > { %v2327_v33 = vmul.f32 0.044715, %v2311_v31  ;;  %v2324_v55 = vmul.f32 0.5, %v2311_v31 }
 0xdc0   : > { %v2315_v35 = vpop.f32.mrb[44].mxu1 }
 0xdc1   : > { %v2330_v36 = vmul.f32 %v2327_v33, %v2311_v31  ;;  %v2316_v37 = vadd.f32 %v2736_v29, %v2315_v35  ;;  %v3022_v38 = vpop.f32.mrb[45].mxu1 }
 0xdc3   : > { %v2333_v39 = vmul.f32 %v2330_v36, %v2311_v31  ;;  %v2328_v40 = vmul.f32 0.044715, %v2316_v37  ;;  %v2325_v59 = vmul.f32 0.5, %v2316_v37 }
 0xdc4   : > { %v2320_v26 = vpop.f32.mrb[46].mxu1 }
 0xdc5   : > { %v2336_v41 = vadd.f32 %v2333_v39, %v2311_v31  ;;  %v2331_v42 = vmul.f32 %v2328_v40, %v2316_v37  ;;  %v2321_v43 = vadd.f32 %v2736_v29, %v2320_v26  ;;  %v3025_v44 = vpop.f32.mrb[47].mxu1 }
 0xdc7   : > { %v2339_v45 = vmul.f32 0.7978846, %v2336_v41  ;;  %v2334_v46 = vmul.f32 %v2331_v42, %v2316_v37  ;;  %v2329_v47 = vmul.f32 0.044715, %v2321_v43  ;;  %v2326_v10 = vmul.f32 0.5, %v2321_v43 }
 0xdc9   : > { %3252 = vtanh.f32 %v2339_v45  ;;  %v2337_v48 = vadd.f32 %v2334_v46, %v2316_v37  ;;  %v2332_v49 = vmul.f32 %v2329_v47, %v2321_v43 }
 0xdcb   : > { %v2335_v50 = vmul.f32 %v2332_v49, %v2321_v43  ;;  %v2340_v51 = vmul.f32 0.7978846, %v2337_v48 }
 0xdcd   : > { %v2338_v52 = vadd.f32 %v2335_v50, %v2321_v43  ;;  %3254 = vtanh.f32 %v2340_v51 }
 0xdcf   : > { %v2341_v53 = vmul.f32 0.7978846, %v2338_v52 }
 0xdd1   : > { %3256 = vtanh.f32 %v2341_v53 }
 0xdd3   : > { %v3253_v54 = vpop.eup %3252 }
 0xdd4   : > { %v2345_v58 = vadd.f32 1.0, %v3253_v54 }
 0xdd6   : > { %v2348_v57 = vmul.f32 %v2345_v58, %v2324_v55 }
 0xdd7   : > { %v3255_v56 = vpop.eup %3254 }
 0xdd8   : > { %3043 = vmatmul.mubr.msk.f32.vlgmr.msra.gmra.mrb[36].mxu0 %vm2366_vm11, %v2348_v57  ;;  %v2346_v60 = vadd.f32 1.0, %v3255_v56 }
 0xdd9   : > { %3045 = vmatprep.mubr.msk.f32.mxu0 %vm3302_vm4, %v3303_v28 }
 0xdda   : > { %v2349_v61 = vmul.f32 %v2346_v60, %v2325_v59 }
 0xddb   : > { %v3257_v62 = vpop.eup %3256 }
 0xddc   : > { %3046 = vmatmul.mubr.msk.f32.gmra.mrb[38].mxu0 %vm2366_vm11, %v2349_v61  ;;  %v2347_v13 = vadd.f32 1.0, %v3257_v62 }
 0xddd   : > { %3048 = vmatprep.mubr.msk.f32.mxu0 %vm3302_vm4, %v3303_v28 }
 0xdde   : > { %v2350_v63 = vmul.f32 %v2347_v13, %v2326_v10 }
 0xde0   : > { %3049 = vmatmul.mubr.msk.f32.gmra.mrb[40].mxu0 %vm2366_vm11, %v2350_v63 }
 0xeab   : > { %v2442_v16 = vpop.f32.mrb[36].mxu0 }
 0xeac   : > { %v2443_v1 = vadd.f32 %v2740_v0, %v2442_v16  ;;  %v3044_v2 = vpop.f32.mrb[37].mxu0 }
 0xeae   : > { %v2456_v4 = vadd.f32 %v2443_v1, %v3755_v19 }
 0xeaf   : > { %v2447_v5 = vpop.f32.mrb[38].mxu0 }
 0xeb0   : > { %2459 = vst.msk [vmem:[#allocation2] sm:$0xff] %vm662_vm2, %v2456_v4  ;;  %v2448_v3 = vadd.f32 %v2740_v0, %v2447_v5  ;;  %v3047_v6 = vpop.f32.mrb[39].mxu0  ;;  %2466 = vst.msk [vmem:[%s3481_s2] sm:$0xff] (!%p2744_p8), %vm662_vm2, %v2456_v4 }
 0xeb2   : > { %v2457_v7 = vadd.f32 %v2448_v3, %v3759_v27  ;;  %2465 = sbr.rel (%p2744_p8) target bundleno = 3769 (0xeb9), region = 80 }
 0xeb3   : > { %v2452_v28 = vpop.f32.mrb[40].mxu0 }
 0xeb4   : > { %2460 = vst.msk [vmem:[#allocation2 + $0x8] sm:$0xff] %vm662_vm2, %v2457_v7  ;;  %v2453_v8 = vadd.f32 %v2740_v0, %v2452_v28  ;;  %v3050_v9 = vpop.f32.mrb[41].mxu0  ;;  %2467 = vst.msk [vmem:[%s3481_s2 + $0x8] sm:$0xff] (!%p2744_p8), %vm662_vm2, %v2457_v7 }
 0xeb6   : > { %v2458_v11 = vadd.f32 %v2453_v8, %v3763_v34 }
 0xeb8   : > { %2461 = vst.msk [vmem:[#allocation2 + $0x10] sm:$0x1] %vm669_vm3, %v2458_v11  ;;  %2468 = vst.msk [vmem:[%s3481_s2 + $0x10] sm:$0x1] (!%p2744_p8), %vm669_vm3, %v2458_v11 }
 0xeb9 PF: > { %s3890_s23 = sld [smem:[#allocation6_spill]]  ;;  %s3891_s25 = sld [smem:[#allocation4_spill]] }
 0xeba   : > { %s3892_s26 = sld [smem:[#allocation5_spill]]  ;;  %s3893_s27 = sld [smem:[#allocation7_spill]] }
 0xebb   : > { %s3894_s28 = sld [smem:[#allocation8_spill]] }
 0xebf   : > { %s23_s29 = sadd.s32 1, %s3890_s23  }
 0xec0   : > { %p20_p9 = scmp.ge.s32.totalorder %s23_s29, 6  }
 0xec2   :  { %22 = sbr.rel (!%p20_p9) target bundleno = 6 (0x6), region = 146 }

// kernel: run.9
= control target key start
LH: loop header
LB: loop body
LE: loop exit
PB: predicated region body
PF: predicated region fallthrough
CT: control target
= control target key end

     0   :  { %s679_s21 = smov 0   ;;  %s739_s0 = inlined_call_operand.vmem [shape: f32[2,17,16], index: 0, kind: input, shape index: {}]   ;;  %s740_s1 = inlined_call_operand.vmem [shape: f32[1,16], index: 1, kind: input, shape index: {}]   ;;  %s741_s2 = inlined_call_operand.vmem [shape: f32[1,16], index: 2, kind: input, shape index: {}]   ;;  %s742_s3 = inlined_call_operand.vmem [shape: f32[16,32], index: 3, kind: input, shape index: {}]   ;;  %s743_s4 = inlined_call_operand.vmem [shape: f32[1,32], index: 4, kind: input, shape index: {}]   ;;  %s744_s5 = inlined_call_operand.vmem [shape: f32[2,16,32], index: 5, kind: input, shape index: {}]   ;;  %s745_s6 = inlined_call_operand.vmem [shape: f32[2,16,1], index: 6, kind: output, shape index: {}]  }
   0x1 LB: > { %s570_s22 = sadd.s32 4294967295, %s639_s21   ;;  %p574_p0 = scmp.ge.s32.totalorder %s639_s21, 1  ;;  %s639_s21 = sphi %s679_s21, %s16_s21  }
   0x2   : > { %p222_p1 = scmp.lt.s32.totalorder %s639_s21, 3 }
   0x4   : > { %p223_p2 = pnand %p574_p0, %p222_p1 }
   0x5   : > { %p257_p3 = scmp.lt.s32.totalorder (!%p223_p2), %s570_s22, 1  ;;  %vm277_vm0 = vcmask (!%p223_p2), 130048   ;;  %vm284_vm1 = vcmask (!%p223_p2), 122880   ;;  %v337_v21 = vld [vmem:[%s742_s3] sm:$0xff] (!%p223_p2)  ;;  %v338_v22 = vld [vmem:[%s742_s3 + $0x8] sm:$0xff] (!%p223_p2)  ;;  %v641_v23 = vmov (!%p223_p2), 0.0|0.0  }
   0x6   : > { %226 = sbr.rel (%p223_p2) target bundleno = 704 (0x2c0), region = 44  ;;  %611 = vmatprep.subr.bf16.mxu1 (!%p223_p2), %v641_v23  ;;  %v609_v24 = vpack.c.bf16 (!%p223_p2), %v338_v22, %v337_v21  ;;  %vm642_vm2 = vmmov (!%p223_p2), 0   ;;  %v643_v25 = vmov (!%p223_p2), 0.0   ;;  %608 = vmatprep.subr.bf16.mxu0 (!%p223_p2), %v641_v23  ;;  %v580_v36 = vld [vmem:[%s740_s1] ss:$0 sm:$0xff] (!%p223_p2)  ;;  %vm437_vm3 = vcmask (!%p223_p2), 261120  }
   0x7   : > { %602 = vmatprep.mubr.msk.f32.mxu1 (!%p223_p2), %vm642_vm2, %v643_v25  ;;  %599 = vmatprep.mubr.msk.f32.mxu0 (!%p223_p2), %vm642_vm2, %v643_v25  ;;  %v581_v38 = vld [vmem:[%s741_s2] ss:$0 sm:$0xff] (!%p223_p2)  ;;  %vm469_vm4 = vcmask (!%p223_p2), 1040384   ;;  %vm482_vm5 = vcmask (!%p223_p2), 261121   ;;  %vm489_vm6 = vcmask (!%p223_p2), 253952   ;;  %vm499_vm7 = vcmask (!%p223_p2), 7168  }
   0x8   : > { %612 = vmatpush3.bf16.msra.mxu1 (!%p223_p2), %v609_v24  ;;  %610 = vmatpush3.bf16.msra.mxu0 (!%p223_p2), %v609_v24  ;;  %vm497_vm8 = vcmask (!%p223_p2), 7169   ;;  %vm501_vm9 = vcmask (!%p223_p2), 0  }
   0xd   : > { %s747_s22 = smov (!%p257_p3, %s570_s22), 1 }
   0xe   : > { %s613_s23 = smul.u32 24, %s747_s22  ;;  %s588_s11 = sshll.u32 %s747_s22, 4 }
   0xf   : > { %s266_s14 = scalar_lea.vmem %s744_s5, %s588_s11  ;;  %s271_s19 = scalar_lea.vmem %s745_s6, %s588_s11 }
  0x10   : > { %s261_s26 = scalar_lea.vmem %s739_s0, %s613_s23  ;;  %v435_v49 = vld [vmem:[%s266_s14] sm:$0xff]  ;;  %v436_v50 = vld [vmem:[%s266_s14 + $0x8] sm:$0xff] }
  0x11   : > { %v273_v0 = vld [vmem:[%s261_s26 + $0x8] sm:$0xff]  ;;  %v274_v1 = vld [vmem:[%s261_s26 + $0x10] sm:$0x1]  ;;  %v272_v2 = vld [vmem:[%s261_s26] sm:$0xff]  ;;  %v438_v51 = vsel %vm437_vm3, %v435_v49, 0.0  ;;  %v439_v52 = vsel %vm437_vm3, %v436_v50, 0.0 }
  0x12   : > { %v281_v3 = vsel %vm277_vm0, %v273_v0, 0.0  ;;  %v285_v4 = vsel %vm284_vm1, %v274_v1, 0.0  ;;  %v278_v5 = vsel %vm277_vm0, %v272_v2, 0.0  ;;  %v440_v53 = vadd.f32 %v439_v52, %v438_v51 }
  0x13   : > { %282 = vadd.xlane.f32.xlu0 %v281_v3  ;;  %286 = vadd.xlane.f32.xlu1 %v285_v4 }
  0x14   : > { %v441_v54 = vrot.slane %v440_v53, 4 }
  0x16   : > { %v442_v55 = vadd.f32 %v441_v54, %v440_v53 }
  0x17   : > { %279 = vadd.xlane.f32.xlu0 %v278_v5 }
  0x18   : > { %v443_v56 = vrot.slane %v442_v55, 2 }
  0x1a   : > { %v444_v57 = vadd.f32 %v443_v56, %v442_v55 }
  0x1c   : > { %v445_v58 = vrot.slane %v444_v57, 1 }
  0x1e   : > { %v446_v59 = vadd.f32 %v445_v58, %v444_v57 }
  0x20   : > { %v447_v60 = vmul.f32 0.0625, %v446_v59 }
  0x22   : > { %v448_v61 = vsub.f32 %v435_v49, %v447_v60  ;;  %v449_v62 = vsub.f32 %v436_v50, %v447_v60 }
  0x24   : > { %v450_v63 = vmul.f32 %v448_v61, %v448_v61 }
  0xa0   : > { %v283_v6 = vpop.xlane.xlu0 %282  ;;  %v287_v7 = vpop.xlane.xlu1 %286 }
  0xa1   : > { %v290_v8 = vmul.f32 0.0625, %v283_v6  ;;  %v291_v9 = vmul.f32 0.0625, %v287_v7 }
  0xa3   : > { %v293_v10 = vsub.f32 %v273_v0, %v290_v8  ;;  %v294_v11 = vsub.f32 %v274_v1, %v291_v9  ;;  %v451_v0 = vmul.f32 %v449_v62, %v449_v62  ;;  %v452_v1 = vsel %vm437_vm3, %v450_v63, 0.0 }
  0xa4   : > { %v280_v12 = vpop.xlane.xlu0 %279 }
  0xa5   : > { %v289_v13 = vmul.f32 0.0625, %v280_v12  ;;  %v296_v14 = vmul.f32 %v293_v10, %v293_v10  ;;  %v297_v15 = vmul.f32 %v294_v11, %v294_v11 }
  0xa7   : > { %v292_v16 = vsub.f32 %v272_v2, %v289_v13  ;;  %v301_v17 = vsel %vm277_vm0, %v296_v14, 0.0  ;;  %v304_v18 = vsel %vm284_vm1, %v297_v15, 0.0  ;;  %v453_v2 = vsel %vm437_vm3, %v451_v0, 0.0 }
  0xa8   : > { %302 = vadd.xlane.f32.xlu1 %v301_v17  ;;  %v454_v3 = vadd.f32 %v453_v2, %v452_v1  ;;  %v582_v17 = vld [vmem:[%s743_s4] ss:$0 sm:$0xff] }
  0xa9   : > { %v295_v19 = vmul.f32 %v292_v16, %v292_v16 }
  0xaa   : > { %v455_v4 = vrot.slane %v454_v3, 4 }
  0xab   : > { %v298_v20 = vsel %vm277_vm0, %v295_v19, 0.0 }
  0xac   : > { %305 = vadd.xlane.f32.xlu1 %v304_v18  ;;  %299 = vadd.xlane.f32.xlu0 %v298_v20  ;;  %v456_v5 = vadd.f32 %v455_v4, %v454_v3 }
  0xae   : > { %v457_v6 = vrot.slane %v456_v5, 2 }
  0xb0   : > { %v458_v7 = vadd.f32 %v457_v6, %v456_v5 }
  0xb2   : > { %v459_v8 = vrot.slane %v458_v7, 1 }
  0xb4   : > { %v460_v9 = vadd.f32 %v459_v8, %v458_v7 }
 0x135   : > { %v303_v26 = vpop.xlane.xlu1 %302 }
 0x136   : > { %v308_v27 = vmul.f32 0.0625, %v303_v26 }
 0x138   : > { %v311_v28 = vadd.f32 1e-05, %v308_v27 }
 0x139   : > { %v306_v29 = vpop.xlane.xlu1 %305  ;;  %v300_v30 = vpop.xlane.xlu0 %299 }
 0x13a   : > { %625 = vrsqrt.f32 %v311_v28  ;;  %v309_v31 = vmul.f32 0.0625, %v306_v29  ;;  %v307_v32 = vmul.f32 0.0625, %v300_v30 }
 0x13c   : > { %v312_v33 = vadd.f32 1e-05, %v309_v31  ;;  %v310_v34 = vadd.f32 1e-05, %v307_v32 }
 0x13e   : > { %627 = vrsqrt.f32 %v312_v33 }
 0x13f   : > { %629 = vrsqrt.f32 %v310_v34 }
 0x144   : > { %v626_v35 = vpop.eup %625 }
 0x145   : > { %v317_v37 = vmul.f32 %v626_v35, %v293_v10  ;;  %v462_v10 = vmul.f32 0.06666667, %v460_v9 }
 0x147   : > { %v326_v39 = vmul.f32 %v580_v36, %v317_v37 }
 0x148   : > { %v628_v40 = vpop.eup %627 }
 0x149   : > { %v630_v41 = vpop.eup %629  ;;  %v335_v42 = vadd.f32 %v581_v38, %v326_v39  ;;  %v318_v43 = vmul.f32 %v628_v40, %v294_v11  ;;  %v463_v11 = vadd.f32 1e-06, %v462_v10 }
 0x14a   : > { %v316_v44 = vmul.f32 %v630_v41, %v292_v16 }
 0x14b   : > { %603 = vmatmul.mubr.msk.f32.vlgmr.msra.gmra.mrb[0].mxu1 %vm277_vm0, %v335_v42  ;;  %v327_v45 = vmul.f32 %v580_v36, %v318_v43  ;;  %631 = vrsqrt.f32 %v463_v11 }
 0x14c   : > { %605 = vmatprep.mubr.msk.f32.mxu1 %vm642_vm2, %v643_v25  ;;  %v325_v46 = vmul.f32 %v580_v36, %v316_v44 }
 0x14d   : > { %v336_v47 = vadd.f32 %v581_v38, %v327_v45 }
 0x14e   : > { %v334_v48 = vadd.f32 %v581_v38, %v325_v46 }
 0x14f   : > { %606 = vmatmul.mubr.msk.f32.gmra.mrb[2].mxu1 %vm277_vm0, %v336_v47 }
 0x150   : > { %600 = vmatmul.mubr.msk.f32.vlgmr.msra.gmra.mrb[0].mxu0 %vm277_vm0, %v334_v48 }
 0x155   : > { %v632_v12 = vpop.eup %631 }
 0x156   : > { %v465_v13 = vmul.f32 %v632_v12, %v448_v61  ;;  %v466_v14 = vmul.f32 %v632_v12, %v449_v62 }
 0x158   : > { %v470_v15 = vrot.slane %v465_v13, 7  ;;  %v471_v16 = vrot.slane %v466_v14, 7 }
 0x15a   : > { %v472_v19 = vsel %vm469_vm4, %v470_v15, %v471_v16 }
 0x21e   : > { %v426_v18 = vpop.f32.mrb[0].mxu1 }
 0x21f   : > { %v427_v20 = vadd.f32 %v582_v17, %v426_v18  ;;  %v604_v21 = vpop.f32.mrb[1].mxu1 }
 0x221   : > { %v477_v22 = vsub.f32 %v427_v20, %v472_v19 }
 0x222   : > { %v431_v23 = vpop.f32.mrb[2].mxu1 }
 0x223   : > { %v421_v24 = vpop.f32.mrb[0].mxu0  ;;  %v432_v25 = vadd.f32 %v582_v17, %v431_v23  ;;  %v607_v26 = vpop.f32.mrb[3].mxu1  ;;  %v480_v27 = vmul.f32 %v477_v22, %v477_v22 }
 0x224   : > { %v422_v28 = vadd.f32 %v582_v17, %v421_v24  ;;  %v601_v29 = vpop.f32.mrb[1].mxu0 }
 0x225   : > { %v486_v30 = vsel %vm437_vm3, %v480_v27, 0.0  ;;  %v478_v32 = vsub.f32 %v432_v25, %v471_v16 }
 0x226   : > { %v476_v31 = vsub.f32 %v422_v28, %v470_v15  ;;  %487 = vadd.xlane.f32.xlu1 %v486_v30 }
 0x227   : > { %v481_v35 = vmul.f32 %v478_v32, %v478_v32 }
 0x228   : > { %v479_v33 = vmul.f32 %v476_v31, %v476_v31 }
 0x229   : > { %v490_v36 = vsel %vm489_vm6, %v481_v35, 0.0 }
 0x22a   : > { %v483_v34 = vsel %vm482_vm5, %v479_v33, 0.0 }
 0x22b   : > { %484 = vadd.xlane.f32.xlu0 %v483_v34 }
 0x22f   : > { %491 = vadd.xlane.f32.xlu0 %v490_v36 }
 0x2b3   : > { %v488_v37 = vpop.xlane.xlu1 %487 }
 0x2b4   : > { %v495_v38 = vmul.f32 0.03125, %v488_v37 }
 0x2b6   : > { %500 = vst.msk [vmem:[%s271_s19 + $0x7] sm:$0xff] %vm499_vm7, %v495_v38 }
 0x2b8   : > { %v485_v39 = vpop.xlane.xlu0 %484 }
 0x2b9   : > { %v494_v40 = vmul.f32 0.03125, %v485_v39 }
 0x2bb   : > { %498 = vst.msk [vmem:[%s271_s19 - $0x1] sm:$0xfe] %vm497_vm8, %v494_v40 }
 0x2bc   : > { %v492_v41 = vpop.xlane.xlu0 %491 }
 0x2bd   : > { %v496_v42 = vmul.f32 0.03125, %v492_v41 }
 0x2bf   : > { %502 = vst.msk [vmem:[%s271_s19 + $0xf] sm:$0x1] %vm501_vm9, %v496_v42 }
 0x2c0 PF: > { %s16_s21 = sadd.s32 1, %s639_s21  }
 0x2c1   : > { %p13_p4 = scmp.ge.s32.totalorder %s16_s21, 4  }
 0x2c3   :  { %15 = sbr.rel (!%p13_p4) target bundleno = 1 (0x1), region = 77 }

</bundles_post_ra>
